<compile_context>
chip_gen: v6e
topology: v6e:2x2x1
jax: 0.10.0
libtpu: 0.0.40
codegen_flags: <defaults>
</compile_context>

<pallas_src>
import functools

import jax
import jax.numpy as jnp
from jax.experimental import pallas as pl
from jax.experimental.pallas import tpu as pltpu


def _smooth_reg_kernel(x_ref, halo_ref, cmask_ref, out_ref, ring_ref, stash_ref,
                       *, d_total, wp, num_t):
    """One (channel, D-tile, time) step.

    x_ref:     (1, 1, Dt, HWp)  displacement block at time t
    halo_ref:  (1, 1, 2, HWp)   rows d_tile..d_tile+1 of the NEXT D tile (zeros past D)
    cmask_ref: (2, HWp)         column validity: (h<H-1)&(w<W-1), (h<H-2)&(w<W-2)
    out_ref:   (1, 1, 4, HWp)   partial sums [s1, s2, t1, t2], resident across T
    ring_ref:  (2, Dt, HWp)     x[t-1], x[t-2] carried in VMEM (input dtype)
    stash_ref: (2, Dt, HWp)     x[0], x[1] for the circular temporal wrap
    """
    t = pl.program_id(2)
    k = pl.program_id(1)

    x_raw = x_ref[0, 0]                          # (Dt, HWp), input dtype
    x = x_raw.astype(jnp.float32)
    halo = halo_ref[0, 0].astype(jnp.float32)    # (2, HWp)

    dt_rows, hw = x.shape

    # ---- init of the carried state at the start of every (c, k) T-loop ------
    @pl.when(t == 0)
    def _():
        out_ref[...] = jnp.zeros_like(out_ref)
        stash_ref[0] = x_raw          # x[t=0]  (circular wrap)
        stash_ref[1] = x_raw          # defensive; overwritten at t==1 if T >= 2
        ring_ref[0] = x_raw           # defensive ring init
        ring_ref[1] = x_raw

    @pl.when(t == 1)
    def _():
        stash_ref[1] = x_raw          # x[t=1]  (circular wrap of the 2nd diff)

    # ---- validity masks (built in-kernel; no full-size mask arrays) ---------
    rloc = jax.lax.broadcasted_iota(jnp.int32, (dt_rows, hw), 0)
    rglb = rloc + k * dt_rows                       # global d index of each row
    m_in = rglb < d_total                           # inside the (unpadded) volume
    cm1 = cmask_ref[0:1, :] > 0.5                   # (1, HWp)
    cm2 = cmask_ref[1:2, :] > 0.5
    m1 = jnp.logical_and(rglb < d_total - 1, cm1)   # 1st-order valid region
    m2 = jnp.logical_and(rglb < d_total - 2, cm2)   # 2nd-order valid region

    # ---- spatial forward differences at base time t --------------------------
    # Column rolls are whole-vreg XLU moves when Wp is a multiple of 128.
    def cshift(a, s):                               # a[(col + s) % hw]
        return pltpu.roll(a, (hw - s) % hw, 1)

    last1 = rloc == dt_rows - 1
    last2 = rloc == dt_rows - 2
    x_d1 = jnp.where(last1, halo[0:1, :],
                     pltpu.roll(x, (dt_rows - 1) % dt_rows, 0))        # x[d+1]
    x_d2 = jnp.where(last2, halo[0:1, :],
                     jnp.where(last1, halo[1:2, :],
                               pltpu.roll(x, (dt_rows - 2) % dt_rows, 0)))  # x[d+2]
    x_h1 = cshift(x, wp)                                               # x[h+1]
    x_h2 = cshift(x, 2 * wp)                                           # x[h+2]
    x_w1 = cshift(x, 1)                                                # x[w+1]
    x_w2 = cshift(x, 2)                                                # x[w+2]

    gx = x_d1 - x
    gy = x_h1 - x
    gz = x_w1 - x
    s1 = gx * gx + gy * gy + gz * gz

    dxx = (x_d2 - x_d1) - gx
    dyy = (x_h2 - x_h1) - gy
    dzz = (x_w2 - x_w1) - gz
    dxy = cshift(gx, wp) - gx
    dxz = cshift(gx, 1) - gx
    dyz = cshift(gy, 1) - gy
    # NOTE(v5e): 9 XLU rolls vs ~45 VPU ops per vreg keeps the XLU well below
    # the binding slot; re-check with a bundle dump if the roll mix changes.
    s2 = (dxx * dxx + dyy * dyy + dzz * dzz
          + 2.0 * (dxy * dxy + dxz * dxz + dyz * dyz))

    p1 = jnp.sum(jnp.where(m1, s1, 0.0), axis=0, keepdims=True)        # (1, HWp)
    p2 = jnp.sum(jnp.where(m2, s2, 0.0), axis=0, keepdims=True)
    out_ref[0, 0, 0:1, :] = out_ref[0, 0, 0:1, :] + p1
    out_ref[0, 0, 1:2, :] = out_ref[0, 0, 1:2, :] + p2

    # ---- temporal circular forward differences (VMEM ring, 1 HBM read/step) --
    prev1 = ring_ref[(t + 1) % 2].astype(jnp.float32)   # x[t-1]  (valid for t >= 1)
    prev2 = ring_ref[t % 2].astype(jnp.float32)         # x[t-2]  (valid for t >= 2)
    d_t = x - prev1                                      # 1st diff at base time t-1

    @pl.when(t >= 1)
    def _():
        v = jnp.sum(jnp.where(m_in, d_t * d_t, 0.0), axis=0, keepdims=True)
        out_ref[0, 0, 2:3, :] = out_ref[0, 0, 2:3, :] + v

    @pl.when(t >= 2)
    def _():
        d_tt = d_t - (prev1 - prev2)                     # 2nd diff at base time t-2
        v = jnp.sum(jnp.where(m_in, d_tt * d_tt, 0.0), axis=0, keepdims=True)
        out_ref[0, 0, 3:4, :] = out_ref[0, 0, 3:4, :] + v

    @pl.when(t == num_t - 1)
    def _():
        x0 = stash_ref[0].astype(jnp.float32)
        x1 = stash_ref[1].astype(jnp.float32)
        dt_wrap = x0 - x                                 # 1st diff at base time T-1
        v1 = jnp.sum(jnp.where(m_in, dt_wrap * dt_wrap, 0.0), axis=0, keepdims=True)
        out_ref[0, 0, 2:3, :] = out_ref[0, 0, 2:3, :] + v1
        dtt_last = (x1 - x0) - dt_wrap                   # 2nd diff at base time T-1
        acc = jnp.where(m_in, dtt_last * dtt_last, 0.0)
        if num_t >= 2:                                   # distinct base time T-2
            dtt_pen = dt_wrap - d_t                      # x0 - 2*x[T-1] + x[T-2]
            acc = acc + jnp.where(m_in, dtt_pen * dtt_pen, 0.0)
        v2 = jnp.sum(acc, axis=0, keepdims=True)
        out_ref[0, 0, 3:4, :] = out_ref[0, 0, 3:4, :] + v2

    # Ring update AFTER all reads of the previous two time steps.
    ring_ref[t % 2] = x_raw


def _need_vmem_bytes(d_tile, hwp, itemsize):
    """Exact pipeline + scratch VMEM accounting for one kernel instance."""
    blk = d_tile * hwp
    return (2 * blk * itemsize            # x block, double-buffered
            + 2 * 2 * hwp * itemsize      # halo rows, double-buffered
            + 2 * 2 * hwp * 4             # column masks (f32)
            + 2 * 4 * hwp * 4             # resident accumulator output block
            + 2 * 2 * blk * itemsize)     # ring + stash scratch (input dtype)


def smooth_regularization(disp, s1w=0.1, s2w=0.1, t1w=0.1, t2w=0.1, d_tile=None):
    """Pallas implementation of SmoothRegularization(mode='dvf', grad='forward').

    disp: (T, C, D, H, W).  Weights must be Python scalars (as in the module).
    """
    t_, c_, d_, h_, w_ = disp.shape
    if d_ < 3 or h_ < 3 or w_ < 3:
        raise ValueError("spatial dims must be >= 3 for second-order differences")

    # Stream bf16 directly (upcast in-kernel); everything else goes to f32.
    if disp.dtype != jnp.bfloat16:
        disp = disp.astype(jnp.float32)
    itemsize = disp.dtype.itemsize

    # Pad W to a lane-dense multiple of 128 only when needed (padding is zeros
    # and is folded into the column masks; temporal diffs of zeros are zero).
    wp = ((w_ + 127) // 128) * 128
    if wp != w_:
        disp = jnp.pad(disp, [(0, 0)] * 4 + [(0, wp - w_)])
    hwp = h_ * wp
    xr = disp.reshape(t_, c_, d_, hwp)            # (T, C, D, H*Wp), W innermost

    # ---- per-generation VMEM budgeting & D-tile selection --------------------
    try:
        cap = int(pltpu.get_tpu_info().vmem_capacity_bytes)
    except Exception:
        cap = 64 * 1024 * 1024                    # conservative (v7x per-TC)
    budget = int(0.8 * cap)

    if d_tile is None:
        if _need_vmem_bytes(d_, hwp, itemsize) <= budget:
            dt_, d_eff = d_, d_
        else:
            d_eff = ((d_ + 7) // 8) * 8           # full, 8-aligned tiles only
            dt_ = 8
            for cand in range(d_eff, 7, -8):
                if d_eff % cand == 0 and _need_vmem_bytes(cand, hwp, itemsize) <= budget:
                    dt_ = cand
                    break
    else:
        dt_ = int(d_tile)
        if dt_ != d_ and dt_ % 8 != 0:
            raise ValueError("d_tile must equal D or be a multiple of 8")
        d_eff = ((d_ + dt_ - 1) // dt_) * dt_

    if d_eff != d_:                               # zero rows; masked in-kernel
        xr = jnp.pad(xr, [(0, 0), (0, 0), (0, d_eff - d_), (0, 0)])
    n_k = d_eff // dt_

    # ---- small side inputs ----------------------------------------------------
    # Halo: first two D-rows of the next tile (zeros past the end).  Slices only
    # touch 2 rows per tile, so this is a tiny fraction of the volume.
    zero2 = jnp.zeros((t_, c_, 2, hwp), xr.dtype)
    halos = []
    for kk in range(n_k):
        start = (kk + 1) * dt_
        avail = max(0, min(2, d_eff - start))
        if avail == 2:
            hk = xr[:, :, start:start + 2, :]
        elif avail == 1:
            hk = jnp.concatenate([xr[:, :, start:start + 1, :], zero2[:, :, :1, :]], axis=2)
        else:
            hk = zero2
        halos.append(hk)
    halo = jnp.stack(halos, axis=2).reshape(t_, c_ * n_k, 2, hwp)

    # Column validity masks (include W-padding); the 1/count normalisation and
    # the loss weights are applied AFTER the global sum for better numerics.
    hh = jnp.arange(h_).reshape(h_, 1)
    ww = jnp.arange(wp).reshape(1, wp)
    cm1 = ((hh < h_ - 1) & (ww < w_ - 1)).reshape(hwp)
    cm2 = ((hh < h_ - 2) & (ww < w_ - 2)).reshape(hwp)
    cmask = jnp.stack([cm1, cm2]).astype(jnp.float32)          # (2, HWp)

    need = _need_vmem_bytes(dt_, hwp, itemsize)
    vmem_limit = int(min(cap, max(32 * 1024 * 1024, need + 16 * 1024 * 1024)))

    kernel = functools.partial(_smooth_reg_kernel, d_total=d_, wp=wp, num_t=t_)

    partials = pl.pallas_call(
        kernel,
        out_shape=jax.ShapeDtypeStruct((c_, n_k, 4, hwp), jnp.float32),
        grid_spec=pltpu.PrefetchScalarGridSpec(
            num_scalar_prefetch=0,
            grid=(c_, n_k, t_),
            in_specs=[
                pl.BlockSpec((1, 1, dt_, hwp), lambda c, k, t: (t, c, k, 0)),
                pl.BlockSpec((1, 1, 2, hwp),
                             lambda c, k, t: (t, c * n_k + k, 0, 0)),
                pl.BlockSpec((2, hwp), lambda c, k, t: (0, 0)),
            ],
            out_specs=pl.BlockSpec((1, 1, 4, hwp), lambda c, k, t: (c, k, 0, 0)),
            scratch_shapes=[
                pltpu.VMEM((2, dt_, hwp), xr.dtype),   # temporal ring x[t-1], x[t-2]
                pltpu.VMEM((2, dt_, hwp), xr.dtype),   # stash x[0], x[1] for the wrap
            ],
        ),
        compiler_params=pltpu.CompilerParams(
            dimension_semantics=("parallel", "parallel", "arbitrary"),
            vmem_limit_bytes=vmem_limit,
        ),
    )(xr, halo, cmask)

    sums = jnp.sum(partials, axis=(0, 1, 3))       # (4,) -> [s1, s2, t1, t2]
    cnt1 = t_ * c_ * (d_ - 1) * (h_ - 1) * (w_ - 1)
    cnt2 = t_ * c_ * (d_ - 2) * (h_ - 2) * (w_ - 2)
    cntt = t_ * c_ * d_ * h_ * w_

    res = jnp.float32(0.0)
    if s1w > 0:
        res = res + jnp.float32(s1w) * sums[0] / cnt1
    if s2w > 0:
        res = res + jnp.float32(s2w) * sums[1] / cnt2
    if t1w > 0:
        res = res + jnp.float32(t1w) * sums[2] / cntt
    if t2w > 0:
        res = res + jnp.float32(t2w) * sums[3] / cntt
    return res


def smooth_regularization_ref(disp, s1w=0.1, s2w=0.1, t1w=0.1, t2w=0.1):
    """Pure-JAX reference mirroring the PyTorch forward exactly."""
    disp = disp.astype(jnp.float32)
    gx = lambda a: a[:, :, 1:, :-1, :-1] - a[:, :, :-1, :-1, :-1]
    gy = lambda a: a[:, :, :-1, 1:, :-1] - a[:, :, :-1, :-1, :-1]
    gz = lambda a: a[:, :, :-1, :-1, 1:] - a[:, :, :-1, :-1, :-1]

    dTdx, dTdy, dTdz = gx(disp), gy(disp), gz(disp)
    res = s1w * jnp.mean(dTdx ** 2 + dTdy ** 2 + dTdz ** 2)

    dTdxx, dTdyy, dTdzz = gx(dTdx), gy(dTdy), gz(dTdz)
    dTdxy, dTdyz, dTdxz = gy(dTdx), gz(dTdy), gz(dTdx)
    res += s2w * jnp.mean(dTdxx ** 2 + dTdyy ** 2 + dTdzz ** 2
                          + 2 * dTdxy ** 2 + 2 * dTdxz ** 2 + 2 * dTdyz ** 2)

    dTdt = jnp.roll(disp, -1, axis=0) - disp
    res += t1w * jnp.mean(dTdt ** 2)
    dTdtt = jnp.roll(dTdt, -1, axis=0) - dTdt
    res += t2w * jnp.mean(dTdtt ** 2)
    return res


if __name__ == "__main__":
    key = jax.random.PRNGKey(0)
    k1, k2 = jax.random.split(key)

    # (T, C, D, H, W) displacement field; W=128 keeps the lane axis dense.
    disp = jax.random.normal(k1, (4, 3, 8, 16, 128), dtype=jnp.float32)
    out = jax.block_until_ready(jax.jit(smooth_regularization)(disp))
    ref = jax.block_until_ready(smooth_regularization_ref(disp))
    assert jnp.isfinite(out), "non-finite kernel output"
    assert jnp.allclose(out, ref, rtol=2e-4, atol=1e-6), (out, ref)

    # Exercise W padding (100 -> 128 lanes), D-halo tiling (D=16, Dt=8) and a
    # longer temporal ring (T=5).
    disp2 = jax.random.normal(k2, (5, 2, 16, 10, 100), dtype=jnp.float32)
    out2 = jax.block_until_ready(
        jax.jit(functools.partial(smooth_regularization, d_tile=8))(disp2))
    ref2 = jax.block_until_ready(smooth_regularization_ref(disp2))
    assert jnp.isfinite(out2), "non-finite kernel output (tiled)"
    assert jnp.allclose(out2, ref2, rtol=2e-4, atol=1e-6), (out2, ref2)

    print("KERNEL_OK")
</pallas_src>

<mosaic_0001>
module attributes {stable_mosaic.version = 11 : i64} {
  func.func @_smooth_reg_kernel(%arg0: i32, %arg1: i32, %arg2: i32, %arg3: memref<1x1x8x2048xf32, #tpu.memory_space<vmem>>, %arg4: memref<1x1x2x2048xf32, #tpu.memory_space<vmem>>, %arg5: memref<2x2048xf32, #tpu.memory_space<vmem>>, %arg6: memref<1x1x4x2048xf32, #tpu.memory_space<vmem>>, %arg7: memref<2x8x2048xf32, #tpu.memory_space<vmem>>, %arg8: memref<2x8x2048xf32, #tpu.memory_space<vmem>>) attributes {dimension_semantics = [#tpu.dimension_semantics<parallel>, #tpu.dimension_semantics<parallel>, #tpu.dimension_semantics<arbitrary>], iteration_bounds = array<i64: 3, 1, 4>, scalar_prefetch = 0 : i64, scratch_operands = 2 : i64, tpu.core_type = #tpu.core_type<tc>, window_params = [{transform_indices = @transform_0, window_bounds = array<i64: 1, 1, 8, 2048>}, {transform_indices = @transform_1, window_bounds = array<i64: 1, 1, 2, 2048>}, {pipeline_mode = #tpu.pipeline_mode<synchronous>, transform_indices = @transform_2, window_bounds = array<i64: 2, 2048>}, {transform_indices = @transform_3, window_bounds = array<i64: 1, 1, 4, 2048>}]} {
    %c0 = arith.constant 0 : index
    %c0_0 = arith.constant 0 : index
    %c0_1 = arith.constant 0 : index
    %c0_2 = arith.constant 0 : index
    %0 = vector.load %arg3[%c0, %c0_0, %c0_1, %c0_2] : memref<1x1x8x2048xf32, #tpu.memory_space<vmem>>, vector<1x1x8x2048xf32>
    %1 = vector.shape_cast %0 : vector<1x1x8x2048xf32> to vector<8x2048xf32>
    %c0_3 = arith.constant 0 : index
    %c0_4 = arith.constant 0 : index
    %c0_5 = arith.constant 0 : index
    %c0_6 = arith.constant 0 : index
    %2 = vector.load %arg4[%c0_3, %c0_4, %c0_5, %c0_6] : memref<1x1x2x2048xf32, #tpu.memory_space<vmem>>, vector<1x1x2x2048xf32>
    %3 = vector.shape_cast %2 : vector<1x1x2x2048xf32> to vector<2x2048xf32>
    %c0_i32 = arith.constant 0 : i32
    %4 = arith.cmpi eq, %arg2, %c0_i32 : i32
    %5 = arith.extui %4 : i1 to i32
    %c0_i32_7 = arith.constant 0 : i32
    %6 = arith.cmpi ne, %5, %c0_i32_7 : i32
    scf.if %6 {
      %cst_71 = arith.constant 0.000000e+00 : f32
      %156 = vector.broadcast %cst_71 : f32 to vector<1x1x4x2048xf32>
      %c0_72 = arith.constant 0 : index
      %c0_73 = arith.constant 0 : index
      %c0_74 = arith.constant 0 : index
      %c0_75 = arith.constant 0 : index
      %157 = vector.load %arg6[%c0_72, %c0_73, %c0_74, %c0_75] : memref<1x1x4x2048xf32, #tpu.memory_space<vmem>>, vector<1x1x4x2048xf32>
      tpu.vector_store %arg6[%c0_72, %c0_73, %c0_74, %c0_75], %156 {strides = array<i32>} : memref<1x1x4x2048xf32, #tpu.memory_space<vmem>>, vector<1x1x4x2048xf32>,
      %c0_76 = arith.constant 0 : index
      %c0_77 = arith.constant 0 : index
      %c0_78 = arith.constant 0 : index
      %158 = vector.load %arg8[%c0_76, %c0_77, %c0_78] : memref<2x8x2048xf32, #tpu.memory_space<vmem>>, vector<1x8x2048xf32>
      %159 = vector.shape_cast %158 : vector<1x8x2048xf32> to vector<8x2048xf32>
      %160 = vector.shape_cast %1 : vector<8x2048xf32> to vector<1x8x2048xf32>
      tpu.vector_store %arg8[%c0_76, %c0_77, %c0_78], %160 {strides = array<i32>} : memref<2x8x2048xf32, #tpu.memory_space<vmem>>, vector<1x8x2048xf32>,
      %c1_79 = arith.constant 1 : index
      %c0_80 = arith.constant 0 : index
      %c0_81 = arith.constant 0 : index
      %161 = vector.load %arg8[%c1_79, %c0_80, %c0_81] : memref<2x8x2048xf32, #tpu.memory_space<vmem>>, vector<1x8x2048xf32>
      %162 = vector.shape_cast %161 : vector<1x8x2048xf32> to vector<8x2048xf32>
      %163 = vector.shape_cast %1 : vector<8x2048xf32> to vector<1x8x2048xf32>
      tpu.vector_store %arg8[%c1_79, %c0_80, %c0_81], %163 {strides = array<i32>} : memref<2x8x2048xf32, #tpu.memory_space<vmem>>, vector<1x8x2048xf32>,
      %c0_82 = arith.constant 0 : index
      %c0_83 = arith.constant 0 : index
      %c0_84 = arith.constant 0 : index
      %164 = vector.load %arg7[%c0_82, %c0_83, %c0_84] : memref<2x8x2048xf32, #tpu.memory_space<vmem>>, vector<1x8x2048xf32>
      %165 = vector.shape_cast %164 : vector<1x8x2048xf32> to vector<8x2048xf32>
      %166 = vector.shape_cast %1 : vector<8x2048xf32> to vector<1x8x2048xf32>
      tpu.vector_store %arg7[%c0_82, %c0_83, %c0_84], %166 {strides = array<i32>} : memref<2x8x2048xf32, #tpu.memory_space<vmem>>, vector<1x8x2048xf32>,
      %c1_85 = arith.constant 1 : index
      %c0_86 = arith.constant 0 : index
      %c0_87 = arith.constant 0 : index
      %167 = vector.load %arg7[%c1_85, %c0_86, %c0_87] : memref<2x8x2048xf32, #tpu.memory_space<vmem>>, vector<1x8x2048xf32>
      %168 = vector.shape_cast %167 : vector<1x8x2048xf32> to vector<8x2048xf32>
      %169 = vector.shape_cast %1 : vector<8x2048xf32> to vector<1x8x2048xf32>
      tpu.vector_store %arg7[%c1_85, %c0_86, %c0_87], %169 {strides = array<i32>} : memref<2x8x2048xf32, #tpu.memory_space<vmem>>, vector<1x8x2048xf32>,
    } else {
    }
    %c1_i32 = arith.constant 1 : i32
    %7 = arith.cmpi eq, %arg2, %c1_i32 : i32
    %8 = arith.extui %7 : i1 to i32
    %c0_i32_8 = arith.constant 0 : i32
    %9 = arith.cmpi ne, %8, %c0_i32_8 : i32
    scf.if %9 {
      %c1_71 = arith.constant 1 : index
      %c0_72 = arith.constant 0 : index
      %c0_73 = arith.constant 0 : index
      %156 = vector.load %arg8[%c1_71, %c0_72, %c0_73] : memref<2x8x2048xf32, #tpu.memory_space<vmem>>, vector<1x8x2048xf32>
      %157 = vector.shape_cast %156 : vector<1x8x2048xf32> to vector<8x2048xf32>
      %158 = vector.shape_cast %1 : vector<8x2048xf32> to vector<1x8x2048xf32>
      tpu.vector_store %arg8[%c1_71, %c0_72, %c0_73], %158 {strides = array<i32>} : memref<2x8x2048xf32, #tpu.memory_space<vmem>>, vector<1x8x2048xf32>,
    } else {
    }
    %10 = tpu.iota {dimensions = array<i32: 0>} : vector<8x2048xi32>
    %c8_i32 = arith.constant 8 : i32
    %11 = arith.muli %arg1, %c8_i32 : i32
    %12 = vector.broadcast %11 : i32 to vector<8x2048xi32>
    %13 = arith.addi %10, %12 : vector<8x2048xi32>
    %c8_i32_9 = arith.constant 8 : i32
    %14 = vector.broadcast %c8_i32_9 : i32 to vector<8x2048xi32>
    %15 = arith.cmpi slt, %13, %14 : vector<8x2048xi32>
    %c0_10 = arith.constant 0 : index
    %c0_11 = arith.constant 0 : index
    %16 = vector.load %arg5[%c0_10, %c0_11] : memref<2x2048xf32, #tpu.memory_space<vmem>>, vector<1x2048xf32>
    %cst = arith.constant 5.000000e-01 : f32
    %17 = vector.broadcast %cst : f32 to vector<1x2048xf32>
    %18 = arith.cmpf ogt, %16, %17 : vector<1x2048xf32>
    %c1 = arith.constant 1 : index
    %c0_12 = arith.constant 0 : index
    %19 = vector.load %arg5[%c1, %c0_12] : memref<2x2048xf32, #tpu.memory_space<vmem>>, vector<1x2048xf32>
    %cst_13 = arith.constant 5.000000e-01 : f32
    %20 = vector.broadcast %cst_13 : f32 to vector<1x2048xf32>
    %21 = arith.cmpf ogt, %19, %20 : vector<1x2048xf32>
    %c7_i32 = arith.constant 7 : i32
    %22 = vector.broadcast %c7_i32 : i32 to vector<8x2048xi32>
    %23 = arith.cmpi slt, %13, %22 : vector<8x2048xi32>
    %24 = vector.broadcast %18 : vector<1x2048xi1> to vector<8x2048xi1>
    %25 = arith.andi %23, %24 : vector<8x2048xi1>
    %c6_i32 = arith.constant 6 : i32
    %26 = vector.broadcast %c6_i32 : i32 to vector<8x2048xi32>
    %27 = arith.cmpi slt, %13, %26 : vector<8x2048xi32>
    %28 = vector.broadcast %21 : vector<1x2048xi1> to vector<8x2048xi1>
    %29 = arith.andi %27, %28 : vector<8x2048xi1>
    %c7_i32_14 = arith.constant 7 : i32
    %30 = vector.broadcast %c7_i32_14 : i32 to vector<8x2048xi32>
    %31 = arith.cmpi eq, %10, %30 : vector<8x2048xi32>
    %c6_i32_15 = arith.constant 6 : i32
    %32 = vector.broadcast %c6_i32_15 : i32 to vector<8x2048xi32>
    %33 = arith.cmpi eq, %10, %32 : vector<8x2048xi32>
    %34 = vector.extract_strided_slice %3 {offsets = [0, 0], sizes = [1, 2048], strides = [1, 1]} : vector<2x2048xf32> to vector<1x2048xf32>
    %c7_i32_16 = arith.constant 7 : i32
    %35 = tpu.dynamic_rotate %1 by %c7_i32_16 dim 0 : vector<8x2048xf32>, i32 -> vector<8x2048xf32>
    %36 = vector.shape_cast %34 : vector<1x2048xf32> to vector<1x2048xf32>
    %37 = vector.broadcast %36 : vector<1x2048xf32> to vector<8x2048xf32>
    %38 = arith.select %31, %37, %35 : vector<8x2048xi1>, vector<8x2048xf32>
    %39 = vector.extract_strided_slice %3 {offsets = [0, 0], sizes = [1, 2048], strides = [1, 1]} : vector<2x2048xf32> to vector<1x2048xf32>
    %40 = vector.extract_strided_slice %3 {offsets = [1, 0], sizes = [1, 2048], strides = [1, 1]} : vector<2x2048xf32> to vector<1x2048xf32>
    %c6_i32_17 = arith.constant 6 : i32
    %41 = tpu.dynamic_rotate %1 by %c6_i32_17 dim 0 : vector<8x2048xf32>, i32 -> vector<8x2048xf32>
    %42 = vector.shape_cast %40 : vector<1x2048xf32> to vector<1x2048xf32>
    %43 = vector.broadcast %42 : vector<1x2048xf32> to vector<8x2048xf32>
    %44 = arith.select %31, %43, %41 : vector<8x2048xi1>, vector<8x2048xf32>
    %45 = vector.shape_cast %39 : vector<1x2048xf32> to vector<1x2048xf32>
    %46 = vector.broadcast %45 : vector<1x2048xf32> to vector<8x2048xf32>
    %47 = arith.select %33, %46, %44 : vector<8x2048xi1>, vector<8x2048xf32>
    %c1920_i32 = arith.constant 1920 : i32
    %48 = tpu.dynamic_rotate %1 by %c1920_i32 dim 1 : vector<8x2048xf32>, i32 -> vector<8x2048xf32>
    %c1792_i32 = arith.constant 1792 : i32
    %49 = tpu.dynamic_rotate %1 by %c1792_i32 dim 1 : vector<8x2048xf32>, i32 -> vector<8x2048xf32>
    %c2047_i32 = arith.constant 2047 : i32
    %50 = tpu.dynamic_rotate %1 by %c2047_i32 dim 1 : vector<8x2048xf32>, i32 -> vector<8x2048xf32>
    %c2046_i32 = arith.constant 2046 : i32
    %51 = tpu.dynamic_rotate %1 by %c2046_i32 dim 1 : vector<8x2048xf32>, i32 -> vector<8x2048xf32>
    %52 = arith.subf %38, %1 : vector<8x2048xf32>
    %53 = arith.subf %48, %1 : vector<8x2048xf32>
    %54 = arith.subf %50, %1 : vector<8x2048xf32>
    %55 = arith.mulf %52, %52 : vector<8x2048xf32>
    %56 = arith.mulf %53, %53 : vector<8x2048xf32>
    %57 = arith.addf %55, %56 : vector<8x2048xf32>
    %58 = arith.mulf %54, %54 : vector<8x2048xf32>
    %59 = arith.addf %57, %58 : vector<8x2048xf32>
    %60 = arith.subf %47, %38 : vector<8x2048xf32>
    %61 = arith.subf %60, %52 : vector<8x2048xf32>
    %62 = arith.subf %49, %48 : vector<8x2048xf32>
    %63 = arith.subf %62, %53 : vector<8x2048xf32>
    %64 = arith.subf %51, %50 : vector<8x2048xf32>
    %65 = arith.subf %64, %54 : vector<8x2048xf32>
    %c1920_i32_18 = arith.constant 1920 : i32
    %66 = tpu.dynamic_rotate %52 by %c1920_i32_18 dim 1 : vector<8x2048xf32>, i32 -> vector<8x2048xf32>
    %67 = arith.subf %66, %52 : vector<8x2048xf32>
    %c2047_i32_19 = arith.constant 2047 : i32
    %68 = tpu.dynamic_rotate %52 by %c2047_i32_19 dim 1 : vector<8x2048xf32>, i32 -> vector<8x2048xf32>
    %69 = arith.subf %68, %52 : vector<8x2048xf32>
    %c2047_i32_20 = arith.constant 2047 : i32
    %70 = tpu.dynamic_rotate %53 by %c2047_i32_20 dim 1 : vector<8x2048xf32>, i32 -> vector<8x2048xf32>
    %71 = arith.subf %70, %53 : vector<8x2048xf32>
    %72 = arith.mulf %61, %61 : vector<8x2048xf32>
    %73 = arith.mulf %63, %63 : vector<8x2048xf32>
    %74 = arith.addf %72, %73 : vector<8x2048xf32>
    %75 = arith.mulf %65, %65 : vector<8x2048xf32>
    %76 = arith.addf %74, %75 : vector<8x2048xf32>
    %77 = arith.mulf %67, %67 : vector<8x2048xf32>
    %78 = arith.mulf %69, %69 : vector<8x2048xf32>
    %79 = arith.addf %77, %78 : vector<8x2048xf32>
    %80 = arith.mulf %71, %71 : vector<8x2048xf32>
    %81 = arith.addf %79, %80 : vector<8x2048xf32>
    %cst_21 = arith.constant 2.000000e+00 : f32
    %82 = vector.broadcast %cst_21 : f32 to vector<8x2048xf32>
    %83 = arith.mulf %82, %81 : vector<8x2048xf32>
    %84 = arith.addf %76, %83 : vector<8x2048xf32>
    %cst_22 = arith.constant 0.000000e+00 : f32
    %85 = vector.broadcast %cst_22 : f32 to vector<8x2048xf32>
    %86 = arith.select %25, %59, %85 : vector<8x2048xi1>, vector<8x2048xf32>
    %cst_23 = arith.constant dense<0.000000e+00> : vector<2048xf32>
    %87 = vector.multi_reduction <add>, %86, %cst_23 [0] : vector<8x2048xf32> to vector<2048xf32>
    %88 = vector.shape_cast %87 : vector<2048xf32> to vector<1x2048xf32>
    %cst_24 = arith.constant 0.000000e+00 : f32
    %89 = vector.broadcast %cst_24 : f32 to vector<8x2048xf32>
    %90 = arith.select %29, %84, %89 : vector<8x2048xi1>, vector<8x2048xf32>
    %cst_25 = arith.constant dense<0.000000e+00> : vector<2048xf32>
    %91 = vector.multi_reduction <add>, %90, %cst_25 [0] : vector<8x2048xf32> to vector<2048xf32>
    %92 = vector.shape_cast %91 : vector<2048xf32> to vector<1x2048xf32>
    %c0_26 = arith.constant 0 : index
    %c0_27 = arith.constant 0 : index
    %c0_28 = arith.constant 0 : index
    %c0_29 = arith.constant 0 : index
    %93 = vector.load %arg6[%c0_26, %c0_27, %c0_28, %c0_29] : memref<1x1x4x2048xf32, #tpu.memory_space<vmem>>, vector<1x1x1x2048xf32>
    %94 = vector.shape_cast %93 : vector<1x1x1x2048xf32> to vector<1x2048xf32>
    %95 = arith.addf %94, %88 : vector<1x2048xf32>
    %c0_30 = arith.constant 0 : index
    %c0_31 = arith.constant 0 : index
    %c0_32 = arith.constant 0 : index
    %c0_33 = arith.constant 0 : index
    %96 = vector.load %arg6[%c0_30, %c0_31, %c0_32, %c0_33] : memref<1x1x4x2048xf32, #tpu.memory_space<vmem>>, vector<1x1x1x2048xf32>
    %97 = vector.shape_cast %96 : vector<1x1x1x2048xf32> to vector<1x2048xf32>
    %98 = vector.shape_cast %95 : vector<1x2048xf32> to vector<1x1x1x2048xf32>
    tpu.vector_store %arg6[%c0_30, %c0_31, %c0_32, %c0_33], %98 {strides = array<i32>} : memref<1x1x4x2048xf32, #tpu.memory_space<vmem>>, vector<1x1x1x2048xf32>,
    %c0_34 = arith.constant 0 : index
    %c0_35 = arith.constant 0 : index
    %c1_36 = arith.constant 1 : index
    %c0_37 = arith.constant 0 : index
    %99 = vector.load %arg6[%c0_34, %c0_35, %c1_36, %c0_37] : memref<1x1x4x2048xf32, #tpu.memory_space<vmem>>, vector<1x1x1x2048xf32>
    %100 = vector.shape_cast %99 : vector<1x1x1x2048xf32> to vector<1x2048xf32>
    %101 = arith.addf %100, %92 : vector<1x2048xf32>
    %c0_38 = arith.constant 0 : index
    %c0_39 = arith.constant 0 : index
    %c1_40 = arith.constant 1 : index
    %c0_41 = arith.constant 0 : index
    %102 = vector.load %arg6[%c0_38, %c0_39, %c1_40, %c0_41] : memref<1x1x4x2048xf32, #tpu.memory_space<vmem>>, vector<1x1x1x2048xf32>
    %103 = vector.shape_cast %102 : vector<1x1x1x2048xf32> to vector<1x2048xf32>
    %104 = vector.shape_cast %101 : vector<1x2048xf32> to vector<1x1x1x2048xf32>
    tpu.vector_store %arg6[%c0_38, %c0_39, %c1_40, %c0_41], %104 {strides = array<i32>} : memref<1x1x4x2048xf32, #tpu.memory_space<vmem>>, vector<1x1x1x2048xf32>,
    %c1_i32_42 = arith.constant 1 : i32
    %105 = arith.addi %arg2, %c1_i32_42 : i32
    %c2_i32 = arith.constant 2 : i32
    %c0_i32_43 = arith.constant 0 : i32
    %106 = arith.cmpi eq, %c2_i32, %c0_i32_43 : i32
    %c1_i32_44 = arith.constant 1 : i32
    %107 = arith.select %106, %c1_i32_44, %c2_i32 : i32
    %108 = arith.remsi %105, %107 : i32
    %c0_i32_45 = arith.constant 0 : i32
    %109 = arith.cmpi ne, %108, %c0_i32_45 : i32
    %c0_i32_46 = arith.constant 0 : i32
    %110 = arith.cmpi slt, %108, %c0_i32_46 : i32
    %c0_i32_47 = arith.constant 0 : i32
    %111 = arith.cmpi slt, %107, %c0_i32_47 : i32
    %112 = arith.xori %110, %111 : i1
    %113 = arith.andi %112, %109 : i1
    %114 = arith.addi %108, %107 : i32
    %115 = arith.select %113, %114, %108 : i32
    %116 = arith.index_cast %115 : i32 to index
    %c0_48 = arith.constant 0 : index
    %c0_49 = arith.constant 0 : index
    %117 = vector.load %arg7[%116, %c0_48, %c0_49] : memref<2x8x2048xf32, #tpu.memory_space<vmem>>, vector<1x8x2048xf32>
    %118 = vector.shape_cast %117 : vector<1x8x2048xf32> to vector<8x2048xf32>
    %c2_i32_50 = arith.constant 2 : i32
    %c0_i32_51 = arith.constant 0 : i32
    %119 = arith.cmpi eq, %c2_i32_50, %c0_i32_51 : i32
    %c1_i32_52 = arith.constant 1 : i32
    %120 = arith.select %119, %c1_i32_52, %c2_i32_50 : i32
    %121 = arith.remsi %arg2, %120 : i32
    %c0_i32_53 = arith.constant 0 : i32
    %122 = arith.cmpi ne, %121, %c0_i32_53 : i32
    %c0_i32_54 = arith.constant 0 : i32
    %123 = arith.cmpi slt, %121, %c0_i32_54 : i32
    %c0_i32_55 = arith.constant 0 : i32
    %124 = arith.cmpi slt, %120, %c0_i32_55 : i32
    %125 = arith.xori %123, %124 : i1
    %126 = arith.andi %125, %122 : i1
    %127 = arith.addi %121, %120 : i32
    %128 = arith.select %126, %127, %121 : i32
    %129 = arith.index_cast %128 : i32 to index
    %c0_56 = arith.constant 0 : index
    %c0_57 = arith.constant 0 : index
    %130 = vector.load %arg7[%129, %c0_56, %c0_57] : memref<2x8x2048xf32, #tpu.memory_space<vmem>>, vector<1x8x2048xf32>
    %131 = vector.shape_cast %130 : vector<1x8x2048xf32> to vector<8x2048xf32>
    %132 = arith.subf %1, %118 : vector<8x2048xf32>
    %c1_i32_58 = arith.constant 1 : i32
    %133 = arith.cmpi sge, %arg2, %c1_i32_58 : i32
    %134 = arith.extui %133 : i1 to i32
    %c0_i32_59 = arith.constant 0 : i32
    %135 = arith.cmpi ne, %134, %c0_i32_59 : i32
    scf.if %135 {
      %156 = arith.mulf %132, %132 : vector<8x2048xf32>
      %cst_71 = arith.constant 0.000000e+00 : f32
      %157 = vector.broadcast %cst_71 : f32 to vector<8x2048xf32>
      %158 = arith.select %15, %156, %157 : vector<8x2048xi1>, vector<8x2048xf32>
      %cst_72 = arith.constant dense<0.000000e+00> : vector<2048xf32>
      %159 = vector.multi_reduction <add>, %158, %cst_72 [0] : vector<8x2048xf32> to vector<2048xf32>
      %160 = vector.shape_cast %159 : vector<2048xf32> to vector<1x2048xf32>
      %c0_73 = arith.constant 0 : index
      %c0_74 = arith.constant 0 : index
      %c2 = arith.constant 2 : index
      %c0_75 = arith.constant 0 : index
      %161 = vector.load %arg6[%c0_73, %c0_74, %c2, %c0_75] : memref<1x1x4x2048xf32, #tpu.memory_space<vmem>>, vector<1x1x1x2048xf32>
      %162 = vector.shape_cast %161 : vector<1x1x1x2048xf32> to vector<1x2048xf32>
      %163 = arith.addf %162, %160 : vector<1x2048xf32>
      %c0_76 = arith.constant 0 : index
      %c0_77 = arith.constant 0 : index
      %c2_78 = arith.constant 2 : index
      %c0_79 = arith.constant 0 : index
      %164 = vector.load %arg6[%c0_76, %c0_77, %c2_78, %c0_79] : memref<1x1x4x2048xf32, #tpu.memory_space<vmem>>, vector<1x1x1x2048xf32>
      %165 = vector.shape_cast %164 : vector<1x1x1x2048xf32> to vector<1x2048xf32>
      %166 = vector.shape_cast %163 : vector<1x2048xf32> to vector<1x1x1x2048xf32>
      tpu.vector_store %arg6[%c0_76, %c0_77, %c2_78, %c0_79], %166 {strides = array<i32>} : memref<1x1x4x2048xf32, #tpu.memory_space<vmem>>, vector<1x1x1x2048xf32>,
    } else {
    }
    %c2_i32_60 = arith.constant 2 : i32
    %136 = arith.cmpi sge, %arg2, %c2_i32_60 : i32
    %137 = arith.extui %136 : i1 to i32
    %c0_i32_61 = arith.constant 0 : i32
    %138 = arith.cmpi ne, %137, %c0_i32_61 : i32
    scf.if %138 {
      %156 = arith.subf %118, %131 : vector<8x2048xf32>
      %157 = arith.subf %132, %156 : vector<8x2048xf32>
      %158 = arith.mulf %157, %157 : vector<8x2048xf32>
      %cst_71 = arith.constant 0.000000e+00 : f32
      %159 = vector.broadcast %cst_71 : f32 to vector<8x2048xf32>
      %160 = arith.select %15, %158, %159 : vector<8x2048xi1>, vector<8x2048xf32>
      %cst_72 = arith.constant dense<0.000000e+00> : vector<2048xf32>
      %161 = vector.multi_reduction <add>, %160, %cst_72 [0] : vector<8x2048xf32> to vector<2048xf32>
      %162 = vector.shape_cast %161 : vector<2048xf32> to vector<1x2048xf32>
      %c0_73 = arith.constant 0 : index
      %c0_74 = arith.constant 0 : index
      %c3 = arith.constant 3 : index
      %c0_75 = arith.constant 0 : index
      %163 = vector.load %arg6[%c0_73, %c0_74, %c3, %c0_75] : memref<1x1x4x2048xf32, #tpu.memory_space<vmem>>, vector<1x1x1x2048xf32>
      %164 = vector.shape_cast %163 : vector<1x1x1x2048xf32> to vector<1x2048xf32>
      %165 = arith.addf %164, %162 : vector<1x2048xf32>
      %c0_76 = arith.constant 0 : index
      %c0_77 = arith.constant 0 : index
      %c3_78 = arith.constant 3 : index
      %c0_79 = arith.constant 0 : index
      %166 = vector.load %arg6[%c0_76, %c0_77, %c3_78, %c0_79] : memref<1x1x4x2048xf32, #tpu.memory_space<vmem>>, vector<1x1x1x2048xf32>
      %167 = vector.shape_cast %166 : vector<1x1x1x2048xf32> to vector<1x2048xf32>
      %168 = vector.shape_cast %165 : vector<1x2048xf32> to vector<1x1x1x2048xf32>
      tpu.vector_store %arg6[%c0_76, %c0_77, %c3_78, %c0_79], %168 {strides = array<i32>} : memref<1x1x4x2048xf32, #tpu.memory_space<vmem>>, vector<1x1x1x2048xf32>,
    } else {
    }
    %c3_i32 = arith.constant 3 : i32
    %139 = arith.cmpi eq, %arg2, %c3_i32 : i32
    %140 = arith.extui %139 : i1 to i32
    %c0_i32_62 = arith.constant 0 : i32
    %141 = arith.cmpi ne, %140, %c0_i32_62 : i32
    scf.if %141 {
      %c0_71 = arith.constant 0 : index
      %c0_72 = arith.constant 0 : index
      %c0_73 = arith.constant 0 : index
      %156 = vector.load %arg8[%c0_71, %c0_72, %c0_73] : memref<2x8x2048xf32, #tpu.memory_space<vmem>>, vector<1x8x2048xf32>
      %157 = vector.shape_cast %156 : vector<1x8x2048xf32> to vector<8x2048xf32>
      %c1_74 = arith.constant 1 : index
      %c0_75 = arith.constant 0 : index
      %c0_76 = arith.constant 0 : index
      %158 = vector.load %arg8[%c1_74, %c0_75, %c0_76] : memref<2x8x2048xf32, #tpu.memory_space<vmem>>, vector<1x8x2048xf32>
      %159 = vector.shape_cast %158 : vector<1x8x2048xf32> to vector<8x2048xf32>
      %160 = arith.subf %157, %1 : vector<8x2048xf32>
      %161 = arith.mulf %160, %160 : vector<8x2048xf32>
      %cst_77 = arith.constant 0.000000e+00 : f32
      %162 = vector.broadcast %cst_77 : f32 to vector<8x2048xf32>
      %163 = arith.select %15, %161, %162 : vector<8x2048xi1>, vector<8x2048xf32>
      %cst_78 = arith.constant dense<0.000000e+00> : vector<2048xf32>
      %164 = vector.multi_reduction <add>, %163, %cst_78 [0] : vector<8x2048xf32> to vector<2048xf32>
      %165 = vector.shape_cast %164 : vector<2048xf32> to vector<1x2048xf32>
      %c0_79 = arith.constant 0 : index
      %c0_80 = arith.constant 0 : index
      %c2 = arith.constant 2 : index
      %c0_81 = arith.constant 0 : index
      %166 = vector.load %arg6[%c0_79, %c0_80, %c2, %c0_81] : memref<1x1x4x2048xf32, #tpu.memory_space<vmem>>, vector<1x1x1x2048xf32>
      %167 = vector.shape_cast %166 : vector<1x1x1x2048xf32> to vector<1x2048xf32>
      %168 = arith.addf %167, %165 : vector<1x2048xf32>
      %c0_82 = arith.constant 0 : index
      %c0_83 = arith.constant 0 : index
      %c2_84 = arith.constant 2 : index
      %c0_85 = arith.constant 0 : index
      %169 = vector.load %arg6[%c0_82, %c0_83, %c2_84, %c0_85] : memref<1x1x4x2048xf32, #tpu.memory_space<vmem>>, vector<1x1x1x2048xf32>
      %170 = vector.shape_cast %169 : vector<1x1x1x2048xf32> to vector<1x2048xf32>
      %171 = vector.shape_cast %168 : vector<1x2048xf32> to vector<1x1x1x2048xf32>
      tpu.vector_store %arg6[%c0_82, %c0_83, %c2_84, %c0_85], %171 {strides = array<i32>} : memref<1x1x4x2048xf32, #tpu.memory_space<vmem>>, vector<1x1x1x2048xf32>,
      %172 = arith.subf %159, %157 : vector<8x2048xf32>
      %173 = arith.subf %172, %160 : vector<8x2048xf32>
      %174 = arith.mulf %173, %173 : vector<8x2048xf32>
      %cst_86 = arith.constant 0.000000e+00 : f32
      %175 = vector.broadcast %cst_86 : f32 to vector<8x2048xf32>
      %176 = arith.select %15, %174, %175 : vector<8x2048xi1>, vector<8x2048xf32>
      %177 = arith.subf %160, %132 : vector<8x2048xf32>
      %178 = arith.mulf %177, %177 : vector<8x2048xf32>
      %cst_87 = arith.constant 0.000000e+00 : f32
      %179 = vector.broadcast %cst_87 : f32 to vector<8x2048xf32>
      %180 = arith.select %15, %178, %179 : vector<8x2048xi1>, vector<8x2048xf32>
      %181 = arith.addf %176, %180 : vector<8x2048xf32>
      %cst_88 = arith.constant dense<0.000000e+00> : vector<2048xf32>
      %182 = vector.multi_reduction <add>, %181, %cst_88 [0] : vector<8x2048xf32> to vector<2048xf32>
      %183 = vector.shape_cast %182 : vector<2048xf32> to vector<1x2048xf32>
      %c0_89 = arith.constant 0 : index
      %c0_90 = arith.constant 0 : index
      %c3 = arith.constant 3 : index
      %c0_91 = arith.constant 0 : index
      %184 = vector.load %arg6[%c0_89, %c0_90, %c3, %c0_91] : memref<1x1x4x2048xf32, #tpu.memory_space<vmem>>, vector<1x1x1x2048xf32>
      %185 = vector.shape_cast %184 : vector<1x1x1x2048xf32> to vector<1x2048xf32>
      %186 = arith.addf %185, %183 : vector<1x2048xf32>
      %c0_92 = arith.constant 0 : index
      %c0_93 = arith.constant 0 : index
      %c3_94 = arith.constant 3 : index
      %c0_95 = arith.constant 0 : index
      %187 = vector.load %arg6[%c0_92, %c0_93, %c3_94, %c0_95] : memref<1x1x4x2048xf32, #tpu.memory_space<vmem>>, vector<1x1x1x2048xf32>
      %188 = vector.shape_cast %187 : vector<1x1x1x2048xf32> to vector<1x2048xf32>
      %189 = vector.shape_cast %186 : vector<1x2048xf32> to vector<1x1x1x2048xf32>
      tpu.vector_store %arg6[%c0_92, %c0_93, %c3_94, %c0_95], %189 {strides = array<i32>} : memref<1x1x4x2048xf32, #tpu.memory_space<vmem>>, vector<1x1x1x2048xf32>,
    } else {
    }
    %c2_i32_63 = arith.constant 2 : i32
    %c0_i32_64 = arith.constant 0 : i32
    %142 = arith.cmpi eq, %c2_i32_63, %c0_i32_64 : i32
    %c1_i32_65 = arith.constant 1 : i32
    %143 = arith.select %142, %c1_i32_65, %c2_i32_63 : i32
    %144 = arith.remsi %arg2, %143 : i32
    %c0_i32_66 = arith.constant 0 : i32
    %145 = arith.cmpi ne, %144, %c0_i32_66 : i32
    %c0_i32_67 = arith.constant 0 : i32
    %146 = arith.cmpi slt, %144, %c0_i32_67 : i32
    %c0_i32_68 = arith.constant 0 : i32
    %147 = arith.cmpi slt, %143, %c0_i32_68 : i32
    %148 = arith.xori %146, %147 : i1
    %149 = arith.andi %148, %145 : i1
    %150 = arith.addi %144, %143 : i32
    %151 = arith.select %149, %150, %144 : i32
    %152 = arith.index_cast %151 : i32 to index
    %c0_69 = arith.constant 0 : index
    %c0_70 = arith.constant 0 : index
    %153 = vector.load %arg7[%152, %c0_69, %c0_70] : memref<2x8x2048xf32, #tpu.memory_space<vmem>>, vector<1x8x2048xf32>
    %154 = vector.shape_cast %153 : vector<1x8x2048xf32> to vector<8x2048xf32>
    %155 = vector.shape_cast %1 : vector<8x2048xf32> to vector<1x8x2048xf32>
    tpu.vector_store %arg7[%152, %c0_69, %c0_70], %155 {strides = array<i32>} : memref<2x8x2048xf32, #tpu.memory_space<vmem>>, vector<1x8x2048xf32>,
    return
  }
  func.func @transform_0(%arg0: i32, %arg1: i32, %arg2: i32) -> (i32, i32, i32, i32) {
    %c0_i32 = arith.constant 0 : i32
    %c0_i32_0 = arith.constant 0 : i32
    return %arg2, %arg0, %arg1, %c0_i32 : i32, i32, i32, i32
  }
  func.func @transform_1(%arg0: i32, %arg1: i32, %arg2: i32) -> (i32, i32, i32, i32) {
    %c1_i32 = arith.constant 1 : i32
    %0 = arith.muli %arg0, %c1_i32 : i32
    %1 = arith.addi %0, %arg1 : i32
    %c0_i32 = arith.constant 0 : i32
    %c0_i32_0 = arith.constant 0 : i32
    %c0_i32_1 = arith.constant 0 : i32
    return %arg2, %1, %c0_i32, %c0_i32_0 : i32, i32, i32, i32
  }
  func.func @transform_2(%arg0: i32, %arg1: i32, %arg2: i32) -> (i32, i32) {
    %c0_i32 = arith.constant 0 : i32
    %c0_i32_0 = arith.constant 0 : i32
    %c0_i32_1 = arith.constant 0 : i32
    return %c0_i32, %c0_i32_0 : i32, i32
  }
  func.func @transform_3(%arg0: i32, %arg1: i32, %arg2: i32) -> (i32, i32, i32, i32) {
    %c0_i32 = arith.constant 0 : i32
    %c0_i32_0 = arith.constant 0 : i32
    %c0_i32_1 = arith.constant 0 : i32
    return %arg0, %arg1, %c0_i32, %c0_i32_0 : i32, i32, i32, i32
  }
}

</mosaic_0001>

<bundles_post_ra>
// kernel: smooth_regularization.1
= control target key start
LH: loop header
LB: loop body
LE: loop exit
PB: predicated region body
PF: predicated region fallthrough
CT: control target
= control target key end

     0   :  { %s3680_s12 = smov 0   ;;  %s3682_s13 = smov 0   ;;  %s6615_s0 = inlined_call_operand.vmem [shape: f32[4,3,8,2048], index: 0, kind: input, shape index: {}]   ;;  %s6616_s1 = inlined_call_operand.vmem [shape: f32[4,3,2,2048], index: 1, kind: input, shape index: {}]   ;;  %s6617_s2 = inlined_call_operand.vmem [shape: f32[2,2048], index: 2, kind: input, shape index: {}]   ;;  %s6618_s3 = inlined_call_operand.vmem [shape: f32[3,1,4,2048], index: 3, kind: output, shape index: {}]  }
   0x1   :  { %s3684_s14 = smov 0   ;;  %s3686_s15 = smov 0  }
   0x2   :  { %s3688_s16 = smov 0  }
   0x3 LB: > { %s25_s17 = sadd.s32 1, %s3645_s14  ;;  %s32_s18 = sadd.s32 1, %s3649_s15  ;;  %s3653_s16 = sphi %s3688_s16, %s13_s16   ;;  %s3649_s15 = sphi %s3686_s15, %s7491_s15   ;;  %s3645_s14 = sphi %s3684_s14, %s7490_s14   ;;  %s3641_s13 = sphi %s3682_s13, %s7489_s13   ;;  %s3637_s12 = sphi %s3680_s12, %s7488_s12  }
   0x4   : > { %p26_p0 = scmp.ge.s32.totalorder %s25_s17, 4  ;;  %p3517_p1 = scmp.ge.s32.totalorder %s3653_s16, 1 }
   0x5   : > { %p190_p2 = scmp.lt.s32.totalorder %s3653_s16, 13 }
   0x6   : > { %s7493_s17 = smov (%p26_p0, %s25_s17), 0  ;;  %s7495_s18 = smov (!%p26_p0, %s32_s18), %s3649_s15 }
   0x7   : > { %p191_p3 = pnand %p3517_p1, %p190_p2  ;;  %p34_p4 = scmp.ge.s32.totalorder %s7495_s18, 3 }
   0x9   : > { %s7497_s18 = smov (%p34_p4, %s7495_s18), 0  ;;  %194 = sbr.rel (%p191_p3) target bundleno = 623 (0x26f), region = 32 }
   0xe   : > { %p236_p5 = scmp.lt.s32.totalorder %s3637_s12, 3  ;;  %p238_p6 = scmp.lt.s32.totalorder %s3641_s13, 2 }
   0xf   : > { %p3524_p7 = scmp.ne.s32.totalorder %s3637_s12, 0 }
  0x10   : > { %s237_s19 = scalar_select %p236_p5, %s3637_s12, 3 }
  0x11   : > { %s7499_s13 = smov (!%p238_p6, %s3641_s13), 2 }
  0x12   : > { %s3569_s20 = smul.u32 48, %s237_s19  ;;  %s3518_s21 = sshll.u32 %s7499_s13, 4 }
  0x13   : > { %s3566_s22 = sshll.u32 %s7499_s13, 6 }
  0x14   : > { %s246_s23 = sadd.s32 %s3569_s20, %s3518_s21  ;;  %s3717_s26 = scalar_lea.vmem %s6618_s3, %s3566_s22 }
  0x15   : > { %s3519_s27 = sshll.u32 %s246_s23, 3  ;;  %s3521_s4 = sshll.u32 %s246_s23, 1 }
  0x16   : > { %s248_s30 = scalar_lea.vmem %s6615_s0, %s3519_s27  ;;  %s258_s7 = scalar_lea.vmem %s6616_s1, %s3521_s4 }
  0x17   : > { %v3722_v0 = vld [vmem:[%s248_s30] sm:$0xff]  ;;  %v3724_v1 = vld [vmem:[%s248_s30 + $0x8] sm:$0xff]  ;;  %v3726_v2 = vld [vmem:[%s248_s30 + $0x10] sm:$0xff] }
  0x18   : > { %6832 = vst [vmem:[#allocation4_spill] sm:$0xff] %v3722_v0  ;;  %6833 = vst [vmem:[#allocation5_spill] sm:$0xff] %v3724_v1  ;;  %v3728_v3 = vld [vmem:[%s248_s30 + $0x18] sm:$0xff]  ;;  %v3730_v4 = vld [vmem:[%s248_s30 + $0x20] sm:$0xff] }
  0x19   : > { %6834 = vst [vmem:[#allocation6_spill] sm:$0xff] %v3726_v2  ;;  %6835 = vst [vmem:[#allocation7_spill] sm:$0xff] %v3728_v3  ;;  %v3732_v5 = vld [vmem:[%s248_s30 + $0x28] sm:$0xff]  ;;  %v3737_v6 = vld [vmem:[%s248_s30 + $0x30] sm:$0xff] }
  0x1a   : > { %6836 = vst [vmem:[#allocation8_spill] sm:$0xff] %v3730_v4  ;;  %6837 = vst [vmem:[#allocation9_spill] sm:$0xff] %v3732_v5  ;;  %v3739_v7 = vld [vmem:[%s248_s30 + $0x38] sm:$0xff]  ;;  %v3741_v8 = vld [vmem:[%s248_s30 + $0x40] sm:$0xff] }
  0x1b   : > { %6838 = vst [vmem:[#allocation10_spill] sm:$0xff] %v3737_v6  ;;  %6839 = vst [vmem:[#allocation11_spill] sm:$0xff] %v3739_v7  ;;  %v3743_v9 = vld [vmem:[%s248_s30 + $0x48] sm:$0xff]  ;;  %v3745_v10 = vld [vmem:[%s248_s30 + $0x50] sm:$0xff] }
  0x1c   : > { %6840 = vst [vmem:[#allocation12_spill] sm:$0xff] %v3741_v8  ;;  %6841 = vst [vmem:[#allocation13_spill] sm:$0xff] %v3743_v9  ;;  %v3747_v11 = vld [vmem:[%s248_s30 + $0x58] sm:$0xff]  ;;  %v3749_v12 = vld [vmem:[%s248_s30 + $0x60] sm:$0xff] }
  0x1d   : > { %6842 = vst [vmem:[#allocation14_spill] sm:$0xff] %v3745_v10  ;;  %6843 = vst [vmem:[#allocation15_spill] sm:$0xff] %v3747_v11  ;;  %v3751_v13 = vld [vmem:[%s248_s30 + $0x68] sm:$0xff]  ;;  %v3753_v14 = vld [vmem:[%s248_s30 + $0x70] sm:$0xff]  ;;  %292 = sbr.rel (%p3524_p7) target bundleno = 70 (0x46), region = 36 }
  0x1e   : > { %6844 = vst [vmem:[#allocation16_spill] sm:$0xff] %v3749_v12  ;;  %6845 = vst [vmem:[#allocation17_spill] sm:$0xff] %v3751_v13  ;;  %v3755_v15 = vld [vmem:[%s248_s30 + $0x78] sm:$0xff]  ;;  %v3757_v16 = vld [vmem:[%s258_s7] sm:$0xff] }
  0x1f   : > { %6846 = vst [vmem:[#allocation18_spill] sm:$0xff] %v3753_v14  ;;  %6847 = vst [vmem:[#allocation19_spill] sm:$0xff] %v3755_v15  ;;  %v3759_v17 = vld [vmem:[%s258_s7 + $0x8] sm:$0xff]  ;;  %v3761_v18 = vld [vmem:[%s258_s7 + $0x10] sm:$0xff] }
  0x20   : > { %6848 = vst [vmem:[#allocation20_spill] sm:$0xff] %v3761_v18  ;;  %v3763_v19 = vld [vmem:[%s258_s7 + $0x18] sm:$0xff] }
  0x21   : > { %6849 = vst [vmem:[#allocation21_spill] sm:$0xff] %v3763_v19 }
  0x22   : > { %301 = vst [vmem:[#allocation3 + $0xb0] sm:$0xff] %v3722_v0  ;;  %302 = vst [vmem:[#allocation3] sm:$0xff] %v3724_v1  ;;  %v3655_v20 = vmov 0.0  }
  0x23   : > { %303 = vst [vmem:[#allocation3 + $0xd8] sm:$0xff] %v3726_v2  ;;  %304 = vst [vmem:[#allocation3 + $0x18] sm:$0xff] %v3728_v3 }
  0x24   : > { %305 = vst [vmem:[#allocation3 + $0x50] sm:$0xff] %v3730_v4  ;;  %306 = vst [vmem:[#allocation3 + $0x68] sm:$0xff] %v3732_v5 }
  0x25   : > { %307 = vst [vmem:[#allocation3 + $0x30] sm:$0xff] %v3737_v6  ;;  %308 = vst [vmem:[#allocation3 + $0x48] sm:$0xff] %v3739_v7 }
  0x26   : > { %309 = vst [vmem:[#allocation3 + $0x80] sm:$0xff] %v3741_v8  ;;  %310 = vst [vmem:[#allocation3 + $0x88] sm:$0xff] %v3743_v9 }
  0x27   : > { %311 = vst [vmem:[#allocation3 + $0xe8] sm:$0xff] %v3745_v10  ;;  %312 = vst [vmem:[#allocation3 + $0xb8] sm:$0xff] %v3747_v11 }
  0x28   : > { %313 = vst [vmem:[#allocation3 + $0x60] sm:$0xff] %v3749_v12  ;;  %314 = vst [vmem:[#allocation3 + $0xf0] sm:$0xff] %v3751_v13 }
  0x29   : > { %315 = vst [vmem:[#allocation3 + $0x8] sm:$0xff] %v3753_v14  ;;  %316 = vst [vmem:[#allocation3 + $0x78] sm:$0xff] %v3755_v15 }
  0x2a   : > { %318 = vst [vmem:[#allocation3 + $0x38] sm:$0xff] %v3722_v0  ;;  %319 = vst [vmem:[#allocation3 + $0x58] sm:$0xff] %v3724_v1 }
  0x2b   : > { %320 = vst [vmem:[#allocation3 + $0x40] sm:$0xff] %v3726_v2  ;;  %321 = vst [vmem:[#allocation3 + $0xc8] sm:$0xff] %v3728_v3 }
  0x2c   : > { %322 = vst [vmem:[#allocation3 + $0xe0] sm:$0xff] %v3730_v4  ;;  %323 = vst [vmem:[#allocation3 + $0x90] sm:$0xff] %v3732_v5 }
  0x2d   : > { %324 = vst [vmem:[#allocation3 + $0x70] sm:$0xff] %v3737_v6  ;;  %325 = vst [vmem:[#allocation3 + $0xc0] sm:$0xff] %v3739_v7 }
  0x2e   : > { %326 = vst [vmem:[#allocation3 + $0xa8] sm:$0xff] %v3741_v8  ;;  %327 = vst [vmem:[#allocation3 + $0xd0] sm:$0xff] %v3743_v9 }
  0x2f   : > { %328 = vst [vmem:[#allocation3 + $0x10] sm:$0xff] %v3745_v10  ;;  %329 = vst [vmem:[#allocation3 + $0x28] sm:$0xff] %v3747_v11 }
  0x30   : > { %330 = vst [vmem:[#allocation3 + $0xa0] sm:$0xff] %v3749_v12  ;;  %331 = vst [vmem:[#allocation3 + $0xf8] sm:$0xff] %v3751_v13 }
  0x31   : > { %332 = vst [vmem:[#allocation3 + $0x20] sm:$0xff] %v3753_v14  ;;  %333 = vst [vmem:[#allocation3 + $0x98] sm:$0xff] %v3755_v15 }
  0x32   : > { %334 = vst [vmem:[#allocation2] sm:$0xff] %v3722_v0  ;;  %335 = vst [vmem:[#allocation2 + $0x8] sm:$0xff] %v3724_v1 }
  0x33   : > { %336 = vst [vmem:[#allocation2 + $0x10] sm:$0xff] %v3726_v2  ;;  %337 = vst [vmem:[#allocation2 + $0x18] sm:$0xff] %v3728_v3 }
  0x34   : > { %338 = vst [vmem:[#allocation2 + $0x20] sm:$0xff] %v3730_v4  ;;  %339 = vst [vmem:[#allocation2 + $0x28] sm:$0xff] %v3732_v5 }
  0x35   : > { %340 = vst [vmem:[#allocation2 + $0x30] sm:$0xff] %v3737_v6  ;;  %341 = vst [vmem:[#allocation2 + $0x38] sm:$0xff] %v3739_v7 }
  0x36   : > { %342 = vst [vmem:[#allocation2 + $0x40] sm:$0xff] %v3741_v8  ;;  %343 = vst [vmem:[#allocation2 + $0x48] sm:$0xff] %v3743_v9 }
  0x37   : > { %344 = vst [vmem:[#allocation2 + $0x50] sm:$0xff] %v3745_v10  ;;  %345 = vst [vmem:[#allocation2 + $0x58] sm:$0xff] %v3747_v11 }
  0x38   : > { %346 = vst [vmem:[#allocation2 + $0x60] sm:$0xff] %v3749_v12  ;;  %347 = vst [vmem:[#allocation2 + $0x68] sm:$0xff] %v3751_v13 }
  0x39   : > { %348 = vst [vmem:[#allocation2 + $0x70] sm:$0xff] %v3753_v14  ;;  %349 = vst [vmem:[#allocation2 + $0x78] sm:$0xff] %v3755_v15 }
  0x3a   : > { %351 = vst [vmem:[#allocation2 + $0x80] sm:$0xff] %v3722_v0  ;;  %352 = vst [vmem:[#allocation2 + $0x88] sm:$0xff] %v3724_v1 }
  0x3b   : > { %353 = vst [vmem:[#allocation2 + $0x90] sm:$0xff] %v3726_v2  ;;  %354 = vst [vmem:[#allocation2 + $0x98] sm:$0xff] %v3728_v3 }
  0x3c   : > { %355 = vst [vmem:[#allocation2 + $0xa0] sm:$0xff] %v3730_v4  ;;  %356 = vst [vmem:[#allocation2 + $0xa8] sm:$0xff] %v3732_v5 }
  0x3d   : > { %357 = vst [vmem:[#allocation2 + $0xb0] sm:$0xff] %v3737_v6  ;;  %358 = vst [vmem:[#allocation2 + $0xb8] sm:$0xff] %v3739_v7 }
  0x3e   : > { %359 = vst [vmem:[#allocation2 + $0xc0] sm:$0xff] %v3741_v8  ;;  %360 = vst [vmem:[#allocation2 + $0xc8] sm:$0xff] %v3743_v9 }
  0x3f   : > { %361 = vst [vmem:[#allocation2 + $0xd0] sm:$0xff] %v3745_v10  ;;  %362 = vst [vmem:[#allocation2 + $0xd8] sm:$0xff] %v3747_v11 }
  0x40   : > { %363 = vst [vmem:[#allocation2 + $0xe0] sm:$0xff] %v3749_v12  ;;  %364 = vst [vmem:[#allocation2 + $0xe8] sm:$0xff] %v3751_v13 }
  0x41   : > { %365 = vst [vmem:[#allocation2 + $0xf0] sm:$0xff] %v3753_v14  ;;  %366 = vst [vmem:[#allocation2 + $0xf8] sm:$0xff] %v3755_v15 }
  0x42   : > { %293 = vst [vmem:[%s3717_s26] sm:$0xff] %v3655_v20  ;;  %294 = vst [vmem:[%s3717_s26 + $0x8] sm:$0xff] %v3655_v20 }
  0x43   : > { %295 = vst [vmem:[%s3717_s26 + $0x10] sm:$0xff] %v3655_v20  ;;  %296 = vst [vmem:[%s3717_s26 + $0x18] sm:$0xff] %v3655_v20 }
  0x44   : > { %297 = vst [vmem:[%s3717_s26 + $0x20] sm:$0xff] %v3655_v20  ;;  %298 = vst [vmem:[%s3717_s26 + $0x28] sm:$0xff] %v3655_v20 }
  0x45   : > { %299 = vst [vmem:[%s3717_s26 + $0x30] sm:$0xff] %v3655_v20  ;;  %300 = vst [vmem:[%s3717_s26 + $0x38] sm:$0xff] %v3655_v20 }
  0x46 PF: > { %p3525_p8 = scmp.ne.s32.totalorder %s3637_s12, 1 }
  0x48   : > { %370 = sbr.rel (%p3525_p8) target bundleno = 85 (0x55), region = 40 }
  0x4d   : > { %372 = vst [vmem:[#allocation3 + $0x38] sm:$0xff] %v3722_v0  ;;  %373 = vst [vmem:[#allocation3 + $0x58] sm:$0xff] %v3724_v1 }
  0x4e   : > { %374 = vst [vmem:[#allocation3 + $0x40] sm:$0xff] %v3726_v2  ;;  %375 = vst [vmem:[#allocation3 + $0xc8] sm:$0xff] %v3728_v3 }
  0x4f   : > { %376 = vst [vmem:[#allocation3 + $0xe0] sm:$0xff] %v3730_v4  ;;  %377 = vst [vmem:[#allocation3 + $0x90] sm:$0xff] %v3732_v5 }
  0x50   : > { %378 = vst [vmem:[#allocation3 + $0x70] sm:$0xff] %v3737_v6  ;;  %379 = vst [vmem:[#allocation3 + $0xc0] sm:$0xff] %v3739_v7 }
  0x51   : > { %380 = vst [vmem:[#allocation3 + $0xa8] sm:$0xff] %v3741_v8  ;;  %381 = vst [vmem:[#allocation3 + $0xd0] sm:$0xff] %v3743_v9 }
  0x52   : > { %382 = vst [vmem:[#allocation3 + $0x10] sm:$0xff] %v3745_v10  ;;  %383 = vst [vmem:[#allocation3 + $0x28] sm:$0xff] %v3747_v11 }
  0x53   : > { %384 = vst [vmem:[#allocation3 + $0xa0] sm:$0xff] %v3749_v12  ;;  %385 = vst [vmem:[#allocation3 + $0xf8] sm:$0xff] %v3751_v13 }
  0x54   : > { %386 = vst [vmem:[#allocation3 + $0x20] sm:$0xff] %v3753_v14  ;;  %387 = vst [vmem:[#allocation3 + $0x98] sm:$0xff] %v3755_v15 }
  0x55 PF: > { %s3656_s8 = smov 127   ;;  %v6619_v21 = vlaneseq  ;;  %v606_v29 = vrot.slane %v3724_v1, 1  ;;  %v605_v30 = vrot.slane %v3722_v0, 1  ;;  %v608_v37 = vrot.slane %v3728_v3, 1  ;;  %s3659_s19 = smov 126  }
  0x56   : > { %981 = vrot.lane.b32.xlu1 %v3726_v2, %s3656_s8  ;;  %977 = vrot.lane.b32.xlu0 %v3722_v0, %s3656_s8  ;;  %v607_v38 = vrot.slane %v3726_v2, 1  ;;  %v610_v43 = vrot.slane %v3732_v5, 1  ;;  %v609_v44 = vrot.slane %v3730_v4, 1  ;;  %v612_v48 = vrot.slane %v3739_v7, 1  ;;  %s2125_s22 = ssub.s32 0, %s3637_s12  ;;  %p2124_p9 = scmp.lt.s32.totalorder %s3637_s12, 0 }
  0x57   : > { %v3868_v22 = vshrl.u32 %v6619_v21, 7  ;;  %v611_v49 = vrot.slane %v3737_v6, 1  ;;  %v614_v53 = vrot.slane %v3743_v9, 1  ;;  %v613_v57 = vrot.slane %v3741_v8, 1  ;;  %s3540_s23 = smin.u32 %s3637_s12, %s2125_s22  ;;  %s5361_s5 = sadd.s32 1, %s3637_s12 }
  0x58   : > { %s2127_s24 = sand.u32 1, %s3540_s23   ;;  %s2094_s6 = ssub.s32 0, %s5361_s5 }
  0x59   : > { %6850 = vst [vmem:[#allocation22_spill] sm:$0xff] %v3868_v22  ;;  %v3875_v23 = vsub.s32 0, %v3868_v22  ;;  %v3878_v24 = vsub.s32 2, %v3868_v22  ;;  %v3889_v27 = vsub.s32 6, %v3868_v22  ;;  %v3892_v28 = vsub.s32 4, %v3868_v22  ;;  %s2128_s25 = ssub.s32 0, %s2127_s24  ;;  %s5411_s7 = smin.u32 %s2094_s6, %s5361_s5 }
  0x5a   : > { %983 = vrot.lane.b32.xlu1 %v3728_v3, %s3656_s8  ;;  %979 = vrot.lane.b32.xlu0 %v3724_v1, %s3656_s8  ;;  %vm603_vm0 = vcmp.eq.s32.totalorder %v3868_v22, 7  ;;  %vm604_vm3 = vcmp.eq.s32.totalorder %v3868_v22, 6  ;;  %vm405_vm5 = vcmp.lt.s32.totalorder %v3868_v22, 7  ;;  %s7501_s25 = smov (!%p2124_p9, %s2128_s25), %s2127_s24  ;;  %p2093_p11 = scmp.lt.s32.totalorder %s5361_s5, 0 }
  0x5b   : > { %6851 = vst [vmem:[#allocation23_spill] sm:$0xff] %v3878_v24  ;;  %v632_v25 = vrot.slane %v3757_v16, %v3878_v24  ;;  %v628_v26 = vrot.slane %v3757_v16, %v3875_v23  ;;  %6852 = vst [vmem:[#allocation24_spill] sm:$0xff] %v3889_v27  ;;  %v640_v33 = vrot.slane %v3757_v16, %v3889_v27  ;;  %p3542_p10 = scmp.lt.s32.totalorder %s7501_s25, 0  ;;  %s2134_s29 = sadd.s32 2, %s7501_s25 }
  0x5c   : > { %6853 = vst [vmem:[#allocation25_spill] sm:$0xff] %v3892_v28  ;;  %v636_v34 = vrot.slane %v3757_v16, %v3892_v28  ;;  %v648_v35 = vrot.slane %v3759_v17, %v3878_v24  ;;  %v644_v36 = vrot.slane %v3759_v17, %v3875_v23  ;;  %v656_v45 = vrot.slane %v3759_v17, %v3889_v27  ;;  %p3545_p13 = scmp.lt.s32.totalorder %s3637_s12, 1 }
  0x5d   : > { %v3901_v31 = vrot.slane %v632_v25, %v3875_v23  ;;  %v3904_v32 = vrot.slane %v628_v26, %v3875_v23  ;;  %v3932_v41 = vrot.slane %v640_v33, %v3875_v23  ;;  %v652_v52 = vrot.slane %v3759_v17, %v3892_v28  ;;  %s7503_s29 = smov (!%p3542_p10, %s2134_s29), %s7501_s25 }
  0x5e   : > { %987 = vrot.lane.b32.xlu1 %v3732_v5, %s3656_s8  ;;  %985 = vrot.lane.b32.xlu0 %v3730_v4, %s3656_s8  ;;  %v3935_v42 = vrot.slane %v636_v34, %v3875_v23  ;;  %v3942_v46 = vrot.slane %v648_v35, %v3875_v23  ;;  %v3945_v47 = vrot.slane %v644_v36, %v3875_v23  ;;  %v616_v33 = vrot.slane %v3747_v11, 1  ;;  %s3568_s30 = sshll.u32 %s7503_s29, 7 }
  0x5f   : > { %v3924_v39 = vsel %vm603_vm0, %v3901_v31, %v606_v29  ;;  %v3929_v40 = vsel %vm603_vm0, %v3904_v32, %v605_v30  ;;  %6854 = vst [vmem:[#allocation26_spill] sm:$0xff] %v3932_v41  ;;  %v3967_v54 = vsel %vm603_vm0, %v3932_v41, %v608_v37  ;;  %v664_v56 = vrot.slane %v3761_v18, %v3878_v24  ;;  %s5291_s4 = scalar_lea.vmem [#allocation2], %s3568_s30 }
  0x60   : > { %6855 = vst [vmem:[#allocation27_spill] sm:$0xff] %v3942_v46  ;;  %6856 = vst [vmem:[#allocation28_spill] sm:$0xff] %v3945_v47  ;;  %v3955_v50 = vsub.f32 %v3924_v39, %v3724_v1  ;;  %v3959_v51 = vsub.f32 %v3929_v40, %v3722_v0  ;;  %v3972_v55 = vsel %vm603_vm0, %v3935_v42, %v607_v38  ;;  %v615_v35 = vrot.slane %v3745_v10, 1 }
  0x61   : > { %6859 = vst [vmem:[#allocation31_spill] sm:$0xff] %v3967_v54  ;;  %6860 = vst [vmem:[#allocation32_spill] sm:$0xff] %v3972_v55  ;;  %v3978_v58 = vrot.slane %v656_v45, %v3875_v23  ;;  %v660_v59 = vrot.slane %v3761_v18, %v3875_v23  ;;  %v672_v60 = vrot.slane %v3761_v18, %v3889_v27  ;;  %v618_v36 = vrot.slane %v3751_v13, 1 }
  0x62   : > { %991 = vrot.lane.b32.xlu1 %v3739_v7, %s3656_s8  ;;  %989 = vrot.lane.b32.xlu0 %v3737_v6, %s3656_s8  ;;  %6857 = vst [vmem:[#allocation29_spill] sm:$0xff] %v3955_v50  ;;  %6858 = vst [vmem:[#allocation30_spill] sm:$0xff] %v3959_v51  ;;  %v668_v61 = vrot.slane %v3761_v18, %v3892_v28  ;;  %v3989_v62 = vsel %vm603_vm0, %v3942_v46, %v610_v43  ;;  %v617_v37 = vrot.slane %v3749_v12, 1 }
  0x63   : > { %6861 = vst [vmem:[#allocation33_spill] sm:$0xff] %v3978_v58  ;;  %6862 = vst [vmem:[#allocation34_spill] sm:$0xff] %v3989_v62  ;;  %v3994_v63 = vsel %vm603_vm0, %v3945_v47, %v609_v44  ;;  %v680_v20 = vrot.slane %v3763_v19, %v3878_v24  ;;  %v676_v25 = vrot.slane %v3763_v19, %v3875_v23 }
  0x64   : > { %6863 = vst [vmem:[#allocation35_spill] sm:$0xff] %v3994_v63  ;;  %v4006_v26 = vsub.f32 %v3967_v54, %v3728_v3  ;;  %v4010_v29 = vsub.f32 %v3972_v55, %v3726_v2  ;;  %v4013_v30 = vrot.slane %v652_v52, %v3875_v23  ;;  %v4017_v34 = vrot.slane %v664_v56, %v3875_v23 }
  0x65   : > { %v4024_v38 = vsub.f32 %v3989_v62, %v3732_v5  ;;  %v4027_v43 = vrot.slane %v660_v59, %v3875_v23  ;;  %v4030_v44 = vrot.slane %v672_v60, %v3875_v23  ;;  %v4033_v45 = vrot.slane %v668_v61, %v3875_v23 }
  0x66   : > { %995 = vrot.lane.b32.xlu1 %v3743_v9, %s3656_s8  ;;  %993 = vrot.lane.b32.xlu0 %v3741_v8, %s3656_s8  ;;  %6864 = vst [vmem:[#allocation36_spill] sm:$0xff] %v4006_v26  ;;  %6865 = vst [vmem:[#allocation37_spill] sm:$0xff] %v4010_v29  ;;  %v4037_v52 = vsub.f32 %v3994_v63, %v3730_v4  ;;  %v4042_v56 = vsel %vm603_vm0, %v3978_v58, %v612_v48  ;;  %v394_v58 = vld [vmem:[%s6617_s2] ss:$2 sm:$0xff]  ;;  %v4203_v54 = vsub.s32 1, %v3868_v22 }
  0x67   : > { %6866 = vst [vmem:[#allocation38_spill] sm:$0xff] %v4013_v30  ;;  %6867 = vst [vmem:[#allocation39_spill] sm:$0xff] %v4017_v34  ;;  %v4045_v21 = vrot.slane %v680_v20, %v3875_v23  ;;  %v4048_v59 = vrot.slane %v676_v25, %v3875_v23  ;;  %v4057_v60 = vsel %vm603_vm0, %v4013_v30, %v611_v49  ;;  %v620_v25 = vrot.slane %v3755_v15, 1 }
  0x68   : > { %6868 = vst [vmem:[#allocation40_spill] sm:$0xff] %v4027_v43  ;;  %6869 = vst [vmem:[#allocation41_spill] sm:$0xff] %v4030_v44  ;;  %v688_v48 = vrot.slane %v3763_v19, %v3889_v27  ;;  %v684_v61 = vrot.slane %v3763_v19, %v3892_v28  ;;  %v4066_v20 = vsel %vm603_vm0, %v4017_v34, %v614_v53  ;;  %v619_v34 = vrot.slane %v3753_v14, 1 }
  0x69   : > { %6870 = vst [vmem:[#allocation42_spill] sm:$0xff] %v4033_v45  ;;  %6871 = vst [vmem:[#allocation43_spill] sm:$0xff] %v4037_v52  ;;  %v4075_v49 = vsel %vm603_vm0, %v4027_v43, %v613_v57  ;;  %v4080_v62 = vsel %vm603_vm0, %v4030_v44, %v616_v33  ;;  %v4085_v53 = vsel %vm603_vm0, %v4033_v45, %v615_v35  ;;  %vm397_vm1 = vcmp.gt.f32.partialorder %v394_v58, 0.5 }
  0x6a   : > { %999 = vrot.lane.b32.xlu1 %v3747_v11, %s3656_s8  ;;  %997 = vrot.lane.b32.xlu0 %v3745_v10, %s3656_s8  ;;  %6872 = vst [vmem:[#allocation44_spill] sm:$0xff] %v4042_v56  ;;  %6873 = vst [vmem:[#allocation45_spill] sm:$0xff] %v4045_v21  ;;  %v4090_v19 = vsub.f32 %v4042_v56, %v3739_v7  ;;  %v4094_v57 = vsub.f32 %v4057_v60, %v3737_v6 }
  0x6b   : > { %6874 = vst [vmem:[#allocation46_spill] sm:$0xff] %v4048_v59  ;;  %6875 = vst [vmem:[#allocation47_spill] sm:$0xff] %v4057_v60  ;;  %v4099_v33 = vsel %vm603_vm0, %v4045_v21, %v618_v36  ;;  %v4104_v35 = vsel %vm603_vm0, %v4048_v59, %v617_v37  ;;  %v4112_v44 = vsub.f32 %v4066_v20, %v3743_v9  ;;  %v3657_v60 = vmov 1966171168  }
  0x6c   : > { %6876 = vst [vmem:[#allocation48_spill] sm:$0xff] %v4066_v20  ;;  %6877 = vst [vmem:[#allocation49_spill] sm:$0xff] %v4075_v49  ;;  %v4115_v56 = vrot.slane %v688_v48, %v3875_v23  ;;  %v4118_v36 = vrot.slane %v684_v61, %v3875_v23  ;;  %v4122_v37 = vsub.f32 %v4075_v49, %v3741_v8  ;;  %v1869_v30 = vunpack.c.l.s4 %v3657_v60 }
  0x6d   : > { %6878 = vst [vmem:[#allocation50_spill] sm:$0xff] %v4080_v62  ;;  %6879 = vst [vmem:[#allocation51_spill] sm:$0xff] %v4085_v53  ;;  %v4126_v21 = vsub.f32 %v4080_v62, %v3747_v11  ;;  %v4130_v59 = vsub.f32 %v4085_v53, %v3745_v10  ;;  %v4134_v48 = vsub.f32 %v4099_v33, %v3751_v13 }
  0x6e   : > { %1003 = vrot.lane.b32.xlu1 %v3751_v13, %s3656_s8  ;;  %1001 = vrot.lane.b32.xlu0 %v3749_v12, %s3656_s8  ;;  %6880 = vst [vmem:[#allocation52_spill] sm:$0xff] %v4099_v33  ;;  %6881 = vst [vmem:[#allocation53_spill] sm:$0xff] %v4104_v35  ;;  %v4138_v61 = vsub.f32 %v4104_v35, %v3749_v12  ;;  %v4142_v20 = vsub.f32 %v3726_v2, %v3724_v1 }
  0x6f   : > { %6882 = vst [vmem:[#allocation54_spill] sm:$0xff] %v4112_v44  ;;  %6883 = vst [vmem:[#allocation55_spill] sm:$0xff] %v4115_v56  ;;  %v4146_v62 = vsub.f32 %v3724_v1, %v3722_v0  ;;  %v4150_v53 = vsub.f32 %v3730_v4, %v3728_v3  ;;  %v4154_v33 = vsub.f32 %v3728_v3, %v3726_v2 }
  0x70   : > { %6884 = vst [vmem:[#allocation56_spill] sm:$0xff] %v4118_v36  ;;  %6885 = vst [vmem:[#allocation57_spill] sm:$0xff] %v4130_v59  ;;  %v4158_v35 = vsub.f32 %v3737_v6, %v3732_v5  ;;  %v4167_v49 = vsel %vm603_vm0, %v4115_v56, %v620_v25  ;;  %v4172_v45 = vsel %vm603_vm0, %v4118_v36, %v619_v34  ;;  %v6650_v56 = vmov 0  }
  0x71   : > { %6886 = vst [vmem:[#allocation58_spill] sm:$0xff] %v4134_v48  ;;  %6887 = vst [vmem:[#allocation59_spill] sm:$0xff] %v4142_v20  ;;  %v4176_v43 = vsub.f32 %v3732_v5, %v3730_v4  ;;  %v4180_v46 = vsub.f32 %v3741_v8, %v3739_v7  ;;  %v4184_v63 = vsub.f32 %v3739_v7, %v3737_v6  ;;  %v4200_v18 = vsel %vm397_vm1, 1, %v6650_v56 }
  0x72   : > { %1007 = vrot.lane.b32.xlu1 %v3755_v15, %s3656_s8  ;;  %1005 = vrot.lane.b32.xlu0 %v3753_v14, %s3656_s8  ;;  %6888 = vst [vmem:[#allocation60_spill] sm:$0xff] %v4146_v62  ;;  %6889 = vst [vmem:[#allocation61_spill] sm:$0xff] %v4150_v53  ;;  %v1143_v25 = vmul.f32 %v4154_v33, %v4154_v33  ;;  %v1127_v34 = vmul.f32 %v4010_v29, %v4010_v29 }
  0x73   : > { %6890 = vst [vmem:[#allocation62_spill] sm:$0xff] %v4154_v33  ;;  %6891 = vst [vmem:[#allocation63_spill] sm:$0xff] %v4158_v35  ;;  %v4192_v36 = vsub.f32 %v3745_v10, %v3743_v9  ;;  %v4196_v60 = vsub.f32 %v3743_v9, %v3741_v8  ;;  %v4207_v47 = vsub.f32 %v4167_v49, %v3755_v15 }
  0x74   : > { %6892 = vst [vmem:[#allocation64_spill] sm:$0xff] %v4167_v49  ;;  %6893 = vst [vmem:[#allocation65_spill] sm:$0xff] %v4172_v45  ;;  %v4211_v33 = vsub.f32 %v4172_v45, %v3753_v14  ;;  %v4215_v41 = vsub.f32 %v3749_v12, %v3747_v11  ;;  %v1141_v58 = vmul.f32 %v4146_v62, %v4146_v62  ;;  %v1870_v49 = vunpack.c.0.s8 %v1869_v30 }
  0x75   : > { %6894 = vst [vmem:[#allocation66_spill] sm:$0xff] %v4176_v43  ;;  %6895 = vst [vmem:[#allocation67_spill] sm:$0xff] %v4180_v46  ;;  %v1142_v56 = vmul.f32 %v4142_v20, %v4142_v20  ;;  %v1125_v45 = vmul.f32 %v3959_v51, %v3959_v51  ;;  %v1126_v8 = vmul.f32 %v3955_v50, %v3955_v50 }
  0x76   : > { %1303 = vrot.lane.b32.xlu1 %v3955_v50, %s3656_s8  ;;  %1301 = vrot.lane.b32.xlu0 %v3959_v51, %s3656_s8  ;;  %6896 = vst [vmem:[#allocation68_spill] sm:$0xff] %v4184_v63  ;;  %6897 = vst [vmem:[#allocation69_spill] sm:$0xff] %v4192_v36  ;;  %v4231_v9 = vsub.f32 %v3747_v11, %v3745_v10  ;;  %v4235_v6 = vadd.f32 %v1143_v25, %v1127_v34  ;;  %v4250_v10 = vsub.s32 3, %v3868_v22 }
  0x77   : > { %6898 = vst [vmem:[#allocation70_spill] sm:$0xff] %v4196_v60  ;;  %6899 = vst [vmem:[#allocation71_spill] sm:$0xff] %v4200_v18  ;;  %v4243_v20 = vsub.f32 %v3753_v14, %v3751_v13  ;;  %v4247_v55 = vsub.f32 %v3751_v13, %v3749_v12  ;;  %v1144_v25 = vmul.f32 %v4150_v53, %v4150_v53  ;;  %v4272_v13 = vsub.s32 5, %v3868_v22 }
  0x78   : > { %6900 = vst [vmem:[#allocation72_spill] sm:$0xff] %v4203_v54  ;;  %6901 = vst [vmem:[#allocation73_spill] sm:$0xff] %v4207_v47  ;;  %v1145_v34 = vmul.f32 %v4176_v43, %v4176_v43  ;;  %v1128_v30 = vmul.f32 %v4006_v26, %v4006_v26  ;;  %v1129_v7 = vmul.f32 %v4037_v52, %v4037_v52  ;;  %v3526_v43 = vld [vmem:[%s6617_s2 + $0x10] ss:$2 sm:$0xff] }
  0x79   : > { %6902 = vst [vmem:[#allocation74_spill] sm:$0xff] %v4211_v33  ;;  %6903 = vst [vmem:[#allocation75_spill] sm:$0xff] %v4215_v41  ;;  %v4264_v62 = vadd.f32 %v1141_v58, %v1125_v45  ;;  %v4269_v12 = vsub.s32 %v1870_v49, %v3868_v22  ;;  %v1146_v11 = vmul.f32 %v4158_v35, %v4158_v35  ;;  %vm398_vm2 = vcmp.gt.f32.partialorder %v3526_v43, 0.5 }
  0x7a   : > { %1307 = vrot.lane.b32.xlu1 %v4006_v26, %s3656_s8  ;;  %1305 = vrot.lane.b32.xlu0 %v4010_v29, %s3656_s8  ;;  %6904 = vst [vmem:[#allocation76_spill] sm:$0xff] %v4231_v9  ;;  %6905 = vst [vmem:[#allocation77_spill] sm:$0xff] %v4235_v6  ;;  %v4266_v6 = vadd.f32 %v1142_v56, %v1126_v8  ;;  %v1147_v53 = vmul.f32 %v4184_v63, %v4184_v63 }
  0x7b   : > { %6906 = vst [vmem:[#allocation78_spill] sm:$0xff] %v4243_v20  ;;  %6907 = vst [vmem:[#allocation79_spill] sm:$0xff] %v4247_v55  ;;  %v1130_v8 = vmul.f32 %v4024_v38, %v4024_v38  ;;  %v1131_v45 = vmul.f32 %v4094_v57, %v4094_v57  ;;  %v4291_v58 = vsub.f32 %v3722_v0, %v3755_v15 }
  0x7c   : > { %6908 = vst [vmem:[#allocation80_spill] sm:$0xff] %v4250_v10  ;;  %6909 = vst [vmem:[#allocation81_spill] sm:$0xff] %v4264_v62  ;;  %v4298_v62 = vadd.f32 %v1145_v34, %v1129_v7  ;;  %v4302_v63 = vsub.f32 %v3755_v15, %v3753_v14  ;;  %v1148_v7 = vmul.f32 %v4180_v46, %v4180_v46 }
  0x7d   : > { %6910 = vst [vmem:[#allocation82_spill] sm:$0xff] %v4266_v6  ;;  %6911 = vst [vmem:[#allocation83_spill] sm:$0xff] %v4269_v12  ;;  %v4294_v12 = vsub.s32 7, %v3868_v22  ;;  %v4296_v6 = vadd.f32 %v1144_v25, %v1128_v30  ;;  %v4314_v25 = vadd.f32 %v1146_v11, %v1130_v8  ;;  %v4316_v34 = vadd.f32 %v1147_v53, %v1131_v45 }
  0x7e   : > { %1311 = vrot.lane.b32.xlu1 %v4024_v38, %s3656_s8  ;;  %1309 = vrot.lane.b32.xlu0 %v4037_v52, %s3656_s8  ;;  %6912 = vst [vmem:[#allocation84_spill] sm:$0xff] %v4291_v58  ;;  %6914 = vst [vmem:[#allocation86_spill] sm:$0xff] %v4298_v62  ;;  %v1149_v43 = vmul.f32 %v4196_v60, %v4196_v60  ;;  %v1132_v56 = vmul.f32 %v4090_v19, %v4090_v19  ;;  %v6918_v62 = vmov 0  }
  0x7f   : > { %6913 = vst [vmem:[#allocation85_spill] sm:$0xff] %v4296_v6  ;;  %6915 = vst [vmem:[#allocation87_spill] sm:$0xff] %v4302_v63  ;;  %v4323_v6 = vsel %vm398_vm2, 1, %v6918_v62  ;;  %v1133_v30 = vmul.f32 %v4122_v37, %v4122_v37  ;;  %v1150_v11 = vmul.f32 %v4192_v36, %v4192_v36  ;;  %v1151_v53 = vmul.f32 %v4231_v9, %v4231_v9 }
  0x80   : > { %6916 = vst [vmem:[#allocation88_spill] sm:$0xff] %v4314_v25  ;;  %6917 = vst [vmem:[#allocation89_spill] sm:$0xff] %v4316_v34  ;;  %v1134_v8 = vmul.f32 %v4112_v44, %v4112_v44  ;;  %v1135_v45 = vmul.f32 %v4130_v59, %v4130_v59  ;;  %v1152_v34 = vmul.f32 %v4215_v41, %v4215_v41 }
  0x81   : > { %6919 = vst [vmem:[#allocation90_spill] sm:$0xff] %v4323_v6  ;;  %v1153_v49 = vmul.f32 %v4247_v55, %v4247_v55  ;;  %v1136_v25 = vmul.f32 %v4126_v21, %v4126_v21  ;;  %v1137_v62 = vmul.f32 %v4138_v61, %v4138_v61  ;;  %v4351_v9 = vadd.f32 %v1148_v7, %v1132_v56  ;;  %v6949_v6 = vld [vmem:[#allocation26_spill] sm:$0xff] }
  0x82   : > { %1315 = vrot.lane.b32.xlu1 %v4090_v19, %s3656_s8  ;;  %1313 = vrot.lane.b32.xlu0 %v4094_v57, %s3656_s8  ;;  %v4357_v60 = vadd.f32 %v1149_v43, %v1133_v30  ;;  %v804_v14 = vrot.slane %v3757_v16, %v4203_v54  ;;  %v4365_v18 = vadd.f32 %v1150_v11, %v1134_v8  ;;  %v785_v8 = vrot.slane %v3722_v0, 2 }
  0x83   : > { %6920 = vst [vmem:[#allocation91_spill] sm:$0xff] %v4351_v9  ;;  %v4367_v56 = vadd.f32 %v1151_v53, %v1135_v45  ;;  %v1156_v7 = vmul.f32 %v4291_v58, %v4291_v58  ;;  %v4377_v43 = vadd.f32 %v1152_v34, %v1136_v25  ;;  %v4379_v46 = vadd.f32 %v1153_v49, %v1137_v62 }
  0x84   : > { %6921 = vst [vmem:[#allocation92_spill] sm:$0xff] %v4357_v60  ;;  %6922 = vst [vmem:[#allocation93_spill] sm:$0xff] %v4365_v18  ;;  %v1140_v11 = vmul.f32 %v4207_v47, %v4207_v47  ;;  %v1154_v53 = vmul.f32 %v4243_v20, %v4243_v20  ;;  %v884_v45 = vrot.slane %v804_v14, %v4203_v54  ;;  %v786_v55 = vrot.slane %v3724_v1, 2 }
  0x85   : > { %6923 = vst [vmem:[#allocation94_spill] sm:$0xff] %v4367_v56  ;;  %6924 = vst [vmem:[#allocation95_spill] sm:$0xff] %v4377_v43  ;;  %v1155_v30 = vmul.f32 %v4302_v63, %v4302_v63  ;;  %v1138_v25 = vmul.f32 %v4134_v48, %v4134_v48  ;;  %v1139_v62 = vmul.f32 %v4211_v33, %v4211_v33  ;;  %v787_v43 = vrot.slane %v3726_v2, 2 }
  0x86   : > { %1319 = vrot.lane.b32.xlu1 %v4112_v44, %s3656_s8  ;;  %1317 = vrot.lane.b32.xlu0 %v4122_v37, %s3656_s8  ;;  %6925 = vst [vmem:[#allocation96_spill] sm:$0xff] %v4379_v46  ;;  %v1285_v49 = vsub.f32 %v3955_v50, %v3959_v51  ;;  %v1286_v14 = vsub.f32 %v4010_v29, %v3955_v50 }
  0x87   : > { %v945_v36 = vsel %vm603_vm0, %v884_v45, %v785_v8  ;;  %v4408_v41 = vadd.f32 %v1156_v7, %v1140_v11  ;;  %v808_v46 = vrot.slane %v3757_v16, %v4250_v10  ;;  %v1287_v8 = vsub.f32 %v4006_v26, %v4010_v29 }
  0x88   : > { %v961_v34 = vsel %vm604_vm3, %v3904_v32, %v945_v36  ;;  %v812_v7 = vrot.slane %v3757_v16, %v4272_v13  ;;  %v4422_v11 = vadd.f32 %v1154_v53, %v1138_v25  ;;  %v4426_v32 = vmul.f32 %v1285_v49, %v1285_v49 }
  0x89   : > { %6926 = vst [vmem:[#allocation97_spill] sm:$0xff] %v4408_v41  ;;  %v1205_v45 = vsub.f32 %v961_v34, %v3929_v40  ;;  %v4424_v41 = vadd.f32 %v1155_v30, %v1139_v62  ;;  %v888_v36 = vrot.slane %v808_v46, %v4203_v54  ;;  %v4429_v56 = vmul.f32 %v1286_v14, %v1286_v14 }
  0x8a   : > { %1323 = vrot.lane.b32.xlu1 %v4126_v21, %s3656_s8  ;;  %1321 = vrot.lane.b32.xlu0 %v4130_v59, %s3656_s8  ;;  %6927 = vst [vmem:[#allocation98_spill] sm:$0xff] %v4422_v11  ;;  %6929 = vst [vmem:[#allocation100_spill] sm:$0xff] %v4426_v32  ;;  %v1288_v18 = vsub.f32 %v4037_v52, %v4006_v26  ;;  %v892_v40 = vrot.slane %v812_v7, %v4203_v54 }
  0x8b   : > { %6928 = vst [vmem:[#allocation99_spill] sm:$0xff] %v4424_v41  ;;  %6930 = vst [vmem:[#allocation101_spill] sm:$0xff] %v4429_v56  ;;  %v816_v34 = vrot.slane %v3757_v16, %v4294_v12  ;;  %v1289_v30 = vsub.f32 %v4024_v38, %v4037_v52  ;;  %v1290_v46 = vsub.f32 %v4094_v57, %v4024_v38  ;;  %v6934_v56 = vld [vmem:[#allocation10_spill] sm:$0xff] }
  0x8c   : > { %v946_v53 = vsel %vm603_vm0, %v888_v36, %v786_v55  ;;  %v4446_v25 = vmul.f32 %v1287_v8, %v1287_v8  ;;  %v1291_v16 = vsub.f32 %v4090_v19, %v4094_v57  ;;  %v947_v62 = vsel %vm603_vm0, %v892_v40, %v787_v43  ;;  %v6932_v43 = vld [vmem:[#allocation32_spill] sm:$0xff] }
  0x8d   : > { %v962_v49 = vsel %vm604_vm3, %v3901_v31, %v946_v53  ;;  %v1292_v14 = vsub.f32 %v4122_v37, %v4090_v19  ;;  %v963_v7 = vsel %vm604_vm3, %v3935_v42, %v947_v62  ;;  %v820_v8 = vrot.slane %v3759_v17, %v4203_v54  ;;  %v6933_v53 = vld [vmem:[#allocation11_spill] sm:$0xff] }
  0x8e   : > { %1327 = vrot.lane.b32.xlu1 %v4134_v48, %s3656_s8  ;;  %1325 = vrot.lane.b32.xlu0 %v4138_v61, %s3656_s8  ;;  %6931 = vst [vmem:[#allocation102_spill] sm:$0xff] %v4446_v25  ;;  %v1206_v55 = vsub.f32 %v962_v49, %v3924_v39  ;;  %v1293_v36 = vsub.f32 %v4112_v44, %v4122_v37  ;;  %v788_v25 = vrot.slane %v3728_v3, 2  ;;  %v791_v27 = vrot.slane %v6934_v56, 2 }
  0x8f   : > { %v1207_v40 = vsub.f32 %v963_v7, %v6932_v43  ;;  %v896_v31 = vrot.slane %v816_v34, %v4203_v54  ;;  %v4472_v42 = vmul.f32 %v1288_v18, %v1288_v18  ;;  %v4474_v39 = vmul.f32 %v1289_v30, %v1289_v30 }
  0x90   : > { %v4476_v62 = vmul.f32 %v1290_v46, %v1290_v46  ;;  %v1294_v49 = vsub.f32 %v4130_v59, %v4112_v44  ;;  %v1295_v7 = vsub.f32 %v4126_v21, %v4130_v59  ;;  %v1296_v34 = vsub.f32 %v4138_v61, %v4126_v21 }
  0x91   : > { %6935 = vst [vmem:[#allocation32_spill] sm:$0xff] %v4472_v42  ;;  %6936 = vst [vmem:[#allocation103_spill] sm:$0xff] %v4474_v39  ;;  %v1297_v43 = vsub.f32 %v4134_v48, %v4138_v61  ;;  %v4486_v32 = vmul.f32 %v1291_v16, %v1291_v16  ;;  %v4488_v18 = vmul.f32 %v1292_v14, %v1292_v14  ;;  %v789_v30 = vrot.slane %v3730_v4, 2  ;;  %v6941_v16 = vld [vmem:[#allocation13_spill] sm:$0xff]  ;;  %v6942_v14 = vld [vmem:[#allocation12_spill] sm:$0xff] }
  0x92   : > { %1331 = vrot.lane.b32.xlu1 %v4207_v47, %s3656_s8  ;;  %1329 = vrot.lane.b32.xlu0 %v4211_v33, %s3656_s8  ;;  %6937 = vst [vmem:[#allocation104_spill] sm:$0xff] %v4476_v62  ;;  %v900_v46 = vrot.slane %v820_v8, %v4203_v54  ;;  %v4492_v62 = vmul.f32 %v1293_v36, %v1293_v36  ;;  %v6943_v36 = vld [vmem:[#allocation60_spill] sm:$0xff] }
  0x93   : > { %6938 = vst [vmem:[#allocation105_spill] sm:$0xff] %v4486_v32  ;;  %6939 = vst [vmem:[#allocation106_spill] sm:$0xff] %v4488_v18  ;;  %v1300_v39 = vsub.f32 %v3959_v51, %v4207_v47  ;;  %v1298_v42 = vsub.f32 %v4211_v33, %v4134_v48  ;;  %v948_v41 = vsel %vm603_vm0, %v896_v31, %v788_v25 }
  0x94   : > { %6940 = vst [vmem:[#allocation107_spill] sm:$0xff] %v4492_v62  ;;  %v1299_v8 = vsub.f32 %v4207_v47, %v4211_v33  ;;  %v6944_v62 = vld [vmem:[#allocation59_spill] sm:$0xff]  ;;  %v1221_v32 = vsub.f32 %v1205_v45, %v3959_v51  ;;  %v4509_v11 = vmul.f32 %v1294_v49, %v1294_v49  ;;  %v4511_v60 = vmul.f32 %v1295_v7, %v1295_v7  ;;  %v6959_v51 = vld [vmem:[#allocation66_spill] sm:$0xff] }
  0x95   : > { %v1237_v18 = vsub.f32 %v6944_v62, %v6943_v36  ;;  %v4513_v9 = vmul.f32 %v1296_v34, %v1296_v34  ;;  %v4515_v25 = vmul.f32 %v1297_v43, %v1297_v43  ;;  %v949_v31 = vsel %vm603_vm0, %v900_v46, %v789_v30  ;;  %v6952_v34 = vld [vmem:[#allocation62_spill] sm:$0xff]  ;;  %v6954_v46 = vld [vmem:[#allocation15_spill] sm:$0xff] }
  0x96   : > { %1030 = vrot.lane.b32.xlu1 %v3724_v1, %s3659_s19  ;;  %1028 = vrot.lane.b32.xlu0 %v3722_v0, %s3659_s19  ;;  %6945 = vst [vmem:[#allocation108_spill] sm:$0xff] %v4509_v11  ;;  %6946 = vst [vmem:[#allocation109_spill] sm:$0xff] %v4511_v60  ;;  %v964_v33 = vsel %vm604_vm3, %v6949_v6, %v948_v41  ;;  %v824_v48 = vrot.slane %v3759_v17, %v4250_v10  ;;  %v6955_v6 = vld [vmem:[#allocation14_spill] sm:$0xff] }
  0x97   : > { %6947 = vst [vmem:[#allocation110_spill] sm:$0xff] %v4513_v9  ;;  %6948 = vst [vmem:[#allocation111_spill] sm:$0xff] %v4515_v25  ;;  %v828_v45 = vrot.slane %v3759_v17, %v4272_v13  ;;  %v4526_v49 = vmul.f32 %v1300_v39, %v1300_v39  ;;  %v4528_v7 = vmul.f32 %v1298_v42, %v1298_v42  ;;  %v6953_v25 = vld [vmem:[#allocation61_spill] sm:$0xff]  ;;  %v6957_v42 = vld [vmem:[#allocation28_spill] sm:$0xff] }
  0x98   : > { %v1238_v43 = vsub.f32 %v6952_v34, %v6944_v62  ;;  %v1239_v30 = vsub.f32 %v6953_v25, %v6952_v34  ;;  %v4538_v41 = vmul.f32 %v1299_v8, %v1299_v8  ;;  %v1445_v9 = vmul.f32 %v1237_v18, %v1237_v18 }
  0x99   : > { %6950 = vst [vmem:[#allocation26_spill] sm:$0xff] %v4526_v49  ;;  %6951 = vst [vmem:[#allocation112_spill] sm:$0xff] %v4528_v7  ;;  %v1429_v60 = vmul.f32 %v1221_v32, %v1221_v32  ;;  %v1222_v39 = vsub.f32 %v1206_v55, %v3955_v50  ;;  %v965_v7 = vsel %vm604_vm3, %v6957_v42, %v949_v31  ;;  %v6958_v49 = vld [vmem:[#allocation31_spill] sm:$0xff]  ;;  %v6960_v31 = vld [vmem:[#allocation20_spill] sm:$0xff] }
  0x9a   : > { %1034 = vrot.lane.b32.xlu1 %v3728_v3, %s3659_s19  ;;  %1032 = vrot.lane.b32.xlu0 %v3726_v2, %s3659_s19  ;;  %6956 = vst [vmem:[#allocation113_spill] sm:$0xff] %v4538_v41  ;;  %v1208_v11 = vsub.f32 %v964_v33, %v6958_v49  ;;  %v790_v3 = vrot.slane %v3732_v5, 2  ;;  %v904_v8 = vrot.slane %v824_v48, %v4203_v54  ;;  %v6961_v33 = vld [vmem:[#allocation17_spill] sm:$0xff]  ;;  %v6962_v49 = vld [vmem:[#allocation16_spill] sm:$0xff] }
  0x9b   : > { %v908_v18 = vrot.slane %v828_v45, %v4203_v54  ;;  %v1446_v32 = vmul.f32 %v1238_v43, %v1238_v43  ;;  %v1447_v41 = vmul.f32 %v1239_v30, %v1239_v30  ;;  %v832_v55 = vrot.slane %v3759_v17, %v4294_v12 }
  0x9c   : > { %v836_v42 = vrot.slane %v6960_v31, %v4203_v54  ;;  %v1223_v50 = vsub.f32 %v1207_v40, %v4010_v29  ;;  %v1241_v45 = vsub.f32 %v4158_v35, %v6959_v51  ;;  %v4563_v43 = vadd.f32 %v1445_v9, %v1429_v60 }
  0x9d   : > { %v1430_v30 = vmul.f32 %v1222_v39, %v1222_v39  ;;  %v1224_v17 = vsub.f32 %v1208_v11, %v4006_v26  ;;  %v950_v1 = vsel %vm603_vm0, %v904_v8, %v790_v3  ;;  %v951_v0 = vsel %vm603_vm0, %v908_v18, %v791_v27  ;;  %v6965_v3 = vld [vmem:[#allocation18_spill] sm:$0xff]  ;;  %v6967_v18 = vld [vmem:[#allocation27_spill] sm:$0xff] }
  0x9e   : > { %1038 = vrot.lane.b32.xlu1 %v3732_v5, %s3659_s19  ;;  %1036 = vrot.lane.b32.xlu0 %v3730_v4, %s3659_s19  ;;  %v1240_v4 = vsub.f32 %v6959_v51, %v6953_v25  ;;  %6964 = vst [vmem:[#allocation28_spill] sm:$0xff] %v4563_v43  ;;  %v840_v40 = vrot.slane %v6960_v31, %v4250_v10  ;;  %v793_v9 = vrot.slane %v6942_v14, 2  ;;  %v6968_v26 = vld [vmem:[#allocation38_spill] sm:$0xff] }
  0x9f   : > { %v912_v60 = vrot.slane %v832_v55, %v4203_v54  ;;  %v1431_v27 = vmul.f32 %v1223_v50, %v1223_v50  ;;  %v1449_v39 = vmul.f32 %v1241_v45, %v1241_v45  ;;  %v4583_v8 = vadd.f32 %v1446_v32, %v1430_v30 }
  0xa0   : > { %v1448_v5 = vmul.f32 %v1240_v4, %v1240_v4  ;;  %v916_v4 = vrot.slane %v836_v42, %v4203_v54  ;;  %v966_v43 = vsel %vm604_vm3, %v6967_v18, %v950_v1  ;;  %v967_v55 = vsel %vm604_vm3, %v6968_v26, %v951_v0  ;;  %v6969_v42 = vld [vmem:[#allocation68_spill] sm:$0xff]  ;;  %v6970_v26 = vld [vmem:[#allocation21_spill] sm:$0xff] }
  0xa1   : > { %6966 = vst [vmem:[#allocation31_spill] sm:$0xff] %v4583_v8  ;;  %v1242_v29 = vsub.f32 %v6969_v42, %v4158_v35  ;;  %v795_v50 = vrot.slane %v6955_v6, 2  ;;  %v848_v0 = vrot.slane %v6960_v31, %v4294_v12  ;;  %v852_v30 = vrot.slane %v6970_v26, %v4203_v54  ;;  %v6973_v8 = vld [vmem:[#allocation47_spill] sm:$0xff] }
  0xa2   : > { %1042 = vrot.lane.b32.xlu1 %v6933_v53, %s3659_s19  ;;  %1040 = vrot.lane.b32.xlu0 %v6934_v56, %s3659_s19  ;;  %v6963_v56 = vld [vmem:[#allocation35_spill] sm:$0xff]  ;;  %v953_v1 = vsel %vm603_vm0, %v916_v4, %v793_v9  ;;  %v1211_v9 = vsub.f32 %v967_v55, %v6973_v8  ;;  %v864_v55 = vrot.slane %v6970_v26, %v4294_v12 }
  0xa3   : > { %v1209_v48 = vsub.f32 %v965_v7, %v6963_v56  ;;  %v844_v56 = vrot.slane %v6960_v31, %v4272_v13  ;;  %v792_v7 = vrot.slane %v6933_v53, 2  ;;  %v6974_v4 = vld [vmem:[#allocation67_spill] sm:$0xff]  ;;  %v932_v8 = vrot.slane %v852_v30, %v4203_v54 }
  0xa4   : > { %v1243_v31 = vsub.f32 %v6974_v4, %v6969_v42 }
  0xa5   : > { %v1225_v11 = vsub.f32 %v1209_v48, %v4037_v52  ;;  %v920_v48 = vrot.slane %v840_v40, %v4203_v54  ;;  %v924_v32 = vrot.slane %v844_v56, %v4203_v54  ;;  %v952_v45 = vsel %vm603_vm0, %v912_v60, %v792_v7  ;;  %v6972_v7 = vld [vmem:[#allocation34_spill] sm:$0xff] }
  0xa6   : > { %1046 = vrot.lane.b32.xlu1 %v6941_v16, %s3659_s19  ;;  %1044 = vrot.lane.b32.xlu0 %v6942_v14, %s3659_s19  ;;  %v794_v14 = vrot.slane %v6941_v16, 2  ;;  %v4609_v40 = vadd.f32 %v1447_v41, %v1431_v27  ;;  %v1432_v56 = vmul.f32 %v1224_v17, %v1224_v17  ;;  %v1210_v60 = vsub.f32 %v966_v43, %v6972_v7  ;;  %v6976_v16 = vld [vmem:[#allocation40_spill] sm:$0xff] }
  0xa7   : > { %v1433_v18 = vmul.f32 %v1225_v11, %v1225_v11  ;;  %v796_v52 = vrot.slane %v6954_v46, 2  ;;  %v969_v41 = vsel %vm604_vm3, %v6976_v16, %v953_v1  ;;  %v955_v43 = vsel %vm603_vm0, %v924_v32, %v795_v50 }
  0xa8   : > { %6971 = vst [vmem:[#allocation20_spill] sm:$0xff] %v4609_v40  ;;  %v954_v17 = vsel %vm603_vm0, %v920_v48, %v794_v14  ;;  %v797_v27 = vrot.slane %v6962_v49, 2  ;;  %v928_v11 = vrot.slane %v848_v0, %v4203_v54  ;;  %v4635_v16 = vadd.f32 %v1448_v5, %v1432_v56  ;;  %v6979_v48 = vld [vmem:[#allocation70_spill] sm:$0xff]  ;;  %v6982_v5 = vld [vmem:[#allocation44_spill] sm:$0xff] }
  0xa9   : > { %v4637_v14 = vadd.f32 %v1449_v39, %v1433_v18  ;;  %v1226_v50 = vsub.f32 %v1210_v60, %v4024_v38  ;;  %v1244_v32 = vsub.f32 %v6979_v48, %v6974_v4  ;;  %v6981_v0 = vld [vmem:[#allocation42_spill] sm:$0xff]  ;;  %v1227_v7 = vsub.f32 %v1211_v9, %v4094_v57  ;;  %v6983_v39 = vld [vmem:[#allocation49_spill] sm:$0xff]  ;;  %v6986_v9 = vld [vmem:[#allocation48_spill] sm:$0xff] }
  0xaa   : > { %1050 = vrot.lane.b32.xlu1 %v6954_v46, %s3659_s19  ;;  %1048 = vrot.lane.b32.xlu0 %v6955_v6, %s3659_s19  ;;  %v6975_v6 = vld [vmem:[#allocation33_spill] sm:$0xff]  ;;  %6977 = vst [vmem:[#allocation35_spill] sm:$0xff] %v4635_v16  ;;  %v971_v30 = vsel %vm604_vm3, %v6981_v0, %v955_v43  ;;  %v1213_v18 = vsub.f32 %v969_v41, %v6983_v39  ;;  %v6985_v43 = vlaneseq }
  0xab   : > { %6978 = vst [vmem:[#allocation27_spill] sm:$0xff] %v4637_v14  ;;  %v6990_v16 = vld [vmem:[#allocation41_spill] sm:$0xff] }
  0xac   : > { %v4660_v0 = vand.u32 127, %v6985_v43 }
  0xae   : > { %1054 = vrot.lane.b32.xlu1 %v6961_v33, %s3659_s19  ;;  %1052 = vrot.lane.b32.xlu0 %v6962_v49, %s3659_s19  ;;  %vm1011_vm4 = vcmp.lt.s32.totalorder %v4660_v0, 127 }
  0xb2   : > { %1058 = vrot.lane.b32.xlu1 %v3755_v15, %s3659_s19  ;;  %1056 = vrot.lane.b32.xlu0 %v6965_v3, %s3659_s19 }
  0xb6   : > { %1367 = vrot.lane.b32.xlu1 %v6944_v62, %s3656_s8  ;;  %1365 = vrot.lane.b32.xlu0 %v6943_v36, %s3656_s8  ;;  %v968_v62 = vsel %vm604_vm3, %v6975_v6, %v952_v45  ;;  %v1450_v6 = vmul.f32 %v1242_v29, %v1242_v29  ;;  %v6980_v45 = vld [vmem:[#allocation39_spill] sm:$0xff]  ;;  %v6984_v29 = vld [vmem:[#allocation69_spill] sm:$0xff] }
  0xb7   : > { %v970_v1 = vsel %vm604_vm3, %v6980_v45, %v954_v17  ;;  %v1212_v56 = vsub.f32 %v968_v62, %v6982_v5  ;;  %v1245_v60 = vsub.f32 %v6984_v29, %v6979_v48  ;;  %v800_v17 = vrot.slane %v3755_v15, 2 }
  0xb8   : > { %v944_v45 = vrot.slane %v864_v55, %v4203_v54  ;;  %v1451_v62 = vmul.f32 %v1243_v31, %v1243_v31  ;;  %v1214_v41 = vsub.f32 %v970_v1, %v6986_v9  ;;  %v1434_v5 = vmul.f32 %v1226_v50, %v1226_v50  ;;  %v6989_v55 = vld [vmem:[#allocation75_spill] sm:$0xff] }
  0xb9   : > { %v1228_v14 = vsub.f32 %v1212_v56, %v4090_v19  ;;  %v1435_v50 = vmul.f32 %v1227_v7, %v1227_v7  ;;  %v856_v9 = vrot.slane %v6970_v26, %v4250_v10  ;;  %v6993_v56 = vld [vmem:[#allocation50_spill] sm:$0xff] }
  0xba   : > { %1371 = vrot.lane.b32.xlu1 %v6953_v25, %s3656_s8  ;;  %1369 = vrot.lane.b32.xlu0 %v6952_v34, %s3656_s8  ;;  %v956_v25 = vsel %vm603_vm0, %v928_v11, %v796_v52  ;;  %v957_v34 = vsel %vm603_vm0, %v932_v8, %v797_v27  ;;  %v6987_v52 = vld [vmem:[#allocation51_spill] sm:$0xff]  ;;  %v1452_v27 = vmul.f32 %v1244_v32, %v1244_v32  ;;  %v6988_v8 = vld [vmem:[#allocation76_spill] sm:$0xff] }
  0xbb   : > { %v1215_v11 = vsub.f32 %v971_v30, %v6987_v52  ;;  %v1246_v39 = vsub.f32 %v6988_v8, %v6984_v29  ;;  %v1247_v43 = vsub.f32 %v6989_v55, %v6988_v8  ;;  %v972_v31 = vsel %vm604_vm3, %v6990_v16, %v956_v25 }
  0xbc   : > { %v1453_v32 = vmul.f32 %v1245_v60, %v1245_v60  ;;  %v960_v30 = vsel %vm603_vm0, %v944_v45, %v800_v17  ;;  %v1230_v25 = vsub.f32 %v1214_v41, %v4112_v44  ;;  %v4693_v16 = vadd.f32 %v1450_v6, %v1434_v5  ;;  %v6994_v60 = vld [vmem:[#allocation53_spill] sm:$0xff]  ;;  %v6995_v45 = vld [vmem:[#allocation71_spill] sm:$0xff] }
  0xbd   : > { %v1454_v7 = vmul.f32 %v1246_v39, %v1246_v39  ;;  %v6996_v52 = vrot.slane %v6995_v45, %v3878_v24  ;;  %v1436_v41 = vmul.f32 %v1228_v14, %v1228_v14  ;;  %v7000_v5 = vrot.slane %v6995_v45, %v3875_v23  ;;  %v7042_v39 = vld [vmem:[#allocation65_spill] sm:$0xff] }
  0xbe   : > { %1375 = vrot.lane.b32.xlu1 %v4158_v35, %s3656_s8  ;;  %1373 = vrot.lane.b32.xlu0 %v6959_v51, %s3656_s8  ;;  %v1229_v35 = vsub.f32 %v1213_v18, %v4122_v37  ;;  %v6991_v51 = vld [vmem:[#allocation46_spill] sm:$0xff]  ;;  %6992 = vst [vmem:[#allocation38_spill] sm:$0xff] %v4693_v16  ;;  %v1216_v18 = vsub.f32 %v972_v31, %v6993_v56  ;;  %v7003_v31 = vld [vmem:[#allocation79_spill] sm:$0xff] }
  0xbf   : > { %v973_v1 = vsel %vm604_vm3, %v6991_v51, %v957_v34  ;;  %v1231_v51 = vsub.f32 %v1215_v11, %v4130_v59  ;;  %v860_v34 = vrot.slane %v6970_v26, %v4272_v13  ;;  %vm4701_vm6 = vcmp.eq.s32.totalorder %v6996_v52, 1  ;;  %v6999_v26 = vld [vmem:[#allocation55_spill] sm:$0xff] }
  0xc0   : > { %v1217_v17 = vsub.f32 %v973_v1, %v6994_v60  ;;  %v1437_v11 = vmul.f32 %v1229_v35, %v1229_v35  ;;  %v976_v6 = vsel %vm604_vm3, %v6999_v26, %v960_v30  ;;  %vm4711_vm7 = vcmp.eq.s32.totalorder %v7000_v5, 1  ;;  %vm4828_vm12 = vmand %vm405_vm5, %vm4701_vm6 }
  0xc1   : > { %v1248_v1 = vsub.f32 %v7003_v31, %v6989_v55  ;;  %v1249_v56 = vsub.f32 %v4243_v20, %v7003_v31  ;;  %v798_v35 = vrot.slane %v6961_v33, 2  ;;  %v936_v14 = vrot.slane %v856_v9, %v4203_v54  ;;  %vm4850_vm14 = vmand %vm405_vm5, %vm4711_vm7 }
  0xc2   : > { %1379 = vrot.lane.b32.xlu1 %v6974_v4, %s3656_s8  ;;  %1377 = vrot.lane.b32.xlu0 %v6969_v42, %s3656_s8  ;;  %v1455_v42 = vmul.f32 %v1247_v43, %v1247_v43  ;;  %v7004_v43 = vrot.slane %v6995_v45, %v4203_v54  ;;  %v1438_v60 = vmul.f32 %v1230_v25, %v1230_v25  ;;  %v799_v26 = vrot.slane %v6965_v3, 2 }
  0xc3   : > { %v1439_v52 = vmul.f32 %v1231_v51, %v1231_v51  ;;  %v940_v5 = vrot.slane %v860_v34, %v4203_v54  ;;  %v4734_v9 = vadd.f32 %v1451_v62, %v1435_v50  ;;  %v1233_v16 = vsub.f32 %v1217_v17, %v4138_v61  ;;  %v3527_v50 = vld [vmem:[%s6617_s2 + $0x1] ss:$2 sm:$0xff] }
  0xc4   : > { %vm4728_vm8 = vcmp.eq.s32.totalorder %v7004_v43, 1  ;;  %v4741_v43 = vadd.f32 %v1452_v27, %v1436_v41  ;;  %v1252_v25 = vsub.f32 %v6943_v36, %v4291_v58  ;;  %v1250_v51 = vsub.f32 %v4302_v63, %v4243_v20 }
  0xc5   : > { %7007 = vst [vmem:[#allocation21_spill] sm:$0xff] %v4734_v9  ;;  %v1251_v62 = vsub.f32 %v4291_v58, %v4302_v63  ;;  %v4752_v34 = vadd.f32 %v1453_v32, %v1437_v11  ;;  %v958_v27 = vsel %vm603_vm0, %v936_v14, %v798_v35  ;;  %v7011_v17 = vrot.slane %v6995_v45, %v4250_v10 }
  0xc6   : > { %1383 = vrot.lane.b32.xlu1 %v6984_v29, %s3656_s8  ;;  %1381 = vrot.lane.b32.xlu0 %v6979_v48, %s3656_s8  ;;  %v1232_v29 = vsub.f32 %v1216_v18, %v4126_v21  ;;  %v7008_v48 = vld [vmem:[#allocation64_spill] sm:$0xff]  ;;  %7009 = vst [vmem:[#allocation34_spill] sm:$0xff] %v4741_v43  ;;  %v1457_v18 = vmul.f32 %v1249_v56, %v1249_v56  ;;  %vm403_vm11 = vcmp.gt.f32.partialorder %v3527_v50, 0.5  ;;  %v7049_v43 = vld [vmem:[#allocation82_spill] sm:$0xff] }
  0xc7   : > { %v1220_v40 = vsub.f32 %v976_v6, %v7008_v48  ;;  %7010 = vst [vmem:[#allocation47_spill] sm:$0xff] %v4752_v34  ;;  %v1456_v48 = vmul.f32 %v1248_v1, %v1248_v1  ;;  %vm4763_vm9 = vcmp.eq.s32.totalorder %v7011_v17, 1  ;;  %v4767_v32 = vadd.f32 %v1454_v7, %v1438_v60 }
  0xc8   : > { %v982_v59 = vpop.permute.xlu1 %981  ;;  %v4739_v44 = vpop.permute.xlu0 %977  ;;  %v4769_v11 = vadd.f32 %v1455_v42, %v1439_v52  ;;  %v959_v6 = vsel %vm603_vm0, %v940_v5, %v799_v26  ;;  %v7016_v1 = vrot.slane %v6995_v45, %v3892_v28  ;;  %v1440_v35 = vmul.f32 %v1232_v29, %v1232_v29  ;;  %v7019_v42 = vld [vmem:[#allocation45_spill] sm:$0xff]  ;;  %vm4870_vm0 = vmand %vm405_vm5, %vm4728_vm8 }
  0xc9   : > { %7014 = vst [vmem:[#allocation33_spill] sm:$0xff] %v4767_v32  ;;  %v1441_v14 = vmul.f32 %v1233_v16, %v1233_v16  ;;  %v1236_v17 = vsub.f32 %v1220_v40, %v4207_v47  ;;  %v1460_v60 = vmul.f32 %v1252_v25, %v1252_v25  ;;  %v974_v52 = vsel %vm604_vm3, %v7019_v42, %v958_v27  ;;  %v7021_v16 = vld [vmem:[#allocation56_spill] sm:$0xff]  ;;  %v7025_v42 = vld [vmem:[#allocation5_spill] sm:$0xff]  ;;  %vm491_vm1 = vmand %vm405_vm5, %vm4763_vm9 }
  0xca   : > { %1387 = vrot.lane.b32.xlu1 %v6989_v55, %s3656_s8  ;;  %1385 = vrot.lane.b32.xlu0 %v6988_v8, %s3656_s8  ;;  %7015 = vst [vmem:[#allocation40_spill] sm:$0xff] %v4769_v11  ;;  %vm4776_vm10 = vcmp.eq.s32.totalorder %v7016_v1, 1  ;;  %v4784_v26 = vmul.f32 %v1250_v51, %v1250_v51  ;;  %v4786_v5 = vmul.f32 %v1251_v62, %v1251_v62  ;;  %v7023_v62 = vld [vmem:[#allocation4_spill] sm:$0xff] }
  0xcb   : > { %v975_v25 = vsel %vm604_vm3, %v7021_v16, %v959_v6  ;;  %v7030_v8 = vrot.slane %v6995_v45, %v4272_v13  ;;  %v4841_v50 = vadd.f32 %v1457_v18, %v1441_v14  ;;  %v1444_v11 = vmul.f32 %v1236_v17, %v1236_v17  ;;  %v7035_v32 = vld [vmem:[#allocation52_spill] sm:$0xff]  ;;  %vm4924_vm2 = vmand %vm405_vm5, %vm4776_vm10 }
  0xcc   : > { %v984_v55 = vpop.permute.xlu1 %983  ;;  %v980_v7 = vpop.permute.xlu0 %979  ;;  %v1218_v4 = vsub.f32 %v974_v52, %v7035_v32  ;;  %v7038_v32 = vld [vmem:[#allocation24_spill] sm:$0xff]  ;;  %v1219_v52 = vsub.f32 %v975_v25, %v7042_v39  ;;  %v7047_v25 = vld [vmem:[#allocation77_spill] sm:$0xff] }
  0xcd   : > { %v4790_v1 = vsel %vm1011_vm4, %v982_v59, %v984_v55  ;;  %v4794_v29 = vsel %vm1011_vm4, %v980_v7, %v982_v59  ;;  %v4799_v40 = vsel %vm1011_vm4, %v4739_v44, %v980_v7  ;;  %v7027_v7 = vmov 0   ;;  %7034 = vst [vmem:[#allocation51_spill] sm:$0xff] %v4841_v50 }
  0xce   : > { %7020 = vst [vmem:[#allocation39_spill] sm:$0xff] %v4794_v29  ;;  %v4806_v51 = vsub.f32 %v4790_v1, %v3726_v2  ;;  %v4810_v27 = vsub.f32 %v4799_v40, %v7023_v62  ;;  %v4814_v59 = vsub.f32 %v4794_v29, %v7025_v42  ;;  %1391 = vrot.lane.b32.xlu1 %v4243_v20, %s3656_s8  ;;  %v4822_v6 = vsel %vm403_vm11, 1, %v7027_v7  ;;  %v7048_v62 = vld [vmem:[#allocation81_spill] sm:$0xff] }
  0xcf   : > { %1389 = vrot.lane.b32.xlu0 %v7003_v31, %s3656_s8  ;;  %vm4835_vm13 = vcmp.eq.s32.totalorder %v7030_v8, 1  ;;  %v4839_v31 = vadd.f32 %v1456_v48, %v1440_v35  ;;  %v7039_v14 = vrot.slane %v6995_v45, %v7038_v32  ;;  %v4901_v30 = vadd.f32 %v1460_v60, %v1444_v11 }
  0xd0   : > { %7022 = vst [vmem:[#allocation42_spill] sm:$0xff] %v4806_v51  ;;  %7024 = vst [vmem:[#allocation44_spill] sm:$0xff] %v4810_v27  ;;  %v1175_v2 = vmul.f32 %v4806_v51, %v4806_v51  ;;  %v1173_v8 = vmul.f32 %v4810_v27, %v4810_v27  ;;  %v1174_v48 = vmul.f32 %v4814_v59, %v4814_v59  ;;  %v988_v18 = vpop.permute.xlu1 %987  ;;  %v986_v35 = vpop.permute.xlu0 %985 }
  0xd1   : > { %7026 = vst [vmem:[#allocation49_spill] sm:$0xff] %v4814_v59  ;;  %7033 = vst [vmem:[#allocation48_spill] sm:$0xff] %v4839_v31  ;;  %vm4861_vm15 = vcmp.eq.s32.totalorder %v7039_v14, 1  ;;  %v4876_v31 = vsel %vm1011_vm4, %v986_v35, %v988_v18  ;;  %v4880_v14 = vsel %vm1011_vm4, %v984_v55, %v986_v35  ;;  %v7050_v59 = vld [vmem:[#allocation7_spill] sm:$0xff]  ;;  %v7052_v55 = vld [vmem:[#allocation8_spill] sm:$0xff] }
  0xd2   : > { %7045 = vst [vmem:[#allocation41_spill] sm:$0xff] %v4876_v31  ;;  %7046 = vst [vmem:[#allocation46_spill] sm:$0xff] %v4880_v14  ;;  %v1191_v39 = vadd.f32 %v1175_v2, %v7047_v25  ;;  %v1189_v34 = vadd.f32 %v1173_v8, %v7048_v62  ;;  %v1190_v9 = vadd.f32 %v1174_v48, %v7049_v43  ;;  %1395 = vrot.lane.b32.xlu1 %v4291_v58, %s3656_s8  ;;  %v7055_v2 = vld [vmem:[#allocation58_spill] sm:$0xff] }
  0xd3   : > { %v4891_v51 = vsub.f32 %v4880_v14, %v7050_v59  ;;  %v4897_v35 = vsub.f32 %v4876_v31, %v7052_v55  ;;  %1393 = vrot.lane.b32.xlu0 %v4302_v63, %s3656_s8  ;;  %7054 = vst [vmem:[#allocation71_spill] sm:$0xff] %v4901_v30  ;;  %v1234_v62 = vsub.f32 %v1218_v4, %v7055_v2  ;;  %v7062_v59 = vld [vmem:[#allocation86_spill] sm:$0xff]  ;;  %v7063_v31 = vld [vmem:[#allocation9_spill] sm:$0xff]  ;;  %vm4967_vm7 = vmand %vm405_vm5, %vm4835_vm13  ;;  %s2096_s8 = sand.u32 1, %s5411_s7  }
  0xd4   : > { %v1623_v8 = vsel %vm4828_vm12, %v1191_v39, 0.0  ;;  %v1621_v48 = vsel %vm4850_vm14, %v1189_v34, 0.0  ;;  %v1622_v25 = vsel %vm4870_vm0, %v1190_v9, 0.0  ;;  %v992_v63 = vpop.permute.xlu1 %991  ;;  %v990_v11 = vpop.permute.xlu0 %989  ;;  %v7058_v34 = vld [vmem:[#allocation85_spill] sm:$0xff]  ;;  %v7061_v39 = vld [vmem:[#allocation74_spill] sm:$0xff]  ;;  %vm494_vm8 = vmand %vm405_vm5, %vm4861_vm15  ;;  %s2097_s9 = ssub.s32 0, %s2096_s8 }
  0xd5   : > { %7051 = vst [vmem:[#allocation50_spill] sm:$0xff] %v4891_v51  ;;  %7053 = vst [vmem:[#allocation53_spill] sm:$0xff] %v4897_v35  ;;  %v1176_v36 = vmul.f32 %v4891_v51, %v4891_v51  ;;  %v1649_v60 = vrot.slane %v1623_v8, 4  ;;  %v1637_v58 = vrot.slane %v1621_v48, 4  ;;  %v1643_v4 = vrot.slane %v1622_v25, 4  ;;  %s7505_s9 = smov (!%p2093_p11, %s2097_s9), %s2096_s8 }
  0xd6   : > { %v1177_v42 = vmul.f32 %v4897_v35, %v4897_v35  ;;  %v4931_v50 = vsel %vm1011_vm4, %v990_v11, %v992_v63  ;;  %v4935_v41 = vsel %vm1011_vm4, %v988_v18, %v990_v11  ;;  %v1235_v43 = vsub.f32 %v1219_v52, %v7061_v39  ;;  %v7070_v11 = vld [vmem:[#allocation90_spill] sm:$0xff]  ;;  %v7077_v39 = vld [vmem:[#allocation89_spill] sm:$0xff]  ;;  %p3537_p12 = scmp.lt.s32.totalorder %s7505_s9, 0  ;;  %s2103_s10 = sadd.s32 2, %s7505_s9 }
  0xd7   : > { %v1192_v16 = vadd.f32 %v1176_v36, %v7058_v34  ;;  %7059 = vst [vmem:[#allocation55_spill] sm:$0xff] %v4931_v50  ;;  %7060 = vst [vmem:[#allocation64_spill] sm:$0xff] %v4935_v41  ;;  %v1650_v30 = vadd.f32 %v1649_v60, %v1623_v8  ;;  %v1638_v56 = vadd.f32 %v1637_v58, %v1621_v48  ;;  %v7065_v36 = vld [vmem:[#allocation10_spill] sm:$0xff] }
  0xd8   : > { %v1644_v55 = vadd.f32 %v1643_v4, %v1622_v25  ;;  %v1193_v35 = vadd.f32 %v1177_v42, %v7062_v59  ;;  %v4941_v14 = vsub.f32 %v4935_v41, %v7063_v31  ;;  %v4945_v34 = vsub.f32 %v4931_v50, %v7065_v36  ;;  %v996_v2 = vpop.permute.xlu1 %995  ;;  %v994_v29 = vpop.permute.xlu0 %993  ;;  %v7076_v50 = vld [vmem:[#allocation88_spill] sm:$0xff]  ;;  %v7096_v4 = vld [vmem:[#allocation13_spill] sm:$0xff]  ;;  %s7507_s10 = smov (!%p3537_p12, %s2103_s10), %s7505_s9 }
  0xd9   : > { %v1624_v51 = vsel %vm491_vm1, %v1192_v16, 0.0  ;;  %v7067_v18 = vrot.slane %v6995_v45, %v4294_v12  ;;  %v1442_v58 = vmul.f32 %v1234_v62, %v1234_v62  ;;  %v1651_v59 = vrot.slane %v1650_v30, 2  ;;  %s3567_s11 = sshll.u32 %s7507_s10, 7 }
  0xda   : > { %7064 = vst [vmem:[#allocation45_spill] sm:$0xff] %v4941_v14  ;;  %7066 = vst [vmem:[#allocation56_spill] sm:$0xff] %v4945_v34  ;;  %v1639_v8 = vrot.slane %v1638_v56, 2  ;;  %v1645_v48 = vrot.slane %v1644_v55, 2  ;;  %v1625_v25 = vsel %vm4924_vm2, %v1193_v35, 0.0  ;;  %v7071_v60 = vrot.slane %v7070_v11, %v3875_v23  ;;  %s5593_s13 = scalar_lea.vmem [#allocation2], %s3567_s11 }
  0xdb   : > { %vm4950_vm3 = vcmp.eq.s32.totalorder %v7067_v18, 1  ;;  %v1655_v42 = vrot.slane %v1624_v51, 4  ;;  %v1661_v45 = vrot.slane %v1625_v25, 4  ;;  %v1178_v35 = vmul.f32 %v4941_v14, %v4941_v14 }
  0xdc   : > { %vm4959_vm6 = vcmp.eq.s32.totalorder %v7071_v60, 1  ;;  %v1179_v9 = vmul.f32 %v4945_v34, %v4945_v34  ;;  %v1652_v16 = vadd.f32 %v1651_v59, %v1650_v30  ;;  %v1640_v18 = vadd.f32 %v1639_v8, %v1638_v56  ;;  %v4983_v14 = vpop.permute.xlu1 %999  ;;  %v998_v47 = vpop.permute.xlu0 %997  ;;  %vm5037_vm11 = vmand %vm405_vm5, %vm4950_vm3 }
  0xdd   : > { %v1646_v60 = vadd.f32 %v1645_v48, %v1644_v55  ;;  %v4979_v20 = vmul.f32 %v1235_v43, %v1235_v43  ;;  %v1656_v36 = vadd.f32 %v1655_v42, %v1624_v51  ;;  %v1662_v31 = vadd.f32 %v1661_v45, %v1625_v25  ;;  %vm496_vm12 = vmand %vm405_vm5, %vm4959_vm6 }
  0xde   : > { %v1194_v41 = vadd.f32 %v1178_v35, %v7076_v50  ;;  %v1195_v27 = vadd.f32 %v1179_v9, %v7077_v39  ;;  %v1641_v34 = vrot.slane %v1640_v18, 1  ;;  %v4987_v55 = vsel %vm1011_vm4, %v992_v63, %v994_v29 }
  0xdf   : > { %v1647_v30 = vrot.slane %v1646_v60, 1  ;;  %v7078_v17 = vrot.slane %v7070_v11, %v4203_v54  ;;  %v4997_v51 = vadd.f32 %v4784_v26, %v1442_v58  ;;  %v1657_v50 = vrot.slane %v1656_v36, 2 }
  0xe0   : > { %v1626_v39 = vsel %vm4967_vm7, %v1194_v41, 0.0  ;;  %v1627_v56 = vsel %vm494_vm8, %v1195_v27, 0.0  ;;  %v5003_v59 = vsel %vm1011_vm4, %v994_v29, %v996_v2  ;;  %v7082_v63 = vrot.slane %v7070_v11, %v3878_v24  ;;  %v5020_v45 = vpop.permute.xlu1 %1003  ;;  %v1002_v62 = vpop.permute.xlu0 %1001 }
  0xe1   : > { %vm4992_vm9 = vcmp.eq.s32.totalorder %v7078_v17, 1  ;;  %7081 = vst [vmem:[#allocation52_spill] sm:$0xff] %v4997_v51  ;;  %v1663_v48 = vrot.slane %v1662_v31, 2  ;;  %v1667_v25 = vrot.slane %v1626_v39, 4  ;;  %v1653_v27 = vrot.slane %v1652_v16, 1 }
  0xe2   : > { %vm5008_vm10 = vcmp.eq.s32.totalorder %v7082_v63, 1  ;;  %v1658_v58 = vadd.f32 %v1657_v50, %v1656_v36  ;;  %v1673_v42 = vrot.slane %v1627_v56, 4  ;;  %v5018_v29 = vsub.f32 %v4987_v55, %v6933_v53  ;;  %v7085_v63 = vld [vmem:[#allocation12_spill] sm:$0xff]  ;;  %vm5088_vm15 = vmand %vm405_vm5, %vm4992_vm9 }
  0xe3   : > { %v1642_v35 = vadd.f32 %v1641_v34, %v1640_v18  ;;  %v1648_v9 = vadd.f32 %v1647_v30, %v1646_v60  ;;  %v1668_v17 = vadd.f32 %v1667_v25, %v1626_v39  ;;  %v5024_v51 = vsub.f32 %v5003_v59, %v7085_v63  ;;  %vm498_vm1 = vmand %vm405_vm5, %vm5008_vm10  ;;  %v7122_v25 = vld [vmem:[#allocation95_spill] sm:$0xff] }
  0xe4   : > { %v1659_v26 = vrot.slane %v1658_v58, 1  ;;  %v1674_v24 = vadd.f32 %v1673_v42, %v1627_v56  ;;  %v1180_v36 = vmul.f32 %v5018_v29, %v5018_v29  ;;  %v5031_v50 = vsel %vm1011_vm4, %v998_v47, %v4983_v14  ;;  %v5059_v42 = vpop.permute.xlu1 %1007 }
  0xe5   : > { %7086 = vst [vmem:[#allocation24_spill] sm:$0xff] %v5024_v51  ;;  %7087 = vst [vmem:[#allocation65_spill] sm:$0xff] %v5031_v50  ;;  %v1664_v41 = vadd.f32 %v1663_v48, %v1662_v31  ;;  %v1669_v53 = vrot.slane %v1668_v17, 2  ;;  %v1181_v18 = vmul.f32 %v5024_v51, %v5024_v51  ;;  %v5045_v60 = vsel %vm1011_vm4, %v996_v2, %v998_v47  ;;  %v7091_v31 = vld [vmem:[#allocation91_spill] sm:$0xff]  ;;  %v5061_v47 = vpop.permute.xlu0 %1005 }
  0xe6   : > { %7090 = vst [vmem:[#allocation77_spill] sm:$0xff] %v5045_v60  ;;  %v1654_v30 = vadd.f32 %v1653_v27, %v1652_v16  ;;  %v1660_v39 = vadd.f32 %v1659_v26, %v1658_v58  ;;  %v1675_v56 = vrot.slane %v1674_v24, 2  ;;  %v1196_v52 = vadd.f32 %v1180_v36, %v7091_v31  ;;  %v7095_v16 = vld [vmem:[#allocation92_spill] sm:$0xff]  ;;  %v7098_v58 = vld [vmem:[#allocation14_spill] sm:$0xff] }
  0xe7   : > { %v7092_v48 = vrot.slane %v7070_v11, %v4250_v10  ;;  %v1670_v2 = vadd.f32 %v1669_v53, %v1668_v17  ;;  %v1197_v26 = vadd.f32 %v1181_v18, %v7095_v16  ;;  %v5066_v27 = vsub.f32 %v5045_v60, %v7096_v4 }
  0xe8   : > { %v5070_v36 = vsub.f32 %v5031_v50, %v7098_v58  ;;  %v7100_v31 = vrot.slane %v7070_v11, %v3892_v28  ;;  %v1864_v63 = vcombine.low %v1642_v35, %v1648_v9  ;;  %v1865_v10 = vcombine.low %v1654_v30, %v1660_v39  ;;  %v7103_v50 = vld [vmem:[#allocation83_spill] sm:$0xff] }
  0xe9   : > { %vm5055_vm13 = vcmp.eq.s32.totalorder %v7092_v48, 1  ;;  %7097 = vst [vmem:[#allocation81_spill] sm:$0xff] %v5066_v27  ;;  %v1676_v53 = vadd.f32 %v1675_v56, %v1674_v24  ;;  %v1628_v17 = vsel %vm5037_vm11, %v1196_v52, 0.0  ;;  %v1665_v18 = vrot.slane %v1664_v41, 1  ;;  %v5103_v30 = vpop.permute.xlu0 %1301  ;;  %v7109_v56 = vld [vmem:[#allocation93_spill] sm:$0xff] }
  0xea   : > { %7099 = vst [vmem:[#allocation82_spill] sm:$0xff] %v5070_v36  ;;  %vm5075_vm14 = vcmp.eq.s32.totalorder %v7100_v31, 1  ;;  %v1629_v16 = vsel %vm496_vm12, %v1197_v26, 0.0  ;;  %v1679_v4 = vrot.slane %v1628_v17, 4  ;;  %v1182_v58 = vmul.f32 %v5066_v27, %v5066_v27  ;;  %vm5162_vm6 = vmand %vm405_vm5, %vm5055_vm13 }
  0xeb   : > { %v1881_v60 = vrot.slane %v1865_v10, %v7103_v50  ;;  %v1671_v54 = vrot.slane %v1670_v2, 1  ;;  %v1685_v28 = vrot.slane %v1629_v16, 4  ;;  %v1183_v24 = vmul.f32 %v5070_v36, %v5070_v36  ;;  %v5101_v10 = vpop.permute.xlu1 %1303  ;;  %v7110_v36 = vld [vmem:[#allocation94_spill] sm:$0xff]  ;;  %vm500_vm7 = vmand %vm405_vm5, %vm5075_vm14 }
  0xec   : > { %v7106_v9 = vrot.slane %v7070_v11, %v4294_v12  ;;  %v1677_v43 = vrot.slane %v1676_v53, 1  ;;  %v1680_v39 = vadd.f32 %v1679_v4, %v1628_v17  ;;  %v1198_v52 = vadd.f32 %v1182_v58, %v7109_v56 }
  0xed   : > { %v5113_v26 = vsel %vm1011_vm4, %v4983_v14, %v1002_v62  ;;  %v1874_v31 = vrot.slane %v1864_v63, %v7103_v50  ;;  %v1199_v27 = vadd.f32 %v1183_v24, %v7110_v36  ;;  %v5120_v4 = vsel %vm1011_vm4, %v1002_v62, %v5020_v45  ;;  %v5137_v62 = vpop.permute.xlu0 %1305 }
  0xee   : > { %vm5097_vm0 = vcmp.eq.s32.totalorder %v7106_v9, 1  ;;  %v1686_v9 = vadd.f32 %v1685_v28, %v1629_v16  ;;  %v1666_v8 = vadd.f32 %v1665_v18, %v1664_v41  ;;  %v1681_v17 = vrot.slane %v1680_v39, 2 }
  0xef   : > { %v1630_v58 = vsel %vm5088_vm15, %v1198_v52, 0.0  ;;  %v5126_v56 = vsub.f32 %v5113_v26, %v6954_v46  ;;  %v1896_v14 = vcombine.low %v1874_v31, %v1881_v60  ;;  %v1672_v51 = vadd.f32 %v1671_v54, %v1670_v2  ;;  %v5135_v41 = vpop.permute.xlu1 %1307  ;;  %vm5206_vm8 = vmand %vm405_vm5, %vm5097_vm0 }
  0xf0   : > { %v1631_v63 = vsel %vm498_vm1, %v1199_v27, 0.0  ;;  %v1691_v28 = vrot.slane %v1630_v58, 4  ;;  %v7111_v36 = vrot.slane %v7070_v11, %v4272_v13  ;;  %v1678_v18 = vadd.f32 %v1677_v43, %v1676_v53  ;;  %v7136_v43 = vld [vmem:[#allocation99_spill] sm:$0xff] }
  0xf1   : > { %v1682_v35 = vadd.f32 %v1681_v17, %v1680_v39  ;;  %v1697_v24 = vrot.slane %v1631_v63, 4  ;;  %v5141_v60 = vsub.f32 %v5120_v4, %v6962_v49  ;;  %v1687_v54 = vrot.slane %v1686_v9, 2 }
  0xf2   : > { %vm5131_vm2 = vcmp.eq.s32.totalorder %v7111_v36, 1  ;;  %v1692_v2 = vadd.f32 %v1691_v28, %v1630_v58  ;;  %v1184_v27 = vmul.f32 %v5126_v56, %v5126_v56  ;;  %v5149_v52 = vsel %vm1011_vm4, %v5059_v42, %v4739_v44 }
  0xf3   : > { %7114 = vst [vmem:[#allocation85_spill] sm:$0xff] %v5141_v60  ;;  %7115 = vst [vmem:[#allocation86_spill] sm:$0xff] %v5149_v52  ;;  %v7116_v53 = vrot.slane %v7070_v11, %v7038_v32  ;;  %v1683_v39 = vrot.slane %v1682_v35, 1  ;;  %v1698_v31 = vadd.f32 %v1697_v24, %v1631_v63  ;;  %v1185_v44 = vmul.f32 %v5141_v60, %v5141_v60  ;;  %v5180_v24 = vpop.permute.xlu1 %1311 }
  0xf4   : > { %v5170_v11 = vsub.f32 %v5149_v52, %v3755_v15  ;;  %v5173_v58 = vrot.slane %v1896_v14, %v7103_v50  ;;  %v1866_v28 = vcombine.low %v1666_v8, %v1672_v51  ;;  %v1693_v63 = vrot.slane %v1692_v2, 2  ;;  %v7123_v14 = vld [vmem:[#allocation96_spill] sm:$0xff]  ;;  %vm5235_vm9 = vmand %vm405_vm5, %vm5131_vm2 }
  0xf5   : > { %vm5154_vm3 = vcmp.eq.s32.totalorder %v7116_v53, 1  ;;  %v1200_v36 = vadd.f32 %v1184_v27, %v7122_v25  ;;  %v5182_v53 = vpop.permute.xlu0 %1309  ;;  %v1684_v15 = vadd.f32 %v1683_v39, %v1682_v35  ;;  %v1699_v49 = vrot.slane %v1698_v31, 2 }
  0xf6   : > { %7121 = vst [vmem:[#allocation90_spill] sm:$0xff] %v5170_v11  ;;  %v1201_v46 = vadd.f32 %v1185_v44, %v7123_v14  ;;  %v1188_v51 = vmul.f32 %v5170_v11, %v5170_v11  ;;  %v1694_v48 = vadd.f32 %v1693_v63, %v1692_v2  ;;  %v5194_v27 = vsel %vm1011_vm4, %v5061_v47, %v5059_v42  ;;  %v7128_v63 = vld [vmem:[#allocation97_spill] sm:$0xff]  ;;  %v7133_v2 = vld [vmem:[#allocation98_spill] sm:$0xff]  ;;  %vm5253_vm10 = vmand %vm405_vm5, %vm5154_vm3 }
  0xf7   : > { %v1632_v8 = vsel %vm5162_vm6, %v1200_v36, 0.0  ;;  %7124 = vst [vmem:[#allocation88_spill] sm:$0xff] %v5194_v27  ;;  %v5200_v35 = vsel %vm1011_vm4, %v5020_v45, %v5061_v47  ;;  %v1688_v39 = vadd.f32 %v1687_v54, %v1686_v9  ;;  %v1867_v44 = vcombine.low %v1678_v18, %v1684_v15  ;;  %v5217_v15 = vpop.permute.xlu1 %1315 }
  0xf8   : > { %7125 = vst [vmem:[#allocation89_spill] sm:$0xff] %v5200_v35  ;;  %v1633_v25 = vsel %vm500_vm7, %v1201_v46, 0.0  ;;  %v1703_v14 = vrot.slane %v1632_v8, 4  ;;  %v1700_v42 = vadd.f32 %v1699_v49, %v1698_v31  ;;  %v1204_v36 = vadd.f32 %v1188_v51, %v7128_v63 }
  0xf9   : > { %v1709_v17 = vrot.slane %v1633_v25, 4  ;;  %v5215_v45 = vsub.f32 %v5200_v35, %v6961_v33  ;;  %v5219_v46 = vpop.permute.xlu0 %1313  ;;  %v1888_v47 = vrot.slane %v1866_v28, %v7103_v50  ;;  %v1895_v34 = vrot.slane %v1867_v44, %v7103_v50 }
  0xfa   : > { %v1704_v9 = vadd.f32 %v1703_v14, %v1632_v8  ;;  %v5225_v49 = vsub.f32 %v5194_v27, %v6965_v3  ;;  %v1695_v18 = vrot.slane %v1694_v48, 1  ;;  %v1636_v31 = vsel %vm5206_vm8, %v1204_v36, 0.0 }
  0xfb   : > { %7129 = vst [vmem:[#allocation91_spill] sm:$0xff] %v5215_v45  ;;  %v1710_v54 = vadd.f32 %v1709_v17, %v1633_v25  ;;  %v1186_v51 = vmul.f32 %v5215_v45, %v5215_v45  ;;  %v1689_v63 = vrot.slane %v1688_v39, 1  ;;  %v1897_v33 = vcombine.low %v1888_v47, %v1895_v34  ;;  %v5244_v36 = vpop.permute.xlu1 %1319 }
  0xfc   : > { %7130 = vst [vmem:[#allocation92_spill] sm:$0xff] %v5225_v49  ;;  %v1705_v11 = vrot.slane %v1704_v9, 2  ;;  %v1727_v28 = vrot.slane %v1636_v31, 4  ;;  %v1701_v44 = vrot.slane %v1700_v42, 1  ;;  %v1187_v14 = vmul.f32 %v5225_v49, %v5225_v49 }
  0xfd   : > { %v1711_v25 = vrot.slane %v1710_v54, 2  ;;  %v1202_v17 = vadd.f32 %v1186_v51, %v7133_v2  ;;  %v5246_v47 = vpop.permute.xlu0 %1317  ;;  %v1911_v16 = vrot.slane %v1897_v33, %v7103_v50  ;;  %v1347_v51 = vsel %vm1011_vm4, %v5103_v30, %v5101_v10  ;;  %v3528_v2 = vld [vmem:[%s6617_s2 + $0x11] ss:$2 sm:$0xff]  ;;  %v1845_v33 = vld [vmem:[%s3717_s26] ss:$4 sm:$0xff] }
  0xfe   : > { %v1706_v34 = vadd.f32 %v1705_v11, %v1704_v9  ;;  %v1728_v3 = vadd.f32 %v1727_v28, %v1636_v31  ;;  %v1696_v11 = vadd.f32 %v1695_v18, %v1694_v48  ;;  %v1203_v31 = vadd.f32 %v1187_v14, %v7136_v43 }
  0xff   : > { %v1712_v9 = vadd.f32 %v1711_v25, %v1710_v54  ;;  %v1634_v28 = vsel %vm5235_vm9, %v1202_v17, 0.0  ;;  %v1912_v49 = vcombine.low %v5173_v58, %v1911_v16  ;;  %v1690_v22 = vadd.f32 %v1689_v63, %v1688_v39  ;;  %v5275_v18 = vpop.permute.xlu1 %1323 }
 0x100   : > { %v1707_v27 = vrot.slane %v1706_v34, 1  ;;  %v1729_v35 = vrot.slane %v1728_v3, 2  ;;  %v1715_v52 = vrot.slane %v1634_v28, 4  ;;  %v1635_v60 = vsel %vm5253_vm10, %v1203_v31, 0.0  ;;  %v5325_v31 = vld [vmem:[%s5291_s4 + $0x30] sm:$0xff] }
 0x101   : > { %v1345_v48 = vsel %vm1011_vm4, %v5137_v62, %v5135_v41  ;;  %v5277_v54 = vpop.permute.xlu0 %1321  ;;  %vm404_vm5 = vcmp.gt.f32.partialorder %v3528_v2, 0.5  ;;  %v1964_v58 = vadd.f32 %v1912_v49, %v1845_v33  ;;  %v1702_v17 = vadd.f32 %v1701_v44, %v1700_v42  ;;  %v5309_v42 = vld [vmem:[%s5291_s4 + $0x10] sm:$0xff]  ;;  %v5312_v49 = vld [vmem:[%s5291_s4 + $0x18] sm:$0xff]  ;;  %v5315_v44 = vld [vmem:[%s5291_s4 + $0x20] sm:$0xff]  ;;  %7144 = vst [vmem:[#allocation99_spill] sm:$0xff] %v5325_v31 }
 0x102   : > { %v1708_v8 = vadd.f32 %v1707_v27, %v1706_v34  ;;  %v1730_v25 = vadd.f32 %v1729_v35, %v1728_v3  ;;  %v1716_v14 = vadd.f32 %v1715_v52, %v1634_v28  ;;  %v1721_v39 = vrot.slane %v1635_v60, 4  ;;  %v5294_v3 = vld [vmem:[%s5291_s4] sm:$0xff]  ;;  %7140 = vst [vmem:[#allocation95_spill] sm:$0xff] %v5309_v42  ;;  %7141 = vst [vmem:[#allocation96_spill] sm:$0xff] %v5312_v49  ;;  %v5328_v28 = vld [vmem:[%s5291_s4 + $0x38] sm:$0xff] }
 0x103   : > { %v1346_v45 = vsel %vm1011_vm4, %v5101_v10, %v5137_v62  ;;  %v5285_v63 = vadd.f32 %v4786_v5, %v4979_v20  ;;  %1966 = vst [vmem:[%s3717_s26] ss:$4 sm:$0xff] %v1964_v58  ;;  %v1913_v16 = vcombine.low %v1690_v22, %v1696_v11  ;;  %v1713_v43 = vrot.slane %v1712_v9, 1  ;;  %7137 = vst [vmem:[#allocation93_spill] sm:$0xff] %v5294_v3  ;;  %v5297_v5 = vld [vmem:[%s5291_s4 + $0x8] sm:$0xff]  ;;  %v7139_v10 = vld [vmem:[#allocation30_spill] sm:$0xff]  ;;  %v5304_v52 = vpop.permute.xlu1 %1327 }
 0x104   : > { %v1717_v2 = vrot.slane %v1716_v14, 2  ;;  %v5289_v27 = vsel %vm404_vm5, 1, %v7027_v7  ;;  %7138 = vst [vmem:[#allocation94_spill] sm:$0xff] %v5297_v5  ;;  %v1914_v22 = vcombine.low %v1702_v17, %v1708_v8  ;;  %v1722_v20 = vadd.f32 %v1721_v39, %v1635_v60  ;;  %7142 = vst [vmem:[#allocation97_spill] sm:$0xff] %v5315_v44  ;;  %v5322_v11 = vld [vmem:[%s5291_s4 + $0x28] sm:$0xff]  ;;  %v5367_v44 = vld [vmem:[%s5291_s4 + $0x78] sm:$0xff] }
 0x105   : > { %v1349_v62 = vsub.f32 %v1347_v51, %v7139_v10  ;;  %v1343_v7 = vsel %vm1011_vm4, %v5182_v53, %v5180_v24  ;;  %v5306_v35 = vpop.permute.xlu0 %1325  ;;  %v1731_v60 = vrot.slane %v1730_v25, 1  ;;  %7143 = vst [vmem:[#allocation98_spill] sm:$0xff] %v5322_v11  ;;  %7145 = vst [vmem:[#allocation30_spill] sm:$0xff] %v5328_v28  ;;  %v7146_v8 = vld [vmem:[#allocation29_spill] sm:$0xff]  ;;  %v5337_v10 = vld [vmem:[%s5291_s4 + $0x40] sm:$0xff]  ;;  %v1923_v28 = vrot.slane %v1913_v16, %v7103_v50 }
 0x106   : > { %v1718_v34 = vadd.f32 %v1717_v2, %v1716_v14  ;;  %v1723_v58 = vrot.slane %v1722_v20, 2  ;;  %v1350_v17 = vsub.f32 %v1346_v45, %v7146_v8  ;;  %v7147_v39 = vld [vmem:[#allocation37_spill] sm:$0xff]  ;;  %v1344_v2 = vsel %vm1011_vm4, %v5135_v41, %v5182_v53  ;;  %7148 = vst [vmem:[#allocation29_spill] sm:$0xff] %v5337_v10  ;;  %v5343_v51 = vld [vmem:[%s5291_s4 + $0x50] sm:$0xff]  ;;  %v5351_v8 = vld [vmem:[%s5291_s4 + $0x58] sm:$0xff] }
 0x107   : > { %v1351_v14 = vsub.f32 %v1345_v48, %v7147_v39  ;;  %v5340_v33 = vld [vmem:[%s5291_s4 + $0x48] sm:$0xff]  ;;  %7150 = vst [vmem:[#allocation114_spill] sm:$0xff] %v5343_v51  ;;  %7151 = vst [vmem:[#allocation115_spill] sm:$0xff] %v5351_v8  ;;  %v5354_v41 = vld [vmem:[%s5291_s4 + $0x60] sm:$0xff]  ;;  %v1714_v39 = vadd.f32 %v1713_v43, %v1712_v9  ;;  %v1525_v10 = vmul.f32 %v1349_v62, %v1349_v62  ;;  %v1332_v11 = vpop.permute.xlu1 %1331  ;;  %vm1060_vm11 = vcmp.lt.s32.totalorder %v4660_v0, 126 }
 0x108   : > { %7149 = vst [vmem:[#allocation37_spill] sm:$0xff] %v5340_v33  ;;  %v1719_v31 = vrot.slane %v1718_v34, 1  ;;  %7152 = vst [vmem:[#allocation116_spill] sm:$0xff] %v5354_v41  ;;  %v5357_v53 = vld [vmem:[%s5291_s4 + $0x68] sm:$0xff]  ;;  %v1930_v33 = vrot.slane %v1914_v22, %v7103_v50  ;;  %v1724_v51 = vadd.f32 %v1723_v58, %v1722_v20  ;;  %v5364_v48 = vld [vmem:[%s5291_s4 + $0x70] sm:$0xff]  ;;  %v1732_v45 = vadd.f32 %v1731_v60, %v1730_v25 }
 0x109   : > { %7153 = vst [vmem:[#allocation117_spill] sm:$0xff] %v5357_v53  ;;  %v1330_v16 = vpop.permute.xlu0 %1329  ;;  %7154 = vst [vmem:[#allocation118_spill] sm:$0xff] %v5364_v48  ;;  %v1341_v9 = vsel %vm1011_vm4, %v5219_v46, %v5217_v15  ;;  %v1342_v43 = vsel %vm1011_vm4, %v5180_v24, %v5219_v46  ;;  %v1526_v20 = vmul.f32 %v1350_v17, %v1350_v17  ;;  %v7156_v58 = vld [vmem:[#allocation43_spill] sm:$0xff]  ;;  %v7157_v25 = vld [vmem:[#allocation36_spill] sm:$0xff] }
 0x10a   : > { %7155 = vst [vmem:[#allocation119_spill] sm:$0xff] %v5367_v44  ;;  %v1720_v8 = vadd.f32 %v1719_v31, %v1718_v34  ;;  %v1725_v22 = vrot.slane %v1724_v51, 1  ;;  %v1527_v62 = vmul.f32 %v1351_v14, %v1351_v14  ;;  %v1353_v53 = vsub.f32 %v1343_v7, %v7156_v58  ;;  %v7211_v48 = vld [vmem:[#allocation80_spill] sm:$0xff] }
 0x10b   : > { %v1352_v60 = vsub.f32 %v1344_v2, %v7157_v25  ;;  %v1339_v34 = vsel %vm1011_vm4, %v5246_v47, %v5244_v36  ;;  %v1340_v24 = vsel %vm1011_vm4, %v5217_v15, %v5246_v47  ;;  %v1945_v46 = vcombine.low %v1923_v28, %v1930_v33  ;;  %v1031_v14 = vpop.permute.xlu1 %1030  ;;  %v7159_v28 = vld [vmem:[#allocation101_spill] sm:$0xff]  ;;  %v7234_v5 = vld [vmem:[#allocation92_spill] sm:$0xff] }
 0x10c   : > { %v1915_v44 = vcombine.low %v1714_v39, %v1720_v8  ;;  %v1726_v31 = vadd.f32 %v1725_v22, %v1724_v51  ;;  %v1354_v7 = vsub.f32 %v1342_v43, %v4024_v38  ;;  %v1355_v17 = vsub.f32 %v1341_v9, %v4094_v57  ;;  %v7158_v51 = vld [vmem:[#allocation100_spill] sm:$0xff] }
 0x10d   : > { %v5391_v2 = vpop.permute.xlu0 %1028  ;;  %v1356_v8 = vsub.f32 %v1340_v24, %v4090_v19  ;;  %v1357_v39 = vsub.f32 %v1339_v34, %v4122_v37  ;;  %v1337_v15 = vsel %vm1011_vm4, %v5277_v54, %v5275_v18  ;;  %v1338_v47 = vsel %vm1011_vm4, %v5244_v36, %v5277_v54  ;;  %v7160_v37 = vld [vmem:[#allocation102_spill] sm:$0xff] }
 0x10e   : > { %v1916_v38 = vcombine.low %v1726_v31, %v1732_v45  ;;  %v1937_v57 = vrot.slane %v1915_v44, %v7103_v50  ;;  %v5405_v33 = vadd.f32 %v1525_v10, %v7158_v51  ;;  %v5408_v19 = vadd.f32 %v1526_v20, %v7159_v28  ;;  %v7162_v31 = vld [vmem:[#allocation57_spill] sm:$0xff] }
 0x10f   : > { %v5414_v9 = vadd.f32 %v1527_v62, %v7160_v37  ;;  %v1528_v43 = vmul.f32 %v1352_v60, %v1352_v60  ;;  %v1529_v22 = vmul.f32 %v1353_v53, %v1353_v53  ;;  %v1335_v36 = vsel %vm1011_vm4, %v5306_v35, %v5304_v52  ;;  %v1035_v20 = vpop.permute.xlu1 %1034  ;;  %v7161_v60 = vld [vmem:[#allocation54_spill] sm:$0xff] }
 0x110   : > { %v1944_v54 = vrot.slane %v1916_v38, %v7103_v50  ;;  %v1530_v44 = vmul.f32 %v1354_v7, %v1354_v7  ;;  %v1531_v10 = vmul.f32 %v1355_v17, %v1355_v17  ;;  %v1336_v45 = vsel %vm1011_vm4, %v5275_v18, %v5306_v35  ;;  %v7163_v35 = vld [vmem:[#allocation32_spill] sm:$0xff] }
 0x111   : > { %v1033_v62 = vpop.permute.xlu0 %1032  ;;  %v1953_v58 = vrot.slane %v1945_v46, %v7103_v50  ;;  %v1532_v53 = vmul.f32 %v1356_v8, %v1356_v8  ;;  %v1533_v25 = vmul.f32 %v1357_v39, %v1357_v39  ;;  %v1358_v34 = vsub.f32 %v1338_v47, %v7161_v60  ;;  %v7164_v46 = vld [vmem:[#allocation103_spill] sm:$0xff] }
 0x112   : > { %v1946_v24 = vcombine.low %v1937_v57, %v1944_v54  ;;  %v1359_v7 = vsub.f32 %v1337_v15, %v7162_v31  ;;  %v1348_v17 = vsel %vm1011_vm4, %v1332_v11, %v5103_v30  ;;  %v1333_v18 = vsel %vm1011_vm4, %v1330_v16, %v1332_v11  ;;  %v7165_v57 = vld [vmem:[#allocation104_spill] sm:$0xff]  ;;  %v7166_v30 = vld [vmem:[#allocation105_spill] sm:$0xff] }
 0x113   : > { %v5435_v38 = vadd.f32 %v1528_v43, %v7163_v35  ;;  %v5438_v8 = vadd.f32 %v1529_v22, %v7164_v46  ;;  %v1360_v39 = vsub.f32 %v1336_v45, %v4126_v21  ;;  %v1361_v47 = vsub.f32 %v1335_v36, %v4138_v61  ;;  %v1039_v37 = vpop.permute.xlu1 %1038  ;;  %v3529_v21 = vld [vmem:[%s3717_s26 + $0x20] ss:$4 sm:$0xff] }
 0x114   : > { %v1960_v15 = vrot.slane %v1946_v24, %v7103_v50  ;;  %v5445_v51 = vadd.f32 %v1530_v44, %v7165_v57  ;;  %v5448_v28 = vadd.f32 %v1531_v10, %v7166_v30  ;;  %v1334_v11 = vsel %vm1011_vm4, %v5304_v52, %v1330_v16  ;;  %v7167_v61 = vld [vmem:[#allocation106_spill] sm:$0xff]  ;;  %v7168_v36 = vld [vmem:[#allocation107_spill] sm:$0xff]  ;;  %v7170_v35 = vld [vmem:[#allocation44_spill] sm:$0xff] }
 0x115   : > { %v1037_v43 = vpop.permute.xlu0 %1036  ;;  %v5457_v22 = vadd.f32 %v1532_v53, %v7167_v61  ;;  %v5460_v54 = vadd.f32 %v1533_v25, %v7168_v36  ;;  %v1534_v44 = vmul.f32 %v1358_v34, %v1358_v34  ;;  %v1075_v10 = vsel %vm1060_vm11, %v5391_v2, %v1031_v14  ;;  %v7171_v46 = vld [vmem:[#allocation39_spill] sm:$0xff]  ;;  %v7173_v61 = vld [vmem:[#allocation42_spill] sm:$0xff] }
 0x116   : > { %v1961_v45 = vcombine.low %v1953_v58, %v1960_v15  ;;  %v1535_v52 = vmul.f32 %v1359_v7, %v1359_v7  ;;  %v1253_v16 = vsub.f32 %v1075_v10, %v4799_v40  ;;  %v1073_v60 = vsel %vm1060_vm11, %v1033_v62, %v1035_v20  ;;  %v7169_v58 = vld [vmem:[#allocation73_spill] sm:$0xff] }
 0x117   : > { %v1536_v24 = vmul.f32 %v1360_v39, %v1360_v39  ;;  %v1537_v31 = vmul.f32 %v1361_v47, %v1361_v47  ;;  %v1074_v53 = vsel %vm1060_vm11, %v1031_v14, %v1033_v62  ;;  %v1255_v25 = vsub.f32 %v1073_v60, %v4790_v1  ;;  %v1043_v57 = vpop.permute.xlu1 %1042  ;;  %v7172_v47 = vld [vmem:[#allocation74_spill] sm:$0xff]  ;;  %v7175_v10 = vld [vmem:[#allocation49_spill] sm:$0xff] }
 0x118   : > { %v1965_v34 = vadd.f32 %v3529_v21, %v1961_v45  ;;  %v1364_v7 = vsub.f32 %v1348_v17, %v7169_v58  ;;  %v1269_v40 = vsub.f32 %v1253_v16, %v7170_v35  ;;  %v1254_v15 = vsub.f32 %v1074_v53, %v7171_v46  ;;  %v7174_v21 = vld [vmem:[#allocation58_spill] sm:$0xff]  ;;  %v7177_v58 = vld [vmem:[#allocation41_spill] sm:$0xff] }
 0x119   : > { %v1041_v39 = vpop.permute.xlu0 %1040  ;;  %v1363_v30 = vsub.f32 %v1333_v18, %v7172_v47  ;;  %v1271_v14 = vsub.f32 %v1255_v25, %v7173_v61  ;;  %v1071_v1 = vsel %vm1060_vm11, %v1037_v43, %v1039_v37  ;;  %v1072_v62 = vsel %vm1060_vm11, %v1035_v20, %v1037_v43  ;;  %v7176_v16 = vld [vmem:[#allocation46_spill] sm:$0xff]  ;;  %v7178_v43 = vld [vmem:[#allocation28_spill] sm:$0xff] }
 0x11a   : > { %3530 = vst [vmem:[%s3717_s26 + $0x20] ss:$4 sm:$0xff] %v1965_v34  ;;  %v1362_v17 = vsub.f32 %v1334_v11, %v7174_v21  ;;  %v1477_v36 = vmul.f32 %v1269_v40, %v1269_v40  ;;  %v1270_v45 = vsub.f32 %v1254_v15, %v7175_v10  ;;  %v1256_v60 = vsub.f32 %v1072_v62, %v7176_v16  ;;  %v7179_v40 = vld [vmem:[#allocation50_spill] sm:$0xff]  ;;  %v7180_v61 = vld [vmem:[#allocation20_spill] sm:$0xff]  ;;  %v7182_v21 = vld [vmem:[#allocation55_spill] sm:$0xff] }
 0x11b   : > { %v1479_v53 = vmul.f32 %v1271_v14, %v1271_v14  ;;  %v1257_v18 = vsub.f32 %v1071_v1, %v7177_v58  ;;  %v1069_v25 = vsel %vm1060_vm11, %v1041_v39, %v1043_v57  ;;  %v1070_v35 = vsel %vm1060_vm11, %v1039_v37, %v1041_v39  ;;  %v1047_v15 = vpop.permute.xlu1 %1046  ;;  %v7181_v1 = vld [vmem:[#allocation64_spill] sm:$0xff]  ;;  %v7183_v10 = vld [vmem:[#allocation31_spill] sm:$0xff] }
 0x11c   : > { %v1540_v20 = vmul.f32 %v1364_v7, %v1364_v7  ;;  %v5497_v34 = vadd.f32 %v1477_v36, %v7178_v43  ;;  %v1478_v11 = vmul.f32 %v1270_v45, %v1270_v45  ;;  %v1272_v46 = vsub.f32 %v1256_v60, %v7179_v40  ;;  %v7184_v60 = vld [vmem:[#allocation53_spill] sm:$0xff] }
 0x11d   : > { %v1045_v47 = vpop.permute.xlu0 %1044  ;;  %v5502_v14 = vadd.f32 %v1479_v53, %v7180_v61  ;;  %v1258_v62 = vsub.f32 %v1070_v35, %v7181_v1  ;;  %v1259_v37 = vsub.f32 %v1069_v25, %v7182_v21  ;;  %v1538_v39 = vmul.f32 %v1362_v17, %v1362_v17  ;;  %v7185_v43 = vld [vmem:[#allocation45_spill] sm:$0xff]  ;;  %v7186_v25 = vld [vmem:[#allocation108_spill] sm:$0xff] }
 0x11e   : > { %v1067_v7 = vsel %vm1060_vm11, %v1045_v47, %v1047_v15  ;;  %v1539_v36 = vmul.f32 %v1363_v30, %v1363_v30  ;;  %v5509_v45 = vadd.f32 %v1478_v11, %v7183_v10  ;;  %v1068_v16 = vsel %vm1060_vm11, %v1043_v57, %v1045_v47  ;;  %v7188_v30 = vld [vmem:[#allocation109_spill] sm:$0xff]  ;;  %v7190_v1 = vld [vmem:[#allocation56_spill] sm:$0xff] }
 0x11f   : > { %v1273_v58 = vsub.f32 %v1257_v18, %v7184_v60  ;;  %v1274_v53 = vsub.f32 %v1258_v62, %v7185_v43  ;;  %v1260_v40 = vsub.f32 %v1068_v16, %v4987_v55  ;;  %v1261_v35 = vsub.f32 %v1067_v7, %v5003_v59  ;;  %v1051_v18 = vpop.permute.xlu1 %1050  ;;  %v7191_v62 = vld [vmem:[#allocation110_spill] sm:$0xff]  ;;  %v7193_v55 = vld [vmem:[#allocation111_spill] sm:$0xff]  ;;  %v7195_v10 = vld [vmem:[#allocation24_spill] sm:$0xff] }
 0x120   : > { %v5523_v17 = vadd.f32 %v1534_v44, %v7186_v25  ;;  %v5526_v11 = vadd.f32 %v1535_v52, %v7188_v30  ;;  %v1480_v61 = vmul.f32 %v1272_v46, %v1272_v46  ;;  %v1275_v57 = vsub.f32 %v1259_v37, %v7190_v1  ;;  %v7196_v16 = vld [vmem:[#allocation26_spill] sm:$0xff]  ;;  %v7198_v52 = vld [vmem:[#allocation113_spill] sm:$0xff]  ;;  %v7200_v43 = vld [vmem:[#allocation112_spill] sm:$0xff] }
 0x121   : > { %v1049_v47 = vpop.permute.xlu0 %1048  ;;  %v5530_v21 = vadd.f32 %v1536_v24, %v7191_v62  ;;  %v5533_v59 = vadd.f32 %v1537_v31, %v7193_v55  ;;  %v1276_v7 = vsub.f32 %v1260_v40, %v5018_v29  ;;  %v1277_v44 = vsub.f32 %v1261_v35, %v7195_v10  ;;  %v7202_v29 = vld [vmem:[#allocation72_spill] sm:$0xff]  ;;  %v7204_v1 = vld [vmem:[#allocation77_spill] sm:$0xff]  ;;  %v7207_v40 = vld [vmem:[#allocation82_spill] sm:$0xff] }
 0x122   : > { %7187 = vst [vmem:[#allocation43_spill] sm:$0xff] %v5523_v17  ;;  %7189 = vst [vmem:[#allocation36_spill] sm:$0xff] %v5526_v11  ;;  %v5538_v60 = vadd.f32 %v1540_v20, %v7196_v16  ;;  %v5541_v46 = vadd.f32 %v1539_v36, %v7198_v52  ;;  %v1065_v37 = vsel %vm1060_vm11, %v1049_v47, %v1051_v18  ;;  %v7203_v20 = vld [vmem:[#allocation35_spill] sm:$0xff]  ;;  %v7205_v55 = vld [vmem:[#allocation65_spill] sm:$0xff] }
 0x123   : > { %7192 = vst [vmem:[#allocation100_spill] sm:$0xff] %v5530_v21  ;;  %7194 = vst [vmem:[#allocation101_spill] sm:$0xff] %v5533_v59  ;;  %v1066_v24 = vsel %vm1060_vm11, %v1047_v15, %v1049_v47  ;;  %v5548_v25 = vadd.f32 %v1538_v39, %v7200_v43  ;;  %v1481_v31 = vmul.f32 %v1273_v58, %v1273_v58  ;;  %v1055_v16 = vpop.permute.xlu1 %1054  ;;  %v7250_v59 = vld [vmem:[#allocation40_spill] sm:$0xff] }
 0x124   : > { %7197 = vst [vmem:[#allocation102_spill] sm:$0xff] %v5538_v60  ;;  %7199 = vst [vmem:[#allocation54_spill] sm:$0xff] %v5541_v46  ;;  %v1482_v30 = vmul.f32 %v1274_v53, %v1274_v53  ;;  %v5554_v35 = vadd.f32 %v1480_v61, %v7203_v20  ;;  %v1483_v36 = vmul.f32 %v1275_v57, %v1275_v57  ;;  %v7206_v53 = vld [vmem:[#allocation81_spill] sm:$0xff]  ;;  %v7208_v20 = vld [vmem:[#allocation27_spill] sm:$0xff] }
 0x125   : > { %7201 = vst [vmem:[#allocation57_spill] sm:$0xff] %v5548_v25  ;;  %v1262_v62 = vsub.f32 %v1066_v24, %v7204_v1  ;;  %v1263_v10 = vsub.f32 %v1065_v37, %v7205_v55  ;;  %v1053_v52 = vpop.permute.xlu0 %1052  ;;  %v1484_v15 = vmul.f32 %v1276_v7, %v1276_v7  ;;  %v1485_v47 = vmul.f32 %v1277_v44, %v1277_v44  ;;  %v7209_v1 = vld [vmem:[#allocation38_spill] sm:$0xff]  ;;  %v7210_v44 = vld [vmem:[#allocation23_spill] sm:$0xff]  ;;  %v5643_v46 = vld [vmem:[%s5593_s13 + $0x28] sm:$0xff] }
 0x126   : > { %v1063_v39 = vsel %vm1060_vm11, %v1053_v52, %v1055_v16  ;;  %v1064_v58 = vsel %vm1060_vm11, %v1051_v18, %v1053_v52  ;;  %v5567_v37 = vadd.f32 %v1481_v31, %v7208_v20  ;;  %v5570_v7 = vadd.f32 %v1482_v30, %v7209_v1  ;;  %v7212_v52 = vld [vmem:[#allocation21_spill] sm:$0xff]  ;;  %v7215_v30 = vld [vmem:[#allocation34_spill] sm:$0xff]  ;;  %7235 = vst [vmem:[#allocation44_spill] sm:$0xff] %v5643_v46  ;;  %v5649_v25 = vld [vmem:[%s5593_s13 + $0x38] sm:$0xff] }
 0x127   : > { %v1278_v43 = vsub.f32 %v1262_v62, %v7206_v53  ;;  %v1279_v61 = vsub.f32 %v1263_v10, %v7207_v40  ;;  %v1264_v57 = vsub.f32 %v1064_v58, %v5113_v26  ;;  %v1265_v24 = vsub.f32 %v1063_v39, %v5120_v4  ;;  %v7213_v26 = vld [vmem:[#allocation85_spill] sm:$0xff]  ;;  %v1059_v4 = vpop.permute.xlu1 %1058  ;;  %v5618_v55 = vld [vmem:[%s5593_s13 + $0x10] sm:$0xff]  ;;  %7237 = vst [vmem:[#allocation74_spill] sm:$0xff] %v5649_v25  ;;  %v7252_v21 = vld [vmem:[#allocation48_spill] sm:$0xff] }
 0x128   : > { %v5577_v62 = vadd.f32 %v1483_v36, %v7212_v52  ;;  %v7214_v31 = vld [vmem:[#allocation25_spill] sm:$0xff]  ;;  %v5584_v53 = vadd.f32 %v1484_v15, %v7215_v30  ;;  %v1076_v20 = vsel %vm1060_vm11, %v1059_v4, %v5391_v2  ;;  %v7217_v15 = vld [vmem:[#allocation47_spill] sm:$0xff]  ;;  %v7218_v2 = vld [vmem:[#allocation22_spill] sm:$0xff]  ;;  %7226 = vst [vmem:[#allocation104_spill] sm:$0xff] %v5618_v55 }
 0x129   : > { %v1280_v40 = vsub.f32 %v1264_v57, %v5126_v56  ;;  %v1281_v10 = vsub.f32 %v1265_v24, %v7213_v26  ;;  %v1057_v39 = vpop.permute.xlu0 %1056  ;;  %v5596_v57 = vld [vmem:[%s5593_s13] sm:$0xff]  ;;  %v5599_v24 = vadd.f32 %v1485_v47, %v7217_v15  ;;  %v1486_v1 = vmul.f32 %v1278_v43, %v1278_v43  ;;  %v7222_v30 = vld [vmem:[#allocation86_spill] sm:$0xff]  ;;  %v7223_v47 = vld [vmem:[#allocation89_spill] sm:$0xff] }
 0x12a   : > { %v1061_v36 = vsel %vm1060_vm11, %v1057_v39, %v1059_v4  ;;  %v1062_v56 = vsel %vm1060_vm11, %v1055_v16, %v1057_v39  ;;  %7216 = vst [vmem:[#allocation32_spill] sm:$0xff] %v5596_v57  ;;  %v1487_v52 = vmul.f32 %v1279_v61, %v1279_v61  ;;  %vm504_vm12 = vcmp.lt.s32.totalorder %v7218_v2, 6  ;;  %v7224_v43 = vld [vmem:[#allocation88_spill] sm:$0xff]  ;;  %v5615_v18 = vld [vmem:[%s5593_s13 + $0x8] sm:$0xff]  ;;  %v7233_v4 = vld [vmem:[#allocation91_spill] sm:$0xff] }
 0x12b   : > { %v7219_v26 = vrot.slane %v4822_v6, %v3875_v23  ;;  %v1488_v39 = vmul.f32 %v1280_v40, %v1280_v40  ;;  %v1268_v58 = vsub.f32 %v1076_v20, %v7222_v30  ;;  %v1266_v15 = vsub.f32 %v1062_v56, %v7223_v47  ;;  %7225 = vst [vmem:[#allocation103_spill] sm:$0xff] %v5615_v18  ;;  %v1368_v49 = vpop.permute.xlu1 %1367  ;;  %v5630_v56 = vld [vmem:[%s5593_s13 + $0x20] sm:$0xff]  ;;  %v7232_v47 = vld [vmem:[#allocation90_spill] sm:$0xff] }
 0x12c   : > { %v1267_v61 = vsub.f32 %v1061_v36, %v7224_v43  ;;  %v1489_v41 = vmul.f32 %v1281_v10, %v1281_v10  ;;  %7229 = vst [vmem:[#allocation107_spill] sm:$0xff] %v5630_v56  ;;  %v7230_v36 = vld [vmem:[#allocation4_spill] sm:$0xff]  ;;  %v5646_v20 = vld [vmem:[%s5593_s13 + $0x30] sm:$0xff] }
 0x12d   : > { %vm5605_vm13 = vcmp.eq.s32.totalorder %v7219_v26, 1  ;;  %v5621_v26 = vld [vmem:[%s5593_s13 + $0x18] sm:$0xff]  ;;  %v5623_v42 = vpop.permute.xlu0 %1365  ;;  %v5634_v30 = vsub.f32 %v7230_v36, %v5596_v57  ;;  %v1284_v43 = vsub.f32 %v1268_v58, %v7232_v47  ;;  %v1282_v10 = vsub.f32 %v1266_v15, %v7233_v4  ;;  %7236 = vst [vmem:[#allocation39_spill] sm:$0xff] %v5646_v20  ;;  %v7238_v36 = vld [vmem:[#allocation60_spill] sm:$0xff]  ;;  %v7242_v4 = vld [vmem:[#allocation5_spill] sm:$0xff] }
 0x12e   : > { %7227 = vst [vmem:[#allocation105_spill] sm:$0xff] %v5621_v26  ;;  %7228 = vst [vmem:[#allocation106_spill] sm:$0xff] %v5623_v42  ;;  %v1283_v3 = vsub.f32 %v1267_v61, %v7234_v5  ;;  %v1411_v40 = vsel %vm1011_vm4, %v5623_v42, %v1368_v49  ;;  %v7239_v58 = vrot.slane %v4822_v6, %v7210_v44  ;;  %v7244_v61 = vld [vmem:[#allocation6_spill] sm:$0xff] }
 0x12f   : > { %7231 = vst [vmem:[#allocation73_spill] sm:$0xff] %v5634_v30  ;;  %v1413_v57 = vsub.f32 %v1411_v40, %v7238_v36  ;;  %v5661_v15 = vsub.f32 %v7242_v4, %v5615_v18  ;;  %v5665_v47 = vsub.f32 %v7244_v61, %v5618_v55  ;;  %v7246_v30 = vld [vmem:[#allocation7_spill] sm:$0xff]  ;;  %v7248_v40 = vld [vmem:[#allocation33_spill] sm:$0xff]  ;;  %v5678_v42 = vadd.f32 %v1488_v39, %v7252_v21  ;;  %v5688_v61 = vld [vmem:[%s5593_s13 + $0x40] sm:$0xff] }
 0x130   : > { %vm5655_vm14 = vcmp.eq.s32.totalorder %v7239_v58, 1  ;;  %v5669_v60 = vsub.f32 %v7246_v30, %v5621_v26  ;;  %v5672_v36 = vadd.f32 %v1486_v1, %v7248_v40  ;;  %v5675_v58 = vadd.f32 %v1487_v52, %v7250_v59  ;;  %7257 = vst [vmem:[#allocation50_spill] sm:$0xff] %v5688_v61  ;;  %v7258_v30 = vld [vmem:[#allocation8_spill] sm:$0xff]  ;;  %v1372_v52 = vpop.permute.xlu1 %1371  ;;  %v5695_v21 = vld [vmem:[%s5593_s13 + $0x48] sm:$0xff]  ;;  %v5698_v39 = vld [vmem:[%s5593_s13 + $0x50] sm:$0xff] }
 0x131   : > { %7243 = vst [vmem:[#allocation42_spill] sm:$0xff] %v5661_v15  ;;  %7245 = vst [vmem:[#allocation58_spill] sm:$0xff] %v5665_v47  ;;  %v7254_v4 = vrot.slane %v4822_v6, %v7202_v29  ;;  %v5692_v1 = vsub.f32 %v7258_v30, %v5630_v56  ;;  %v1557_v59 = vmul.f32 %v1413_v57, %v1413_v57  ;;  %v1370_v40 = vpop.permute.xlu0 %1369  ;;  %v7263_v26 = vld [vmem:[#allocation9_spill] sm:$0xff]  ;;  %v7267_v30 = vld [vmem:[#allocation11_spill] sm:$0xff] }
 0x132   : > { %7247 = vst [vmem:[#allocation49_spill] sm:$0xff] %v5669_v60  ;;  %7249 = vst [vmem:[#allocation46_spill] sm:$0xff] %v5672_v36  ;;  %v5705_v55 = vsub.f32 %v7263_v26, %v5643_v46  ;;  %v7265_v60 = vld [vmem:[#allocation10_spill] sm:$0xff]  ;;  %v5713_v57 = vsub.f32 %v7267_v30, %v5649_v25  ;;  %v7269_v56 = vld [vmem:[#allocation51_spill] sm:$0xff]  ;;  %v1492_v15 = vmul.f32 %v1284_v43, %v1284_v43 }
 0x133   : > { %7251 = vst [vmem:[#allocation41_spill] sm:$0xff] %v5675_v58  ;;  %7253 = vst [vmem:[#allocation28_spill] sm:$0xff] %v5678_v42  ;;  %vm5683_vm15 = vcmp.eq.s32.totalorder %v7254_v4, 1  ;;  %v5701_v4 = vld [vmem:[%s5593_s13 + $0x58] sm:$0xff]  ;;  %v5709_v47 = vsub.f32 %v7265_v60, %v5646_v20  ;;  %v1490_v42 = vmul.f32 %v1282_v10, %v1282_v10  ;;  %v1409_v58 = vsel %vm1011_vm4, %v1370_v40, %v1372_v52  ;;  %v5728_v60 = vld [vmem:[%s5593_s13 + $0x60] sm:$0xff] }
 0x134   : > { %7259 = vst [vmem:[#allocation20_spill] sm:$0xff] %v5692_v1  ;;  %7260 = vst [vmem:[#allocation64_spill] sm:$0xff] %v5695_v21  ;;  %v5716_v1 = vadd.f32 %v1489_v41, %v7269_v56  ;;  %v7271_v26 = vrot.slane %v4822_v6, %v7211_v48  ;;  %v5731_v30 = vld [vmem:[%s5593_s13 + $0x68] sm:$0xff]  ;;  %v1573_v41 = vadd.f32 %v1557_v59, %v5405_v33  ;;  %v7276_v43 = vld [vmem:[#allocation62_spill] sm:$0xff]  ;;  %v1376_v11 = vpop.permute.xlu1 %1375 }
 0x135   : > { %7261 = vst [vmem:[#allocation55_spill] sm:$0xff] %v5698_v39  ;;  %7262 = vst [vmem:[#allocation31_spill] sm:$0xff] %v5701_v4  ;;  %v1410_v56 = vsel %vm1011_vm4, %v1368_v49, %v1370_v40  ;;  %v1415_v10 = vsub.f32 %v1409_v58, %v7276_v43  ;;  %v7277_v25 = vrot.slane %v4822_v6, %v7214_v31  ;;  %v5745_v20 = vld [vmem:[%s5593_s13 + $0x70] sm:$0xff]  ;;  %v7284_v59 = vld [vmem:[#allocation13_spill] sm:$0xff]  ;;  %v1374_v17 = vpop.permute.xlu0 %1373 }
 0x136   : > { %7264 = vst [vmem:[#allocation53_spill] sm:$0xff] %v5705_v55  ;;  %7266 = vst [vmem:[#allocation45_spill] sm:$0xff] %v5709_v47  ;;  %vm5723_vm0 = vcmp.eq.s32.totalorder %v7271_v26, 1  ;;  %v7283_v55 = vld [vmem:[#allocation59_spill] sm:$0xff]  ;;  %v5754_v49 = vsub.f32 %v7284_v59, %v5695_v21  ;;  %v7286_v58 = vld [vmem:[#allocation14_spill] sm:$0xff] }
 0x137   : > { %7268 = vst [vmem:[#allocation108_spill] sm:$0xff] %v5713_v57  ;;  %7270 = vst [vmem:[#allocation109_spill] sm:$0xff] %v5716_v1  ;;  %vm5740_vm1 = vcmp.eq.s32.totalorder %v7277_v25, 1  ;;  %v7281_v57 = vld [vmem:[#allocation12_spill] sm:$0xff]  ;;  %v1414_v33 = vsub.f32 %v1410_v56, %v7283_v55  ;;  %v5758_v40 = vsub.f32 %v7286_v58, %v5698_v39  ;;  %v7288_v25 = vld [vmem:[#allocation15_spill] sm:$0xff]  ;;  %v1589_v1 = vmul.f32 2.0, %v1573_v41 }
 0x138   : > { %7274 = vst [vmem:[#allocation56_spill] sm:$0xff] %v5728_v60  ;;  %7275 = vst [vmem:[#allocation110_spill] sm:$0xff] %v5731_v30  ;;  %v5749_v47 = vsub.f32 %v7281_v57, %v5688_v61  ;;  %v5762_v43 = vsub.f32 %v7288_v25, %v5701_v4  ;;  %v1559_v36 = vmul.f32 %v1415_v10, %v1415_v10  ;;  %v5765_v57 = vld [vmem:[%s5593_s13 + $0x78] sm:$0xff]  ;;  %v7291_v55 = vld [vmem:[#allocation16_spill] sm:$0xff] }
 0x139   : > { %7280 = vst [vmem:[#allocation111_spill] sm:$0xff] %v5745_v20  ;;  %7285 = vst [vmem:[#allocation26_spill] sm:$0xff] %v5754_v49  ;;  %v5769_v56 = vsub.f32 %v7291_v55, %v5728_v60  ;;  %v7293_v59 = vld [vmem:[#allocation17_spill] sm:$0xff]  ;;  %v1558_v58 = vmul.f32 %v1414_v33, %v1414_v33  ;;  %v1407_v41 = vsel %vm1011_vm4, %v1374_v17, %v1376_v11  ;;  %v7295_v25 = vld [vmem:[#allocation18_spill] sm:$0xff] }
 0x13a   : > { %7282 = vst [vmem:[#allocation24_spill] sm:$0xff] %v5749_v47  ;;  %7287 = vst [vmem:[#allocation113_spill] sm:$0xff] %v5758_v40  ;;  %v5773_v21 = vsub.f32 %v7293_v59, %v5731_v30  ;;  %v1408_v10 = vsel %vm1011_vm4, %v1372_v52, %v1374_v17  ;;  %v5785_v55 = vsub.f32 %v7295_v25, %v5745_v20  ;;  %v7297_v30 = vld [vmem:[#allocation61_spill] sm:$0xff]  ;;  %v7298_v4 = vld [vmem:[#allocation66_spill] sm:$0xff] }
 0x13b   : > { %7289 = vst [vmem:[#allocation112_spill] sm:$0xff] %v5762_v43  ;;  %7290 = vst [vmem:[#allocation72_spill] sm:$0xff] %v5765_v57  ;;  %v1605_v60 = vadd.f32 %v1589_v1, %v5497_v34  ;;  %v1575_v59 = vadd.f32 %v1559_v36, %v5414_v9  ;;  %v1416_v16 = vsub.f32 %v1408_v10, %v7297_v30  ;;  %v7302_v17 = vld [vmem:[#allocation71_spill] sm:$0xff]  ;;  %v1380_v10 = vpop.permute.xlu1 %1379  ;;  %v7361_v0 = vld [vmem:[#allocation102_spill] sm:$0xff] }
 0x13c   : > { %7292 = vst [vmem:[#allocation35_spill] sm:$0xff] %v5769_v56  ;;  %7294 = vst [vmem:[#allocation77_spill] sm:$0xff] %v5773_v21  ;;  %v1417_v39 = vsub.f32 %v1407_v41, %v7298_v4  ;;  %v7299_v33 = vrot.slane %v4822_v6, %v4272_v13  ;;  %v5799_v52 = vadd.f32 %v1492_v15, %v7302_v17  ;;  %v7303_v9 = vld [vmem:[#allocation19_spill] sm:$0xff] }
 0x13d   : > { %vm587_vm2 = vmand %vm504_vm12, %vm5605_vm13  ;;  %7296 = vst [vmem:[#allocation65_spill] sm:$0xff] %v5785_v55  ;;  %v5801_v25 = vmul.f32 %v1283_v3, %v1283_v3  ;;  %v1574_v34 = vadd.f32 %v1558_v58, %v5408_v19  ;;  %v5806_v36 = vsub.f32 %v7303_v9, %v5765_v57  ;;  %v1591_v4 = vmul.f32 2.0, %v1575_v59  ;;  %v1378_v3 = vpop.permute.xlu0 %1377  ;;  %v7310_v17 = vld [vmem:[#allocation63_spill] sm:$0xff]  ;;  %v7311_v9 = vld [vmem:[#allocation52_spill] sm:$0xff] }
 0x13e   : > { %vm5794_vm3 = vcmp.eq.s32.totalorder %v7299_v33, 1  ;;  %v1733_v1 = vsel %vm587_vm2, %v1605_v60, 0.0  ;;  %v1560_v30 = vmul.f32 %v1416_v16, %v1416_v16  ;;  %v1561_v41 = vmul.f32 %v1417_v39, %v1417_v39  ;;  %vm589_vm7 = vmand %vm504_vm12, %vm5655_vm14 }
 0x13f   : > { %7304 = vst [vmem:[#allocation81_spill] sm:$0xff] %v5806_v36  ;;  %v7305_v33 = vrot.slane %v4822_v6, %v7038_v32  ;;  %v1749_v15 = vrot.slane %v1733_v1, 4  ;;  %v1590_v19 = vmul.f32 2.0, %v1574_v34  ;;  %v1405_v60 = vsel %vm1011_vm4, %v1378_v3, %v1380_v10  ;;  %vm5827_vm8 = vmand %vm504_vm12, %vm5683_vm15 }
 0x140   : > { %v1406_v39 = vsel %vm1011_vm4, %v1376_v11, %v1378_v3  ;;  %v1607_v5 = vadd.f32 %v1591_v4, %v5502_v14  ;;  %v1576_v59 = vadd.f32 %v1560_v30, %v5435_v38  ;;  %v1577_v16 = vadd.f32 %v1561_v41, %v5438_v8  ;;  %v7312_v3 = vld [vmem:[#allocation68_spill] sm:$0xff]  ;;  %vm5844_vm9 = vmand %vm504_vm12, %vm5723_vm0  ;;  %v5848_v30 = vpop.permute.xlu1 %1383 }
 0x141   : > { %vm5811_vm6 = vcmp.eq.s32.totalorder %v7305_v33, 1  ;;  %v1418_v34 = vsub.f32 %v1406_v39, %v7310_v17  ;;  %v5836_v33 = vadd.f32 %v1490_v42, %v7311_v9  ;;  %v1750_v11 = vadd.f32 %v1749_v15, %v1733_v1  ;;  %v1382_v42 = vpop.permute.xlu0 %1381  ;;  %vm591_vm10 = vmand %vm504_vm12, %vm5740_vm1 }
 0x142   : > { %v1606_v18 = vadd.f32 %v1590_v19, %v5509_v45  ;;  %v1419_v57 = vsub.f32 %v1405_v60, %v7312_v3  ;;  %v1735_v36 = vsel %vm589_vm7, %v1607_v5, 0.0  ;;  %v1592_v38 = vmul.f32 2.0, %v1576_v59  ;;  %vm592_vm11 = vmand %vm504_vm12, %vm5794_vm3 }
 0x143   : > { %v1593_v8 = vmul.f32 2.0, %v1577_v16  ;;  %v1562_v4 = vmul.f32 %v1418_v34, %v1418_v34  ;;  %v1751_v1 = vrot.slane %v1750_v11, 2  ;;  %v1761_v41 = vrot.slane %v1735_v36, 4  ;;  %vm593_vm14 = vmand %vm504_vm12, %vm5811_vm6 }
 0x144   : > { %v1734_v45 = vsel %vm5827_vm8, %v1606_v18, 0.0  ;;  %v1563_v46 = vmul.f32 %v1419_v57, %v1419_v57  ;;  %v1608_v19 = vadd.f32 %v1592_v38, %v5554_v35  ;;  %v1403_v58 = vsel %vm1011_vm4, %v1382_v42, %v5848_v30 }
 0x145   : > { %v1755_v15 = vrot.slane %v1734_v45, 4  ;;  %v1609_v60 = vadd.f32 %v1593_v8, %v5567_v37  ;;  %v1578_v39 = vadd.f32 %v1562_v4, %v5445_v51  ;;  %v1752_v5 = vadd.f32 %v1751_v1, %v1750_v11  ;;  %v7329_v37 = vld [vmem:[#allocation69_spill] sm:$0xff] }
 0x146   : > { %v1762_v59 = vadd.f32 %v1761_v41, %v1735_v36  ;;  %v1579_v16 = vadd.f32 %v1563_v46, %v5448_v28  ;;  %v1736_v17 = vsel %vm5844_vm9, %v1608_v19, 0.0  ;;  %v7315_v35 = vrot.slane %v4822_v6, %v4294_v12  ;;  %v7321_v41 = vld [vmem:[#allocation67_spill] sm:$0xff] }
 0x147   : > { %v1756_v26 = vadd.f32 %v1755_v15, %v1734_v45  ;;  %v1737_v57 = vsel %vm591_vm10, %v1609_v60, 0.0  ;;  %v1594_v34 = vmul.f32 2.0, %v1578_v39  ;;  %v1753_v51 = vrot.slane %v1752_v5, 1 }
 0x148   : > { %vm5868_vm5 = vcmp.eq.s32.totalorder %v7315_v35, 1  ;;  %v1763_v36 = vrot.slane %v1762_v59, 2  ;;  %v1767_v28 = vrot.slane %v1736_v17, 4  ;;  %v1773_v9 = vrot.slane %v1737_v57, 4 }
 0x149   : > { %v1757_v11 = vrot.slane %v1756_v26, 2  ;;  %v1595_v18 = vmul.f32 2.0, %v1579_v16  ;;  %v1610_v3 = vadd.f32 %v1594_v34, %v5570_v7  ;;  %v7318_v6 = vrot.slane %v5289_v27, %v3875_v23  ;;  %v7322_v16 = vld [vmem:[#allocation70_spill] sm:$0xff]  ;;  %vm594_vm1 = vmand %vm504_vm12, %vm5868_vm5 }
 0x14a   : > { %v1404_v38 = vsel %vm1011_vm4, %v1380_v10, %v1382_v42  ;;  %v1754_v8 = vadd.f32 %v1753_v51, %v1752_v5  ;;  %v1764_v4 = vadd.f32 %v1763_v36, %v1762_v59  ;;  %v1768_v61 = vadd.f32 %v1767_v28, %v1736_v17  ;;  %v1388_v10 = vpop.permute.xlu1 %1387  ;;  %v1386_v42 = vpop.permute.xlu0 %1385 }
 0x14b   : > { %vm5880_vm13 = vcmp.eq.s32.totalorder %v7318_v6, 1  ;;  %v1774_v1 = vadd.f32 %v1773_v9, %v1737_v57  ;;  %v1758_v7 = vadd.f32 %v1757_v11, %v1756_v26  ;;  %v1611_v45 = vadd.f32 %v1595_v18, %v5577_v62 }
 0x14c   : > { %v1738_v23 = vsel %vm592_vm11, %v1610_v3, 0.0  ;;  %v1420_v46 = vsub.f32 %v1404_v38, %v7321_v41  ;;  %v1765_v15 = vrot.slane %v1764_v4, 1  ;;  %v1769_v19 = vrot.slane %v1768_v61, 2  ;;  %vm595_vm2 = vmand %vm504_vm12, %vm5880_vm13 }
 0x14d   : > { %v1775_v60 = vrot.slane %v1774_v1, 2  ;;  %v1779_v39 = vrot.slane %v1738_v23, 4  ;;  %v1759_v5 = vrot.slane %v1758_v7, 1  ;;  %v1739_v59 = vsel %vm593_vm14, %v1611_v45, 0.0 }
 0x14e   : > { %v1421_v17 = vsub.f32 %v1403_v58, %v7322_v16  ;;  %v1564_v20 = vmul.f32 %v1420_v46, %v1420_v46  ;;  %v1766_v57 = vadd.f32 %v1765_v15, %v1764_v4  ;;  %v1770_v34 = vadd.f32 %v1769_v19, %v1768_v61  ;;  %v1390_v41 = vpop.permute.xlu0 %1389 }
 0x14f   : > { %v1776_v35 = vadd.f32 %v1775_v60, %v1774_v1  ;;  %v1780_v26 = vadd.f32 %v1779_v39, %v1738_v23  ;;  %v1760_v51 = vadd.f32 %v1759_v5, %v1758_v7  ;;  %v1785_v62 = vrot.slane %v1739_v59, 4 }
 0x150   : > { %v1565_v36 = vmul.f32 %v1421_v17, %v1421_v17  ;;  %v1580_v28 = vadd.f32 %v1564_v20, %v5457_v22  ;;  %v1771_v9 = vrot.slane %v1770_v34, 1  ;;  %v7323_v3 = vrot.slane %v5289_v27, %v7202_v29 }
 0x151   : > { %v1777_v11 = vrot.slane %v1776_v35, 1  ;;  %v1781_v18 = vrot.slane %v1780_v26, 2  ;;  %v1401_v58 = vsel %vm1011_vm4, %v1386_v42, %v1388_v10  ;;  %v1988_v38 = vcombine.low %v1754_v8, %v1760_v51  ;;  %v1392_v8 = vpop.permute.xlu1 %1391 }
 0x152   : > { %vm5897_vm15 = vcmp.eq.s32.totalorder %v7323_v3, 1  ;;  %v1786_v4 = vadd.f32 %v1785_v62, %v1739_v59  ;;  %v1581_v61 = vadd.f32 %v1565_v36, %v5460_v54  ;;  %v1596_v1 = vmul.f32 2.0, %v1580_v28  ;;  %v7330_v59 = vld [vmem:[#allocation76_spill] sm:$0xff] }
 0x153   : > { %v7326_v22 = vrot.slane %v5289_v27, %v7210_v44  ;;  %v1772_v29 = vadd.f32 %v1771_v9, %v1770_v34  ;;  %v1778_v45 = vadd.f32 %v1777_v11, %v1776_v35  ;;  %v1782_v23 = vadd.f32 %v1781_v18, %v1780_v26  ;;  %vm5960_vm7 = vmand %vm504_vm12, %vm5897_vm15 }
 0x154   : > { %v1402_v54 = vsel %vm1011_vm4, %v5848_v30, %v1386_v42  ;;  %v1998_v44 = vrot.slane %v1988_v38, %v7103_v50  ;;  %v1787_v46 = vrot.slane %v1786_v4, 2  ;;  %v1597_v15 = vmul.f32 2.0, %v1581_v61  ;;  %v7337_v38 = vld [vmem:[#allocation43_spill] sm:$0xff]  ;;  %v7338_v61 = vld [vmem:[#allocation36_spill] sm:$0xff] }
 0x155   : > { %vm5907_vm0 = vcmp.eq.s32.totalorder %v7326_v22, 1  ;;  %v1612_v19 = vadd.f32 %v1596_v1, %v5584_v53  ;;  %v1989_v60 = vcombine.low %v1766_v57, %v1772_v29  ;;  %v1783_v39 = vrot.slane %v1782_v23, 1  ;;  %v1396_v29 = vpop.permute.xlu1 %1395  ;;  %v7360_v53 = vld [vmem:[#allocation109_spill] sm:$0xff] }
 0x156   : > { %v1422_v5 = vsub.f32 %v1402_v54, %v7329_v37  ;;  %v1423_v16 = vsub.f32 %v1401_v58, %v7330_v59  ;;  %v1788_v30 = vadd.f32 %v1787_v46, %v1786_v4  ;;  %v1613_v42 = vadd.f32 %v1597_v15, %v5599_v24  ;;  %vm597_vm9 = vmand %vm504_vm12, %vm5907_vm0  ;;  %v7346_v59 = vld [vmem:[#allocation106_spill] sm:$0xff] }
 0x157   : > { %v1740_v17 = vsel %vm594_vm1, %v1612_v19, 0.0  ;;  %v7331_v20 = vrot.slane %v5289_v27, %v7211_v48  ;;  %v1399_v14 = vsel %vm1011_vm4, %v1390_v41, %v1392_v8  ;;  %v2005_v57 = vrot.slane %v1989_v60, %v7103_v50 }
 0x158   : > { %v1784_v34 = vadd.f32 %v1783_v39, %v1782_v23  ;;  %v1791_v35 = vrot.slane %v1740_v17, 4  ;;  %v1566_v26 = vmul.f32 %v1422_v5, %v1422_v5  ;;  %v1789_v51 = vrot.slane %v1788_v30, 1  ;;  %v1394_v39 = vpop.permute.xlu0 %1393 }
 0x159   : > { %vm5930_vm3 = vcmp.eq.s32.totalorder %v7331_v20, 1  ;;  %v1741_v62 = vsel %vm595_vm2, %v1613_v42, 0.0  ;;  %v1567_v36 = vmul.f32 %v1423_v16, %v1423_v16  ;;  %v7334_v24 = vrot.slane %v5289_v27, %v7214_v31  ;;  %v7339_v31 = vld [vmem:[#allocation75_spill] sm:$0xff]  ;;  %v7348_v42 = vld [vmem:[#allocation41_spill] sm:$0xff] }
 0x15a   : > { %v1400_v28 = vsel %vm1011_vm4, %v1388_v10, %v1390_v41  ;;  %v2020_v9 = vcombine.low %v1998_v44, %v2005_v57  ;;  %v1990_v11 = vcombine.low %v1778_v45, %v1784_v34  ;;  %v1792_v18 = vadd.f32 %v1791_v35, %v1740_v17  ;;  %v7342_v44 = vld [vmem:[#allocation79_spill] sm:$0xff]  ;;  %vm598_vm11 = vmand %vm504_vm12, %vm5930_vm3 }
 0x15b   : > { %vm5940_vm6 = vcmp.eq.s32.totalorder %v7334_v24, 1  ;;  %v1797_v3 = vrot.slane %v1741_v62, 4  ;;  %v5948_v58 = vadd.f32 %v5801_v25, %v5285_v63  ;;  %v1582_v4 = vadd.f32 %v1566_v26, %v7337_v38  ;;  %v7350_v26 = vld [vmem:[#allocation84_spill] sm:$0xff] }
 0x15c   : > { %v1583_v1 = vadd.f32 %v1567_v36, %v7338_v61  ;;  %v1424_v22 = vsub.f32 %v1400_v28, %v7339_v31  ;;  %v5954_v23 = vrot.slane %v2020_v9, %v7103_v50  ;;  %v1790_v54 = vadd.f32 %v1789_v51, %v1788_v30  ;;  %v7347_v30 = vld [vmem:[#allocation46_spill] sm:$0xff]  ;;  %v7354_v9 = vld [vmem:[#allocation101_spill] sm:$0xff]  ;;  %v7358_v31 = vld [vmem:[#allocation28_spill] sm:$0xff] }
 0x15d   : > { %v1793_v10 = vrot.slane %v1792_v18, 2  ;;  %v1798_v41 = vadd.f32 %v1797_v3, %v1741_v62  ;;  %v1598_v25 = vmul.f32 2.0, %v1582_v4  ;;  %v1425_v46 = vsub.f32 %v1399_v14, %v7342_v44  ;;  %v7349_v14 = vld [vmem:[#allocation100_spill] sm:$0xff]  ;;  %vm599_vm13 = vmand %vm504_vm12, %vm5940_vm6 }
 0x15e   : > { %v1599_v45 = vmul.f32 2.0, %v1583_v1  ;;  %v1568_v15 = vmul.f32 %v1424_v22, %v1424_v22  ;;  %v7343_v19 = vrot.slane %v5289_v27, %v4294_v12  ;;  %v2012_v6 = vrot.slane %v1990_v11, %v7103_v50 }
 0x15f   : > { %v1794_v37 = vadd.f32 %v1793_v10, %v1792_v18  ;;  %v1799_v5 = vrot.slane %v1798_v41, 2  ;;  %v1412_v16 = vsel %vm1011_vm4, %v1396_v29, %v7346_v59  ;;  %v1614_v12 = vadd.f32 %v1598_v25, %v7347_v30 }
 0x160   : > { %vm5968_vm8 = vcmp.eq.s32.totalorder %v7343_v19, 1  ;;  %v1615_v17 = vadd.f32 %v1599_v45, %v7348_v42  ;;  %v1569_v20 = vmul.f32 %v1425_v46, %v1425_v46  ;;  %v1584_v57 = vadd.f32 %v1568_v15, %v7349_v14  ;;  %v7362_v15 = vld [vmem:[#allocation87_spill] sm:$0xff] }
 0x161   : > { %v1795_v34 = vrot.slane %v1794_v37, 1  ;;  %v1800_v35 = vadd.f32 %v1799_v5, %v1798_v41  ;;  %v1428_v51 = vsub.f32 %v1412_v16, %v7350_v26  ;;  %v7351_v7 = vrot.slane %v5289_v27, %v4272_v13 }
 0x162   : > { %v1398_v36 = vsel %vm1011_vm4, %v1392_v8, %v1394_v39  ;;  %v1742_v24 = vsel %vm5960_vm7, %v1614_v12, 0.0  ;;  %v1743_v28 = vsel %vm597_vm9, %v1615_v17, 0.0  ;;  %v1585_v11 = vadd.f32 %v1569_v20, %v7354_v9  ;;  %v3531_v9 = vld [vmem:[%s3717_s26 + $0x1] ss:$4 sm:$0xff] }
 0x163   : > { %vm5987_vm10 = vcmp.eq.s32.totalorder %v7351_v7, 1  ;;  %v1600_v18 = vmul.f32 2.0, %v1584_v57  ;;  %v7355_v3 = vrot.slane %v5289_v27, %v7038_v32  ;;  %v1796_v13 = vadd.f32 %v1795_v34, %v1794_v37  ;;  %v7359_v32 = vld [vmem:[#allocation78_spill] sm:$0xff]  ;;  %v7363_v34 = vld [vmem:[#allocation57_spill] sm:$0xff] }
 0x164   : > { %v1803_v4 = vrot.slane %v1742_v24, 4  ;;  %v1809_v61 = vrot.slane %v1743_v28, 4  ;;  %v1397_v8 = vsel %vm1011_vm4, %v1394_v39, %v1396_v29  ;;  %v1601_v1 = vmul.f32 2.0, %v1585_v11  ;;  %vm602_vm4 = vmand %vm504_vm12, %vm5968_vm8 }
 0x165   : > { %vm5999_vm5 = vcmp.eq.s32.totalorder %v7355_v3, 1  ;;  %v1616_v22 = vadd.f32 %v1600_v18, %v7358_v31  ;;  %v1572_v10 = vmul.f32 %v1428_v51, %v1428_v51  ;;  %v1426_v27 = vsub.f32 %v1398_v36, %v7359_v32  ;;  %v7364_v51 = vld [vmem:[#allocation54_spill] sm:$0xff]  ;;  %vm6032_vm14 = vmand %vm504_vm12, %vm5987_vm10 }
 0x166   : > { %v1801_v41 = vrot.slane %v1800_v35, 1  ;;  %v1991_v63 = vcombine.low %v1790_v54, %v1796_v13  ;;  %v1804_v25 = vadd.f32 %v1803_v4, %v1742_v24  ;;  %v1810_v45 = vadd.f32 %v1809_v61, %v1743_v28  ;;  %vm601_vm15 = vmand %vm504_vm12, %vm5999_vm5 }
 0x167   : > { %v1617_v44 = vadd.f32 %v1601_v1, %v7360_v53  ;;  %v1744_v46 = vsel %vm598_vm11, %v1616_v22, 0.0  ;;  %v1588_v29 = vadd.f32 %v1572_v10, %v7361_v0  ;;  %v1427_v19 = vsub.f32 %v1397_v8, %v7362_v15 }
 0x168   : > { %v2019_v39 = vrot.slane %v1991_v63, %v7103_v50  ;;  %v1805_v37 = vrot.slane %v1804_v25, 2  ;;  %v1811_v5 = vrot.slane %v1810_v45, 2  ;;  %v1815_v59 = vrot.slane %v1744_v46, 4 }
 0x169   : > { %v1745_v54 = vsel %vm599_vm13, %v1617_v44, 0.0  ;;  %v1604_v16 = vmul.f32 2.0, %v1588_v29  ;;  %v1570_v30 = vmul.f32 %v1426_v27, %v1426_v27  ;;  %v1571_v48 = vmul.f32 %v1427_v19, %v1427_v19 }
 0x16a   : > { %v2021_v12 = vcombine.low %v2012_v6, %v2019_v39  ;;  %v1806_v42 = vadd.f32 %v1805_v37, %v1804_v25  ;;  %v1812_v17 = vadd.f32 %v1811_v5, %v1810_v45  ;;  %v1816_v20 = vadd.f32 %v1815_v59, %v1744_v46 }
 0x16b   : > { %v1821_v14 = vrot.slane %v1745_v54, 4  ;;  %v1620_v57 = vadd.f32 %v1604_v16, %v5799_v52  ;;  %v1586_v26 = vadd.f32 %v1570_v30, %v7363_v34  ;;  %v1587_v7 = vadd.f32 %v1571_v48, %v7364_v51 }
 0x16c   : > { %v1802_v36 = vadd.f32 %v1801_v41, %v1800_v35  ;;  %v2035_v24 = vrot.slane %v2021_v12, %v7103_v50  ;;  %v1807_v28 = vrot.slane %v1806_v42, 1  ;;  %v1817_v6 = vrot.slane %v1816_v20, 2 }
 0x16d   : > { %v1822_v11 = vadd.f32 %v1821_v14, %v1745_v54  ;;  %v1748_v18 = vsel %vm602_vm4, %v1620_v57, 0.0  ;;  %v1602_v52 = vmul.f32 2.0, %v1586_v26  ;;  %v1603_v3 = vmul.f32 2.0, %v1587_v7 }
 0x16e   : > { %v2036_v35 = vcombine.low %v5954_v23, %v2035_v24  ;;  %v1808_v13 = vadd.f32 %v1807_v28, %v1806_v42  ;;  %v1813_v4 = vrot.slane %v1812_v17, 1  ;;  %v1818_v61 = vadd.f32 %v1817_v6, %v1816_v20 }
 0x16f   : > { %v1839_v62 = vrot.slane %v1748_v18, 4  ;;  %v1618_v8 = vadd.f32 %v1602_v52, %v5836_v33  ;;  %v1619_v1 = vadd.f32 %v1603_v3, %v5948_v58  ;;  %v1823_v32 = vrot.slane %v1822_v11, 2 }
 0x170   : > { %v2088_v31 = vadd.f32 %v3531_v9, %v2036_v35  ;;  %v2037_v22 = vcombine.low %v1802_v36, %v1808_v13  ;;  %v1819_v10 = vrot.slane %v1818_v61, 1  ;;  %v1814_v63 = vadd.f32 %v1813_v4, %v1812_v17  ;;  %v3532_v36 = vld [vmem:[%s3717_s26 + $0x21] ss:$4 sm:$0xff] }
 0x171   : > { %v1840_v27 = vadd.f32 %v1839_v62, %v1748_v18  ;;  %v1746_v23 = vsel %vm6032_vm14, %v1618_v8, 0.0  ;;  %v1747_v41 = vsel %vm601_vm15, %v1619_v1, 0.0  ;;  %v1824_v53 = vadd.f32 %v1823_v32, %v1822_v11 }
 0x172   : > { %3533 = vst [vmem:[%s3717_s26 + $0x1] ss:$4 sm:$0xff] %v2088_v31  ;;  %v1820_v38 = vadd.f32 %v1819_v10, %v1818_v61  ;;  %v1827_v25 = vrot.slane %v1746_v23, 4  ;;  %v1833_v2 = vrot.slane %v1747_v41, 4  ;;  %v2047_v0 = vrot.slane %v2037_v22, %v7103_v50 }
 0x173   : > { %v1841_v45 = vrot.slane %v1840_v27, 2  ;;  %v1825_v37 = vrot.slane %v1824_v53, 1 }
 0x174   : > { %v2038_v44 = vcombine.low %v1814_v63, %v1820_v38  ;;  %v1828_v33 = vadd.f32 %v1827_v25, %v1746_v23  ;;  %v1834_v46 = vadd.f32 %v1833_v2, %v1747_v41 }
 0x175   : > { %v1842_v58 = vadd.f32 %v1841_v45, %v1840_v27  ;;  %v1826_v12 = vadd.f32 %v1825_v37, %v1824_v53 }
 0x176   : > { %v2054_v29 = vrot.slane %v2038_v44, %v7103_v50  ;;  %v1829_v15 = vrot.slane %v1828_v33, 2  ;;  %v1835_v19 = vrot.slane %v1834_v46, 2 }
 0x177   : > { %v1843_v39 = vrot.slane %v1842_v58, 1 }
 0x178   : > { %v2069_v5 = vcombine.low %v2047_v0, %v2054_v29  ;;  %v1830_v59 = vadd.f32 %v1829_v15, %v1828_v33  ;;  %v1836_v54 = vadd.f32 %v1835_v19, %v1834_v46 }
 0x179   : > { %v1844_v16 = vadd.f32 %v1843_v39, %v1842_v58 }
 0x17a   : > { %v1831_v30 = vrot.slane %v1830_v59, 1  ;;  %v1837_v48 = vrot.slane %v1836_v54, 1  ;;  %v2077_v51 = vrot.slane %v2069_v5, %v7103_v50 }
 0x17c   : > { %v1832_v42 = vadd.f32 %v1831_v30, %v1830_v59  ;;  %v1838_v17 = vadd.f32 %v1837_v48, %v1836_v54 }
 0x17e   : > { %v2039_v20 = vcombine.low %v1826_v12, %v1832_v42  ;;  %v2040_v14 = vcombine.low %v1838_v17, %v1844_v16 }
 0x180   : > { %v2061_v57 = vrot.slane %v2039_v20, %v7103_v50  ;;  %v2068_v34 = vrot.slane %v2040_v14, %v7103_v50 }
 0x182   : > { %v2070_v26 = vcombine.low %v2061_v57, %v2068_v34 }
 0x184   : > { %v2084_v7 = vrot.slane %v2070_v26, %v7103_v50 }
 0x186   : > { %v2085_v24 = vcombine.low %v2077_v51, %v2084_v7  ;;  %2174 = sbr.rel (%p3545_p13) target bundleno = 437 (0x1b5), region = 44 }
 0x188   : > { %v2089_v28 = vadd.f32 %v3532_v36, %v2085_v24 }
 0x18a   : > { %3534 = vst [vmem:[%s3717_s26 + $0x21] ss:$4 sm:$0xff] %v2089_v28 }
 0x18b   : > { %v7367_v6 = vld [vmem:[#allocation73_spill] sm:$0xff]  ;;  %v7368_v11 = vld [vmem:[#allocation42_spill] sm:$0xff]  ;;  %v7371_v50 = vld [vmem:[#allocation20_spill] sm:$0xff]  ;;  %v6073_v22 = vmul.f32 %v5749_v47, %v5749_v47  ;;  %v6077_v10 = vmul.f32 %v5754_v49, %v5754_v49  ;;  %v6081_v32 = vmul.f32 %v5758_v40, %v5758_v40  ;;  %v6085_v27 = vmul.f32 %v5762_v43, %v5762_v43 }
 0x18c   : > { %v2175_v9 = vmul.f32 %v7367_v6, %v7367_v6  ;;  %v2176_v18 = vmul.f32 %v7368_v11, %v7368_v11  ;;  %v7369_v60 = vld [vmem:[#allocation58_spill] sm:$0xff]  ;;  %v7370_v3 = vld [vmem:[#allocation49_spill] sm:$0xff]  ;;  %v2179_v13 = vmul.f32 %v7371_v50, %v7371_v50  ;;  %v7374_v1 = vld [vmem:[#allocation108_spill] sm:$0xff]  ;;  %v6089_v23 = vmul.f32 %v5769_v56, %v5769_v56 }
 0x18d   : > { %v2177_v52 = vmul.f32 %v7369_v60, %v7369_v60  ;;  %v2178_v35 = vmul.f32 %v7370_v3, %v7370_v3  ;;  %v7372_v4 = vld [vmem:[#allocation53_spill] sm:$0xff]  ;;  %v2182_v31 = vmul.f32 %v7374_v1, %v7374_v1  ;;  %v6093_v41 = vmul.f32 %v5773_v21, %v5773_v21 }
 0x18e   : > { %v2180_v61 = vmul.f32 %v7372_v4, %v7372_v4  ;;  %v7373_v62 = vld [vmem:[#allocation45_spill] sm:$0xff]  ;;  %v6097_v63 = vmul.f32 %v5785_v55, %v5785_v55  ;;  %v2207_v2 = vrot.slane %v2175_v9, 4  ;;  %v2213_v45 = vrot.slane %v2176_v18, 4 }
 0x18f   : > { %v2181_v8 = vmul.f32 %v7373_v62, %v7373_v62  ;;  %v7375_v38 = vld [vmem:[#allocation81_spill] sm:$0xff]  ;;  %v2219_v53 = vrot.slane %v2177_v52, 4  ;;  %v2225_v44 = vrot.slane %v2178_v35, 4  ;;  %v2231_v33 = vrot.slane %v2179_v13, 4 }
 0x190   : > { %v6101_v25 = vmul.f32 %v7375_v38, %v7375_v38  ;;  %v2237_v46 = vrot.slane %v2180_v61, 4  ;;  %v2249_v0 = vrot.slane %v2182_v31, 4  ;;  %v2208_v29 = vadd.f32 %v2207_v2, %v2175_v9 }
 0x191   : > { %v2243_v58 = vrot.slane %v2181_v8, 4  ;;  %v2214_v15 = vadd.f32 %v2213_v45, %v2176_v18  ;;  %v2220_v19 = vadd.f32 %v2219_v53, %v2177_v52  ;;  %v2226_v39 = vadd.f32 %v2225_v44, %v2178_v35 }
 0x192   : > { %v2232_v37 = vadd.f32 %v2231_v33, %v2179_v13  ;;  %v2238_v5 = vadd.f32 %v2237_v46, %v2180_v61  ;;  %v2250_v54 = vadd.f32 %v2249_v0, %v2182_v31  ;;  %v2209_v16 = vrot.slane %v2208_v29, 2 }
 0x193   : > { %v2244_v59 = vadd.f32 %v2243_v58, %v2181_v8  ;;  %v2215_v30 = vrot.slane %v2214_v15, 2  ;;  %v2221_v48 = vrot.slane %v2220_v19, 2  ;;  %v2227_v12 = vrot.slane %v2226_v39, 2 }
 0x194   : > { %v2233_v42 = vrot.slane %v2232_v37, 2  ;;  %v2239_v17 = vrot.slane %v2238_v5, 2  ;;  %v2251_v14 = vrot.slane %v2250_v54, 2  ;;  %v2210_v57 = vadd.f32 %v2209_v16, %v2208_v29 }
 0x195   : > { %v2245_v20 = vrot.slane %v2244_v59, 2  ;;  %v2216_v34 = vadd.f32 %v2215_v30, %v2214_v15  ;;  %v2222_v26 = vadd.f32 %v2221_v48, %v2220_v19  ;;  %v2228_v51 = vadd.f32 %v2227_v12, %v2226_v39 }
 0x196   : > { %v2234_v7 = vadd.f32 %v2233_v42, %v2232_v37  ;;  %v2240_v36 = vadd.f32 %v2239_v17, %v2238_v5  ;;  %v2252_v28 = vadd.f32 %v2251_v14, %v2250_v54  ;;  %v2211_v6 = vrot.slane %v2210_v57, 1 }
 0x197   : > { %v2246_v24 = vadd.f32 %v2245_v20, %v2244_v59  ;;  %v2217_v9 = vrot.slane %v2216_v34, 1  ;;  %v2223_v11 = vrot.slane %v2222_v26, 1  ;;  %v2229_v18 = vrot.slane %v2228_v51, 1 }
 0x198   : > { %v2235_v60 = vrot.slane %v2234_v7, 1  ;;  %v2241_v52 = vrot.slane %v2240_v36, 1  ;;  %v2253_v35 = vrot.slane %v2252_v28, 1  ;;  %v6103_v50 = vadd.f32 %v2211_v6, %v2210_v57 }
 0x199   : > { %v2247_v3 = vrot.slane %v2246_v24, 1  ;;  %v6105_v13 = vadd.f32 %v2217_v9, %v2216_v34  ;;  %v6107_v4 = vadd.f32 %v2223_v11, %v2222_v26  ;;  %v6109_v61 = vadd.f32 %v2229_v18, %v2228_v51 }
 0x19a   : > { %v6111_v62 = vadd.f32 %v2235_v60, %v2234_v7  ;;  %v2242_v8 = vadd.f32 %v2241_v52, %v2240_v36  ;;  %v2254_v31 = vadd.f32 %v2253_v35, %v2252_v28  ;;  %v2255_v38 = vrot.slane %v6073_v22, 4 }
 0x19b   : > { %v2248_v1 = vadd.f32 %v2247_v3, %v2246_v24  ;;  %v2261_v2 = vrot.slane %v6077_v10, 4  ;;  %v2267_v45 = vrot.slane %v6081_v32, 4  ;;  %v2273_v53 = vrot.slane %v6085_v27, 4 }
 0x19c   : > { %v2279_v44 = vrot.slane %v6089_v23, 4  ;;  %v2285_v33 = vrot.slane %v6093_v41, 4  ;;  %v2291_v46 = vrot.slane %v6097_v63, 4  ;;  %v2297_v58 = vrot.slane %v6101_v25, 4 }
 0x19d   : > { %v2256_v0 = vadd.f32 %v2255_v38, %v6073_v22  ;;  %v2262_v29 = vadd.f32 %v2261_v2, %v6077_v10  ;;  %v2268_v15 = vadd.f32 %v2267_v45, %v6081_v32  ;;  %v2274_v19 = vadd.f32 %v2273_v53, %v6085_v27 }
 0x19e   : > { %v2280_v39 = vadd.f32 %v2279_v44, %v6089_v23  ;;  %v2286_v37 = vadd.f32 %v2285_v33, %v6093_v41  ;;  %v2292_v5 = vadd.f32 %v2291_v46, %v6097_v63  ;;  %v2298_v59 = vadd.f32 %v2297_v58, %v6101_v25  ;;  %v7376_v58 = vld [vmem:[#allocation83_spill] sm:$0xff] }
 0x19f   : > { %v2257_v54 = vrot.slane %v2256_v0, 2  ;;  %v2263_v16 = vrot.slane %v2262_v29, 2  ;;  %v2269_v30 = vrot.slane %v2268_v15, 2  ;;  %v2275_v48 = vrot.slane %v2274_v19, 2 }
 0x1a0   : > { %v2281_v12 = vrot.slane %v2280_v39, 2  ;;  %v2287_v22 = vrot.slane %v2286_v37, 2  ;;  %v2293_v42 = vrot.slane %v2292_v5, 2  ;;  %v2299_v10 = vrot.slane %v2298_v59, 2 }
 0x1a1   : > { %v2258_v17 = vadd.f32 %v2257_v54, %v2256_v0  ;;  %v2264_v32 = vadd.f32 %v2263_v16, %v2262_v29  ;;  %v2270_v20 = vadd.f32 %v2269_v30, %v2268_v15  ;;  %v2276_v27 = vadd.f32 %v2275_v48, %v2274_v19  ;;  %v3547_v16 = vld [vmem:[%s3717_s26 + $0x22] ss:$4 sm:$0xff] }
 0x1a2   : > { %v2282_v14 = vadd.f32 %v2281_v12, %v2280_v39  ;;  %v2288_v23 = vadd.f32 %v2287_v22, %v2286_v37  ;;  %v2294_v57 = vadd.f32 %v2293_v42, %v2292_v5  ;;  %v2300_v41 = vadd.f32 %v2299_v10, %v2298_v59  ;;  %v3546_v5 = vld [vmem:[%s3717_s26 + $0x2] ss:$4 sm:$0xff] }
 0x1a3   : > { %v2259_v34 = vrot.slane %v2258_v17, 1  ;;  %v2265_v63 = vrot.slane %v2264_v32, 1  ;;  %v2271_v26 = vrot.slane %v2270_v20, 1  ;;  %v2277_v25 = vrot.slane %v2276_v27, 1 }
 0x1a4   : > { %v2283_v51 = vrot.slane %v2282_v14, 1  ;;  %v2289_v7 = vrot.slane %v2288_v23, 1  ;;  %v2295_v36 = vrot.slane %v2294_v57, 1  ;;  %v2301_v24 = vrot.slane %v2300_v41, 1 }
 0x1a5   : > { %v2260_v28 = vadd.f32 %v2259_v34, %v2258_v17  ;;  %v2266_v6 = vadd.f32 %v2265_v63, %v2264_v32  ;;  %v2272_v9 = vadd.f32 %v2271_v26, %v2270_v20  ;;  %v2278_v11 = vadd.f32 %v2277_v25, %v2276_v27 }
 0x1a6   : > { %v2284_v18 = vadd.f32 %v2283_v51, %v2282_v14  ;;  %v2290_v60 = vadd.f32 %v2289_v7, %v2288_v23  ;;  %v2296_v52 = vadd.f32 %v2295_v36, %v2294_v57  ;;  %v2302_v3 = vadd.f32 %v2301_v24, %v2300_v41 }
 0x1a7   : > { %v2323_v35 = vcombine.low %v6103_v50, %v6105_v13  ;;  %v2324_v38 = vcombine.low %v6107_v4, %v6109_v61  ;;  %v2325_v2 = vcombine.low %v6111_v62, %v2242_v8  ;;  %v2326_v45 = vcombine.low %v2248_v1, %v2254_v31 }
 0x1a8   : > { %v2372_v53 = vcombine.low %v2260_v28, %v2266_v6  ;;  %v2373_v44 = vcombine.low %v2272_v9, %v2278_v11  ;;  %v2374_v33 = vcombine.low %v2284_v18, %v2290_v60  ;;  %v2375_v46 = vcombine.low %v2296_v52, %v2302_v3 }
 0x1a9   : > { %v2333_v0 = vrot.slane %v2323_v35, %v7376_v58  ;;  %v2340_v29 = vrot.slane %v2324_v38, %v7376_v58  ;;  %v2347_v15 = vrot.slane %v2325_v2, %v7376_v58  ;;  %v2354_v50 = vrot.slane %v2326_v45, %v7376_v58 }
 0x1aa   : > { %v2382_v13 = vrot.slane %v2372_v53, %v7376_v58  ;;  %v2389_v4 = vrot.slane %v2373_v44, %v7376_v58  ;;  %v2396_v61 = vrot.slane %v2374_v33, %v7376_v58  ;;  %v2403_v62 = vrot.slane %v2375_v46, %v7376_v58 }
 0x1ab   : > { %v2355_v8 = vcombine.low %v2333_v0, %v2340_v29  ;;  %v2356_v1 = vcombine.low %v2347_v15, %v2354_v50 }
 0x1ac   : > { %v2404_v31 = vcombine.low %v2382_v13, %v2389_v4  ;;  %v2405_v19 = vcombine.low %v2396_v61, %v2403_v62 }
 0x1ad   : > { %v2363_v39 = vrot.slane %v2355_v8, %v7376_v58  ;;  %v2370_v37 = vrot.slane %v2356_v1, %v7376_v58 }
 0x1ae   : > { %v2412_v59 = vrot.slane %v2404_v31, %v7376_v58  ;;  %v2419_v54 = vrot.slane %v2405_v19, %v7376_v58 }
 0x1af   : > { %v2371_v30 = vcombine.low %v2363_v39, %v2370_v37 }
 0x1b0   : > { %v2420_v48 = vcombine.low %v2412_v59, %v2419_v54 }
 0x1b1   : > { %v2423_v12 = vadd.f32 %v3546_v5, %v2371_v30 }
 0x1b2   : > { %v2424_v22 = vadd.f32 %v3547_v16, %v2420_v48 }
 0x1b3   : > { %3548 = vst [vmem:[%s3717_s26 + $0x2] ss:$4 sm:$0xff] %v2423_v12 }
 0x1b4   : > { %3549 = vst [vmem:[%s3717_s26 + $0x22] ss:$4 sm:$0xff] %v2424_v22 }
 0x1b5 PF: > { %p3550_p0 = scmp.lt.s32.totalorder %s3637_s12, 2 }
 0x1b7   : > { %2430 = sbr.rel (%p3550_p0) target bundleno = 501 (0x1f5), region = 48 }
 0x1bc   : > { %v7377_v42 = vld [vmem:[#allocation93_spill] sm:$0xff]  ;;  %v7378_v10 = vld [vmem:[#allocation32_spill] sm:$0xff]  ;;  %v7379_v32 = vld [vmem:[#allocation94_spill] sm:$0xff] }
 0x1bd   : > { %v2431_v17 = vsub.f32 %v7378_v10, %v7377_v42  ;;  %v7380_v20 = vld [vmem:[#allocation103_spill] sm:$0xff]  ;;  %v7382_v23 = vld [vmem:[#allocation104_spill] sm:$0xff]  ;;  %v7384_v34 = vld [vmem:[#allocation105_spill] sm:$0xff] }
 0x1be   : > { %v2432_v27 = vsub.f32 %v7380_v20, %v7379_v32  ;;  %v7381_v14 = vld [vmem:[#allocation95_spill] sm:$0xff]  ;;  %v7383_v41 = vld [vmem:[#allocation96_spill] sm:$0xff]  ;;  %v7385_v26 = vld [vmem:[#allocation97_spill] sm:$0xff] }
 0x1bf   : > { %v2433_v57 = vsub.f32 %v7382_v23, %v7381_v14  ;;  %v2434_v63 = vsub.f32 %v7384_v34, %v7383_v41  ;;  %v7386_v25 = vld [vmem:[#allocation107_spill] sm:$0xff]  ;;  %v7387_v7 = vld [vmem:[#allocation98_spill] sm:$0xff]  ;;  %v7388_v36 = vld [vmem:[#allocation44_spill] sm:$0xff] }
 0x1c0   : > { %v2435_v51 = vsub.f32 %v7386_v25, %v7385_v26  ;;  %v2436_v24 = vsub.f32 %v7388_v36, %v7387_v7  ;;  %v7389_v28 = vld [vmem:[#allocation99_spill] sm:$0xff]  ;;  %v7391_v11 = vld [vmem:[#allocation30_spill] sm:$0xff]  ;;  %v7393_v52 = vld [vmem:[#allocation29_spill] sm:$0xff] }
 0x1c1   : > { %v7390_v6 = vld [vmem:[#allocation39_spill] sm:$0xff]  ;;  %v7392_v18 = vld [vmem:[#allocation74_spill] sm:$0xff]  ;;  %v7395_v38 = vld [vmem:[#allocation37_spill] sm:$0xff] }
 0x1c2   : > { %v2437_v9 = vsub.f32 %v7390_v6, %v7389_v28  ;;  %v2438_v60 = vsub.f32 %v7392_v18, %v7391_v11  ;;  %v7394_v3 = vld [vmem:[#allocation50_spill] sm:$0xff]  ;;  %v7396_v2 = vld [vmem:[#allocation64_spill] sm:$0xff]  ;;  %v7398_v44 = vld [vmem:[#allocation55_spill] sm:$0xff] }
 0x1c3   : > { %v2439_v35 = vsub.f32 %v7394_v3, %v7393_v52  ;;  %v2440_v45 = vsub.f32 %v7396_v2, %v7395_v38  ;;  %v7397_v53 = vld [vmem:[#allocation114_spill] sm:$0xff]  ;;  %v7399_v46 = vld [vmem:[#allocation115_spill] sm:$0xff]  ;;  %v7401_v29 = vld [vmem:[#allocation116_spill] sm:$0xff] }
 0x1c4   : > { %v2441_v33 = vsub.f32 %v7398_v44, %v7397_v53  ;;  %v7400_v58 = vld [vmem:[#allocation31_spill] sm:$0xff]  ;;  %v7402_v15 = vld [vmem:[#allocation56_spill] sm:$0xff]  ;;  %v7403_v13 = vld [vmem:[#allocation117_spill] sm:$0xff] }
 0x1c5   : > { %v2442_v0 = vsub.f32 %v7400_v58, %v7399_v46  ;;  %v2443_v50 = vsub.f32 %v7402_v15, %v7401_v29  ;;  %v7404_v4 = vld [vmem:[#allocation110_spill] sm:$0xff]  ;;  %v7406_v8 = vld [vmem:[#allocation111_spill] sm:$0xff]  ;;  %v7408_v19 = vld [vmem:[#allocation72_spill] sm:$0xff]  ;;  %v2455_v34 = vsub.f32 %v5749_v47, %v2439_v35  ;;  %v2456_v26 = vsub.f32 %v5754_v49, %v2440_v45 }
 0x1c6   : > { %v2444_v61 = vsub.f32 %v7404_v4, %v7403_v13  ;;  %v7405_v62 = vld [vmem:[#allocation118_spill] sm:$0xff]  ;;  %v7407_v31 = vld [vmem:[#allocation119_spill] sm:$0xff]  ;;  %v7409_v37 = vld [vmem:[#allocation73_spill] sm:$0xff] }
 0x1c7   : > { %v2445_v1 = vsub.f32 %v7406_v8, %v7405_v62  ;;  %v2446_v39 = vsub.f32 %v7408_v19, %v7407_v31  ;;  %v2447_v5 = vsub.f32 %v7409_v37, %v2431_v17  ;;  %v7410_v59 = vld [vmem:[#allocation42_spill] sm:$0xff]  ;;  %v7412_v48 = vld [vmem:[#allocation49_spill] sm:$0xff]  ;;  %v7413_v22 = vld [vmem:[#allocation20_spill] sm:$0xff]  ;;  %v2457_v17 = vsub.f32 %v5758_v40, %v2441_v33 }
 0x1c8   : > { %v2448_v54 = vsub.f32 %v7410_v59, %v2432_v27  ;;  %v7411_v16 = vld [vmem:[#allocation58_spill] sm:$0xff]  ;;  %v2450_v12 = vsub.f32 %v7412_v48, %v2434_v63  ;;  %v2451_v42 = vsub.f32 %v7413_v22, %v2435_v51  ;;  %v7414_v10 = vld [vmem:[#allocation53_spill] sm:$0xff]  ;;  %v7416_v23 = vld [vmem:[#allocation108_spill] sm:$0xff]  ;;  %v2458_v27 = vsub.f32 %v5762_v43, %v2442_v0 }
 0x1c9   : > { %v2449_v30 = vsub.f32 %v7411_v16, %v2433_v57  ;;  %v2452_v32 = vsub.f32 %v7414_v10, %v2436_v24  ;;  %v7415_v20 = vld [vmem:[#allocation45_spill] sm:$0xff]  ;;  %v2454_v41 = vsub.f32 %v7416_v23, %v2438_v60  ;;  %v2459_v57 = vsub.f32 %v5769_v56, %v2443_v50 }
 0x1ca   : > { %v2453_v14 = vsub.f32 %v7415_v20, %v2437_v9  ;;  %v2460_v63 = vsub.f32 %v5773_v21, %v2444_v61  ;;  %v2461_v25 = vsub.f32 %v5785_v55, %v2445_v1  ;;  %v7417_v51 = vld [vmem:[#allocation81_spill] sm:$0xff]  ;;  %v2463_v36 = vmul.f32 %v2447_v5, %v2447_v5 }
 0x1cb   : > { %v2462_v7 = vsub.f32 %v7417_v51, %v2446_v39  ;;  %v2464_v24 = vmul.f32 %v2448_v54, %v2448_v54  ;;  %v2465_v28 = vmul.f32 %v2449_v30, %v2449_v30  ;;  %v2466_v6 = vmul.f32 %v2450_v12, %v2450_v12 }
 0x1cc   : > { %v2467_v9 = vmul.f32 %v2451_v42, %v2451_v42  ;;  %v2468_v11 = vmul.f32 %v2452_v32, %v2452_v32  ;;  %v2469_v18 = vmul.f32 %v2453_v14, %v2453_v14  ;;  %v2470_v60 = vmul.f32 %v2454_v41, %v2454_v41 }
 0x1cd   : > { %v6199_v52 = vmul.f32 %v2455_v34, %v2455_v34  ;;  %v6201_v3 = vmul.f32 %v2456_v26, %v2456_v26  ;;  %v6203_v35 = vmul.f32 %v2457_v17, %v2457_v17  ;;  %v6205_v38 = vmul.f32 %v2458_v27, %v2458_v27 }
 0x1ce   : > { %v6207_v2 = vmul.f32 %v2459_v57, %v2459_v57  ;;  %v6209_v45 = vmul.f32 %v2460_v63, %v2460_v63  ;;  %v6211_v53 = vmul.f32 %v2461_v25, %v2461_v25  ;;  %v6213_v44 = vmul.f32 %v2462_v7, %v2462_v7 }
 0x1cf   : > { %v2495_v33 = vrot.slane %v2463_v36, 4  ;;  %v2501_v46 = vrot.slane %v2464_v24, 4  ;;  %v2507_v58 = vrot.slane %v2465_v28, 4  ;;  %v2513_v0 = vrot.slane %v2466_v6, 4 }
 0x1d0   : > { %v2519_v29 = vrot.slane %v2467_v9, 4  ;;  %v2525_v15 = vrot.slane %v2468_v11, 4  ;;  %v2531_v50 = vrot.slane %v2469_v18, 4  ;;  %v2537_v13 = vrot.slane %v2470_v60, 4 }
 0x1d1   : > { %v2496_v4 = vadd.f32 %v2495_v33, %v2463_v36  ;;  %v2502_v61 = vadd.f32 %v2501_v46, %v2464_v24  ;;  %v2508_v62 = vadd.f32 %v2507_v58, %v2465_v28  ;;  %v2514_v8 = vadd.f32 %v2513_v0, %v2466_v6 }
 0x1d2   : > { %v2520_v1 = vadd.f32 %v2519_v29, %v2467_v9  ;;  %v2526_v31 = vadd.f32 %v2525_v15, %v2468_v11  ;;  %v2532_v19 = vadd.f32 %v2531_v50, %v2469_v18  ;;  %v2538_v39 = vadd.f32 %v2537_v13, %v2470_v60 }
 0x1d3   : > { %v2497_v37 = vrot.slane %v2496_v4, 2  ;;  %v2503_v5 = vrot.slane %v2502_v61, 2  ;;  %v2509_v59 = vrot.slane %v2508_v62, 2  ;;  %v2515_v54 = vrot.slane %v2514_v8, 2 }
 0x1d4   : > { %v2521_v16 = vrot.slane %v2520_v1, 2  ;;  %v2527_v30 = vrot.slane %v2526_v31, 2  ;;  %v2533_v48 = vrot.slane %v2532_v19, 2  ;;  %v2539_v12 = vrot.slane %v2538_v39, 2 }
 0x1d5   : > { %v2498_v22 = vadd.f32 %v2497_v37, %v2496_v4  ;;  %v2504_v42 = vadd.f32 %v2503_v5, %v2502_v61  ;;  %v2510_v10 = vadd.f32 %v2509_v59, %v2508_v62  ;;  %v2516_v32 = vadd.f32 %v2515_v54, %v2514_v8 }
 0x1d6   : > { %v2522_v20 = vadd.f32 %v2521_v16, %v2520_v1  ;;  %v2528_v14 = vadd.f32 %v2527_v30, %v2526_v31  ;;  %v2534_v23 = vadd.f32 %v2533_v48, %v2532_v19  ;;  %v2540_v41 = vadd.f32 %v2539_v12, %v2538_v39 }
 0x1d7   : > { %v2499_v34 = vrot.slane %v2498_v22, 1  ;;  %v2505_v26 = vrot.slane %v2504_v42, 1  ;;  %v2511_v17 = vrot.slane %v2510_v10, 1  ;;  %v2517_v27 = vrot.slane %v2516_v32, 1 }
 0x1d8   : > { %v2523_v57 = vrot.slane %v2522_v20, 1  ;;  %v2529_v63 = vrot.slane %v2528_v14, 1  ;;  %v2535_v25 = vrot.slane %v2534_v23, 1  ;;  %v2541_v51 = vrot.slane %v2540_v41, 1 }
 0x1d9   : > { %v6215_v7 = vadd.f32 %v2499_v34, %v2498_v22  ;;  %v6217_v36 = vadd.f32 %v2505_v26, %v2504_v42  ;;  %v6219_v24 = vadd.f32 %v2511_v17, %v2510_v10  ;;  %v6221_v28 = vadd.f32 %v2517_v27, %v2516_v32 }
 0x1da   : > { %v6223_v6 = vadd.f32 %v2523_v57, %v2522_v20  ;;  %v2530_v9 = vadd.f32 %v2529_v63, %v2528_v14  ;;  %v2536_v11 = vadd.f32 %v2535_v25, %v2534_v23  ;;  %v2542_v18 = vadd.f32 %v2541_v51, %v2540_v41 }
 0x1db   : > { %v2543_v60 = vrot.slane %v6199_v52, 4  ;;  %v2549_v33 = vrot.slane %v6201_v3, 4  ;;  %v2555_v46 = vrot.slane %v6203_v35, 4  ;;  %v2561_v58 = vrot.slane %v6205_v38, 4 }
 0x1dc   : > { %v2567_v0 = vrot.slane %v6207_v2, 4  ;;  %v2573_v29 = vrot.slane %v6209_v45, 4  ;;  %v2579_v15 = vrot.slane %v6211_v53, 4  ;;  %v2585_v50 = vrot.slane %v6213_v44, 4 }
 0x1dd   : > { %v2544_v13 = vadd.f32 %v2543_v60, %v6199_v52  ;;  %v2550_v4 = vadd.f32 %v2549_v33, %v6201_v3  ;;  %v2556_v61 = vadd.f32 %v2555_v46, %v6203_v35  ;;  %v2562_v62 = vadd.f32 %v2561_v58, %v6205_v38 }
 0x1de   : > { %v2568_v8 = vadd.f32 %v2567_v0, %v6207_v2  ;;  %v2574_v1 = vadd.f32 %v2573_v29, %v6209_v45  ;;  %v2580_v31 = vadd.f32 %v2579_v15, %v6211_v53  ;;  %v2586_v19 = vadd.f32 %v2585_v50, %v6213_v44  ;;  %v7418_v50 = vld [vmem:[#allocation83_spill] sm:$0xff] }
 0x1df   : > { %v2545_v39 = vrot.slane %v2544_v13, 2  ;;  %v2551_v37 = vrot.slane %v2550_v4, 2  ;;  %v2557_v5 = vrot.slane %v2556_v61, 2  ;;  %v2563_v59 = vrot.slane %v2562_v62, 2 }
 0x1e0   : > { %v2569_v54 = vrot.slane %v2568_v8, 2  ;;  %v2575_v52 = vrot.slane %v2574_v1, 2  ;;  %v2581_v16 = vrot.slane %v2580_v31, 2  ;;  %v2587_v3 = vrot.slane %v2586_v19, 2 }
 0x1e1   : > { %v2546_v30 = vadd.f32 %v2545_v39, %v2544_v13  ;;  %v2552_v35 = vadd.f32 %v2551_v37, %v2550_v4  ;;  %v2558_v48 = vadd.f32 %v2557_v5, %v2556_v61  ;;  %v2564_v38 = vadd.f32 %v2563_v59, %v2562_v62  ;;  %v3552_v37 = vld [vmem:[%s3717_s26 + $0x23] ss:$4 sm:$0xff] }
 0x1e2   : > { %v2570_v12 = vadd.f32 %v2569_v54, %v2568_v8  ;;  %v2576_v2 = vadd.f32 %v2575_v52, %v2574_v1  ;;  %v2582_v22 = vadd.f32 %v2581_v16, %v2580_v31  ;;  %v2588_v45 = vadd.f32 %v2587_v3, %v2586_v19  ;;  %v3551_v31 = vld [vmem:[%s3717_s26 + $0x3] ss:$4 sm:$0xff] }
 0x1e3   : > { %v2547_v42 = vrot.slane %v2546_v30, 1  ;;  %v2553_v53 = vrot.slane %v2552_v35, 1  ;;  %v2559_v10 = vrot.slane %v2558_v48, 1  ;;  %v2565_v44 = vrot.slane %v2564_v38, 1 }
 0x1e4   : > { %v2571_v32 = vrot.slane %v2570_v12, 1  ;;  %v2577_v20 = vrot.slane %v2576_v2, 1  ;;  %v2583_v14 = vrot.slane %v2582_v22, 1  ;;  %v2589_v23 = vrot.slane %v2588_v45, 1 }
 0x1e5   : > { %v2548_v41 = vadd.f32 %v2547_v42, %v2546_v30  ;;  %v2554_v34 = vadd.f32 %v2553_v53, %v2552_v35  ;;  %v2560_v26 = vadd.f32 %v2559_v10, %v2558_v48  ;;  %v2566_v17 = vadd.f32 %v2565_v44, %v2564_v38 }
 0x1e6   : > { %v2572_v27 = vadd.f32 %v2571_v32, %v2570_v12  ;;  %v2578_v57 = vadd.f32 %v2577_v20, %v2576_v2  ;;  %v2584_v63 = vadd.f32 %v2583_v14, %v2582_v22  ;;  %v2590_v25 = vadd.f32 %v2589_v23, %v2588_v45 }
 0x1e7   : > { %v2611_v51 = vcombine.low %v6215_v7, %v6217_v36  ;;  %v2612_v60 = vcombine.low %v6219_v24, %v6221_v28  ;;  %v2613_v33 = vcombine.low %v6223_v6, %v2530_v9  ;;  %v2614_v46 = vcombine.low %v2536_v11, %v2542_v18 }
 0x1e8   : > { %v2660_v58 = vcombine.low %v2548_v41, %v2554_v34  ;;  %v2661_v0 = vcombine.low %v2560_v26, %v2566_v17  ;;  %v2662_v29 = vcombine.low %v2572_v27, %v2578_v57  ;;  %v2663_v15 = vcombine.low %v2584_v63, %v2590_v25 }
 0x1e9   : > { %v2621_v13 = vrot.slane %v2611_v51, %v7418_v50  ;;  %v2628_v4 = vrot.slane %v2612_v60, %v7418_v50  ;;  %v2635_v61 = vrot.slane %v2613_v33, %v7418_v50  ;;  %v2642_v7 = vrot.slane %v2614_v46, %v7418_v50 }
 0x1ea   : > { %v2670_v36 = vrot.slane %v2660_v58, %v7418_v50  ;;  %v2677_v24 = vrot.slane %v2661_v0, %v7418_v50  ;;  %v2684_v28 = vrot.slane %v2662_v29, %v7418_v50  ;;  %v2691_v6 = vrot.slane %v2663_v15, %v7418_v50 }
 0x1eb   : > { %v2643_v9 = vcombine.low %v2621_v13, %v2628_v4  ;;  %v2644_v11 = vcombine.low %v2635_v61, %v2642_v7 }
 0x1ec   : > { %v2692_v18 = vcombine.low %v2670_v36, %v2677_v24  ;;  %v2693_v62 = vcombine.low %v2684_v28, %v2691_v6 }
 0x1ed   : > { %v2651_v8 = vrot.slane %v2643_v9, %v7418_v50  ;;  %v2658_v1 = vrot.slane %v2644_v11, %v7418_v50 }
 0x1ee   : > { %v2700_v19 = vrot.slane %v2692_v18, %v7418_v50  ;;  %v2707_v39 = vrot.slane %v2693_v62, %v7418_v50 }
 0x1ef   : > { %v2659_v5 = vcombine.low %v2651_v8, %v2658_v1 }
 0x1f0   : > { %v2708_v59 = vcombine.low %v2700_v19, %v2707_v39 }
 0x1f1   : > { %v2711_v54 = vadd.f32 %v3551_v31, %v2659_v5 }
 0x1f2   : > { %v2712_v52 = vadd.f32 %v3552_v37, %v2708_v59 }
 0x1f3   : > { %3553 = vst [vmem:[%s3717_s26 + $0x3] ss:$4 sm:$0xff] %v2711_v54 }
 0x1f4   : > { %3554 = vst [vmem:[%s3717_s26 + $0x23] ss:$4 sm:$0xff] %v2712_v52 }
 0x1f5 PF: > { %p3555_p1 = scmp.ne.s32.totalorder %s3637_s12, 3 }
 0x1f7   : > { %2718 = sbr.rel (%p3555_p1) target bundleno = 614 (0x266), region = 52 }
 0x1fc   : > { %v6263_v16 = vld [vmem:[#allocation3 + $0xb0] sm:$0xff]  ;;  %v6265_v3 = vld [vmem:[#allocation3] sm:$0xff]  ;;  %v6267_v30 = vld [vmem:[#allocation3 + $0xd8] sm:$0xff] }
 0x1fd   : > { %v6269_v35 = vld [vmem:[#allocation3 + $0x18] sm:$0xff]  ;;  %v6271_v48 = vld [vmem:[#allocation3 + $0x50] sm:$0xff]  ;;  %v6273_v38 = vld [vmem:[#allocation3 + $0x68] sm:$0xff] }
 0x1fe   : > { %v7419_v12 = vld [vmem:[#allocation4_spill] sm:$0xff]  ;;  %v7420_v22 = vld [vmem:[#allocation5_spill] sm:$0xff]  ;;  %v6283_v42 = vld [vmem:[#allocation3 + $0x30] sm:$0xff] }
 0x1ff   : > { %v6277_v2 = vsub.f32 %v6263_v16, %v7419_v12  ;;  %v6281_v45 = vsub.f32 %v6265_v3, %v7420_v22  ;;  %v6285_v53 = vld [vmem:[#allocation3 + $0x48] sm:$0xff]  ;;  %v6287_v10 = vld [vmem:[#allocation3 + $0x80] sm:$0xff]  ;;  %v7421_v44 = vld [vmem:[#allocation6_spill] sm:$0xff] }
 0x200   : > { %v6291_v32 = vsub.f32 %v6267_v30, %v7421_v44  ;;  %v7422_v20 = vld [vmem:[#allocation7_spill] sm:$0xff]  ;;  %v7423_v23 = vld [vmem:[#allocation8_spill] sm:$0xff]  ;;  %v7424_v34 = vld [vmem:[#allocation9_spill] sm:$0xff] }
 0x201   : > { %v6295_v14 = vsub.f32 %v6269_v35, %v7422_v20  ;;  %v6299_v41 = vsub.f32 %v6271_v48, %v7423_v23  ;;  %v6303_v26 = vsub.f32 %v6273_v38, %v7424_v34  ;;  %v6305_v17 = vld [vmem:[#allocation3 + $0x88] sm:$0xff]  ;;  %v6309_v57 = vld [vmem:[#allocation3 + $0xb8] sm:$0xff]  ;;  %v7425_v63 = vld [vmem:[#allocation10_spill] sm:$0xff]  ;;  %v2768_v58 = vmul.f32 %v6277_v2, %v6277_v2 }
 0x202   : > { %v6307_v27 = vld [vmem:[#allocation3 + $0xe8] sm:$0xff]  ;;  %v6313_v25 = vsub.f32 %v6283_v42, %v7425_v63  ;;  %v7427_v51 = vld [vmem:[#allocation11_spill] sm:$0xff]  ;;  %v7429_v33 = vld [vmem:[#allocation12_spill] sm:$0xff]  ;;  %v2769_v24 = vmul.f32 %v6281_v45, %v6281_v45  ;;  %v2770_v1 = vmul.f32 %v6291_v32, %v6291_v32 }
 0x203   : > { %v6317_v60 = vsub.f32 %v6285_v53, %v7427_v51  ;;  %v6321_v46 = vsub.f32 %v6287_v10, %v7429_v33  ;;  %v6325_v0 = vld [vmem:[#allocation3 + $0x60] sm:$0xff]  ;;  %v6327_v29 = vld [vmem:[#allocation3 + $0xf0] sm:$0xff]  ;;  %v6329_v15 = vld [vmem:[#allocation3 + $0x8] sm:$0xff]  ;;  %v2771_v39 = vmul.f32 %v6295_v14, %v6295_v14  ;;  %v2772_v37 = vmul.f32 %v6299_v41, %v6299_v41 }
 0x204   : > { %7426 = vst [vmem:[#allocation120_spill] sm:$0xff] %v6313_v25  ;;  %v7431_v50 = vld [vmem:[#allocation13_spill] sm:$0xff]  ;;  %v7433_v4 = vld [vmem:[#allocation14_spill] sm:$0xff]  ;;  %v7435_v7 = vld [vmem:[#allocation15_spill] sm:$0xff]  ;;  %v2773_v5 = vmul.f32 %v6303_v26, %v6303_v26  ;;  %v2774_v59 = vmul.f32 %v6313_v25, %v6313_v25  ;;  %v2800_v51 = vrot.slane %v2768_v58, 4  ;;  %v2806_v33 = vrot.slane %v2769_v24, 4 }
 0x205   : > { %7428 = vst [vmem:[#allocation121_spill] sm:$0xff] %v6317_v60  ;;  %7430 = vst [vmem:[#allocation122_spill] sm:$0xff] %v6321_v46  ;;  %v6333_v13 = vsub.f32 %v6305_v17, %v7431_v50  ;;  %v6337_v61 = vsub.f32 %v6307_v27, %v7433_v4  ;;  %v6341_v36 = vsub.f32 %v6309_v57, %v7435_v7  ;;  %v6345_v28 = vld [vmem:[#allocation3 + $0x78] sm:$0xff]  ;;  %v7437_v6 = vld [vmem:[#allocation16_spill] sm:$0xff]  ;;  %v2812_v50 = vrot.slane %v2770_v1, 4 }
 0x206   : > { %v6349_v9 = vsub.f32 %v6325_v0, %v7437_v6  ;;  %v7439_v11 = vld [vmem:[#allocation17_spill] sm:$0xff]  ;;  %v7441_v62 = vld [vmem:[#allocation18_spill] sm:$0xff]  ;;  %v7443_v31 = vld [vmem:[#allocation19_spill] sm:$0xff]  ;;  %v2775_v54 = vmul.f32 %v6317_v60, %v6317_v60  ;;  %v2776_v52 = vmul.f32 %v6321_v46, %v6321_v46  ;;  %v2818_v4 = vrot.slane %v2771_v39, 4 }
 0x207   : > { %7432 = vst [vmem:[#allocation123_spill] sm:$0xff] %v6333_v13  ;;  %7434 = vst [vmem:[#allocation124_spill] sm:$0xff] %v6337_v61  ;;  %v6353_v18 = vsub.f32 %v6327_v29, %v7439_v11  ;;  %v6357_v8 = vsub.f32 %v6329_v15, %v7441_v62  ;;  %v6363_v19 = vsub.f32 %v6345_v28, %v7443_v31  ;;  %v2824_v7 = vrot.slane %v2772_v37, 4 }
 0x208   : > { %7436 = vst [vmem:[#allocation125_spill] sm:$0xff] %v6341_v36  ;;  %7438 = vst [vmem:[#allocation126_spill] sm:$0xff] %v6349_v9  ;;  %v2777_v12 = vmul.f32 %v6333_v13, %v6333_v13  ;;  %v6381_v22 = vmul.f32 %v6337_v61, %v6337_v61  ;;  %v6385_v44 = vmul.f32 %v6341_v36, %v6341_v36  ;;  %v2830_v6 = vrot.slane %v2773_v5, 4 }
 0x209   : > { %7440 = vst [vmem:[#allocation127_spill] sm:$0xff] %v6353_v18  ;;  %7442 = vst [vmem:[#allocation128_spill] sm:$0xff] %v6357_v8  ;;  %v6389_v20 = vmul.f32 %v6349_v9, %v6349_v9  ;;  %v6393_v23 = vmul.f32 %v6353_v18, %v6353_v18  ;;  %v6397_v34 = vmul.f32 %v6357_v8, %v6357_v8  ;;  %v2836_v31 = vrot.slane %v2774_v59, 4 }
 0x20a   : > { %7444 = vst [vmem:[#allocation129_spill] sm:$0xff] %v6363_v19  ;;  %v6401_v63 = vmul.f32 %v6363_v19, %v6363_v19  ;;  %v2801_v11 = vadd.f32 %v2800_v51, %v2768_v58  ;;  %v2807_v62 = vadd.f32 %v2806_v33, %v2769_v24  ;;  %v2842_v55 = vrot.slane %v2775_v54, 4 }
 0x20b   : > { %v2813_v21 = vadd.f32 %v2812_v50, %v2770_v1  ;;  %v2819_v56 = vadd.f32 %v2818_v4, %v2771_v39  ;;  %v2825_v43 = vadd.f32 %v2824_v7, %v2772_v37  ;;  %v2831_v40 = vadd.f32 %v2830_v6, %v2773_v5 }
 0x20c   : > { %v2802_v49 = vrot.slane %v2801_v11, 2  ;;  %v2808_v47 = vrot.slane %v2807_v62, 2  ;;  %v2837_v8 = vadd.f32 %v2836_v31, %v2774_v59  ;;  %v2843_v18 = vadd.f32 %v2842_v55, %v2775_v54 }
 0x20d   : > { %v2814_v19 = vrot.slane %v2813_v21, 2  ;;  %v2820_v9 = vrot.slane %v2819_v56, 2  ;;  %v2826_v36 = vrot.slane %v2825_v43, 2  ;;  %v2832_v61 = vrot.slane %v2831_v40, 2 }
 0x20e   : > { %v2803_v13 = vadd.f32 %v2802_v49, %v2801_v11  ;;  %v2809_v46 = vadd.f32 %v2808_v47, %v2807_v62  ;;  %v2838_v60 = vrot.slane %v2837_v8, 2  ;;  %v2844_v25 = vrot.slane %v2843_v18, 2 }
 0x20f   : > { %v2815_v58 = vadd.f32 %v2814_v19, %v2813_v21  ;;  %v2821_v24 = vadd.f32 %v2820_v9, %v2819_v56  ;;  %v2827_v51 = vadd.f32 %v2826_v36, %v2825_v43  ;;  %v2833_v33 = vadd.f32 %v2832_v61, %v2831_v40 }
 0x210   : > { %v2804_v1 = vrot.slane %v2803_v13, 1  ;;  %v2810_v39 = vrot.slane %v2809_v46, 1  ;;  %v2839_v37 = vadd.f32 %v2838_v60, %v2837_v8  ;;  %v2845_v5 = vadd.f32 %v2844_v25, %v2843_v18 }
 0x211   : > { %v2816_v50 = vrot.slane %v2815_v58, 1  ;;  %v2822_v4 = vrot.slane %v2821_v24, 1  ;;  %v2828_v59 = vrot.slane %v2827_v51, 1  ;;  %v2834_v55 = vrot.slane %v2833_v33, 1 }
 0x212   : > { %v6403_v54 = vadd.f32 %v2804_v1, %v2803_v13  ;;  %v6405_v7 = vadd.f32 %v2810_v39, %v2809_v46  ;;  %v2840_v49 = vrot.slane %v2839_v37, 1  ;;  %v2846_v47 = vrot.slane %v2845_v5, 1 }
 0x213   : > { %v6407_v6 = vadd.f32 %v2816_v50, %v2815_v58  ;;  %v6409_v21 = vadd.f32 %v2822_v4, %v2821_v24  ;;  %v6411_v43 = vadd.f32 %v2828_v59, %v2827_v51  ;;  %v6413_v40 = vadd.f32 %v2834_v55, %v2833_v33 }
 0x214   : > { %v6415_v56 = vadd.f32 %v2840_v49, %v2839_v37  ;;  %v6417_v25 = vadd.f32 %v2846_v47, %v2845_v5  ;;  %v2848_v60 = vrot.slane %v2776_v52, 4  ;;  %v2854_v61 = vrot.slane %v2777_v12, 4 }
 0x215   : > { %v2860_v13 = vrot.slane %v6381_v22, 4  ;;  %v2866_v46 = vrot.slane %v6385_v44, 4  ;;  %v2872_v36 = vrot.slane %v6389_v20, 4  ;;  %v2878_v9 = vrot.slane %v6393_v23, 4 }
 0x216   : > { %v2849_v18 = vadd.f32 %v2848_v60, %v2776_v52  ;;  %v2855_v8 = vadd.f32 %v2854_v61, %v2777_v12  ;;  %v2884_v19 = vrot.slane %v6397_v34, 4  ;;  %v2890_v11 = vrot.slane %v6401_v63, 4 }
 0x217   : > { %v2861_v62 = vadd.f32 %v2860_v13, %v6381_v22  ;;  %v2867_v31 = vadd.f32 %v2866_v46, %v6385_v44  ;;  %v2873_v58 = vadd.f32 %v2872_v36, %v6389_v20  ;;  %v2879_v24 = vadd.f32 %v2878_v9, %v6393_v23 }
 0x218   : > { %v2850_v51 = vrot.slane %v2849_v18, 2  ;;  %v2856_v33 = vrot.slane %v2855_v8, 2  ;;  %v2885_v1 = vadd.f32 %v2884_v19, %v6397_v34  ;;  %v2891_v39 = vadd.f32 %v2890_v11, %v6401_v63 }
 0x219   : > { %v2862_v52 = vrot.slane %v2861_v62, 2  ;;  %v2868_v12 = vrot.slane %v2867_v31, 2  ;;  %v2874_v37 = vrot.slane %v2873_v58, 2  ;;  %v2880_v5 = vrot.slane %v2879_v24, 2 }
 0x21a   : > { %v2851_v50 = vadd.f32 %v2850_v51, %v2849_v18  ;;  %v2857_v4 = vadd.f32 %v2856_v33, %v2855_v8  ;;  %v2886_v59 = vrot.slane %v2885_v1, 2  ;;  %v2892_v22 = vrot.slane %v2891_v39, 2 }
 0x21b   : > { %v2863_v55 = vadd.f32 %v2862_v52, %v2861_v62  ;;  %v2869_v44 = vadd.f32 %v2868_v12, %v2867_v31  ;;  %v2875_v49 = vadd.f32 %v2874_v37, %v2873_v58  ;;  %v2881_v20 = vadd.f32 %v2880_v5, %v2879_v24  ;;  %v2737_v5 = vld [vmem:[#allocation3 + $0x58] sm:$0xff] }
 0x21c   : > { %v2852_v47 = vrot.slane %v2851_v50, 1  ;;  %v2858_v23 = vrot.slane %v2857_v4, 1  ;;  %v2887_v60 = vadd.f32 %v2886_v59, %v2885_v1  ;;  %v2893_v61 = vadd.f32 %v2892_v22, %v2891_v39  ;;  %v2736_v1 = vld [vmem:[#allocation3 + $0x38] sm:$0xff] }
 0x21d   : > { %v2864_v13 = vrot.slane %v2863_v55, 1  ;;  %v2870_v34 = vrot.slane %v2869_v44, 1  ;;  %v2876_v46 = vrot.slane %v2875_v49, 1  ;;  %v2882_v63 = vrot.slane %v2881_v20, 1 }
 0x21e   : > { %v2853_v36 = vadd.f32 %v2852_v47, %v2851_v50  ;;  %v2859_v9 = vadd.f32 %v2858_v23, %v2857_v4  ;;  %v2888_v19 = vrot.slane %v2887_v60, 1  ;;  %v2894_v11 = vrot.slane %v2893_v61, 1  ;;  %v2738_v50 = vld [vmem:[#allocation3 + $0x40] sm:$0xff]  ;;  %v7445_v4 = vld [vmem:[#allocation83_spill] sm:$0xff] }
 0x21f   : > { %v2865_v18 = vadd.f32 %v2864_v13, %v2863_v55  ;;  %v2871_v8 = vadd.f32 %v2870_v34, %v2869_v44  ;;  %v2877_v51 = vadd.f32 %v2876_v46, %v2875_v49  ;;  %v2883_v33 = vadd.f32 %v2882_v63, %v2881_v20  ;;  %v2740_v44 = vld [vmem:[#allocation3 + $0xe0] sm:$0xff]  ;;  %v2745_v13 = vld [vmem:[#allocation3 + $0xd0] sm:$0xff] }
 0x220   : > { %v2889_v62 = vadd.f32 %v2888_v19, %v2887_v60  ;;  %v2895_v31 = vadd.f32 %v2894_v11, %v2893_v61  ;;  %v2916_v58 = vcombine.low %v6403_v54, %v6405_v7  ;;  %v2917_v24 = vcombine.low %v6407_v6, %v6409_v21  ;;  %v2739_v7 = vld [vmem:[#allocation3 + $0xc8] sm:$0xff]  ;;  %v2743_v60 = vld [vmem:[#allocation3 + $0xc0] sm:$0xff] }
 0x221   : > { %v2918_v39 = vcombine.low %v6411_v43, %v6413_v40  ;;  %v2919_v52 = vcombine.low %v6415_v56, %v6417_v25  ;;  %v2965_v12 = vcombine.low %v2853_v36, %v2859_v9  ;;  %v2966_v37 = vcombine.low %v2865_v18, %v2871_v8  ;;  %v2741_v56 = vld [vmem:[#allocation3 + $0x90] sm:$0xff]  ;;  %v2744_v61 = vld [vmem:[#allocation3 + $0xa8] sm:$0xff]  ;;  %v2748_v11 = vld [vmem:[#allocation3 + $0xa0] sm:$0xff] }
 0x222   : > { %v2926_v59 = vrot.slane %v2916_v58, %v7445_v4  ;;  %v2933_v22 = vrot.slane %v2917_v24, %v7445_v4  ;;  %v2967_v55 = vcombine.low %v2877_v51, %v2883_v33  ;;  %v2968_v54 = vcombine.low %v2889_v62, %v2895_v31  ;;  %v2742_v25 = vld [vmem:[#allocation3 + $0x70] sm:$0xff]  ;;  %v2747_v19 = vld [vmem:[#allocation3 + $0x28] sm:$0xff]  ;;  %v2749_v33 = vld [vmem:[#allocation3 + $0xf8] sm:$0xff] }
 0x223   : > { %v2940_v6 = vrot.slane %v2918_v39, %v7445_v4  ;;  %v2947_v21 = vrot.slane %v2919_v52, %v7445_v4  ;;  %v2975_v43 = vrot.slane %v2965_v12, %v7445_v4  ;;  %v2982_v40 = vrot.slane %v2966_v37, %v7445_v4  ;;  %v2746_v9 = vld [vmem:[#allocation3 + $0x10] sm:$0xff]  ;;  %v2750_v62 = vld [vmem:[#allocation3 + $0x20] sm:$0xff]  ;;  %v2751_v31 = vld [vmem:[#allocation3 + $0x98] sm:$0xff] }
 0x224   : > { %v2948_v49 = vcombine.low %v2926_v59, %v2933_v22  ;;  %v2989_v20 = vrot.slane %v2967_v55, %v7445_v4  ;;  %v2996_v47 = vrot.slane %v2968_v54, %v7445_v4  ;;  %v3020_v23 = vsub.f32 %v2736_v1, %v6263_v16  ;;  %v3556_v1 = vld [vmem:[%s3717_s26 + $0x2] ss:$4 sm:$0xff] }
 0x225   : > { %v2949_v34 = vcombine.low %v2940_v6, %v2947_v21  ;;  %v2997_v46 = vcombine.low %v2975_v43, %v2982_v40  ;;  %v3021_v63 = vsub.f32 %v2737_v5, %v6265_v3  ;;  %v3022_v36 = vsub.f32 %v2738_v50, %v6267_v30  ;;  %v3557_v12 = vld [vmem:[%s3717_s26 + $0x22] ss:$4 sm:$0xff] }
 0x226   : > { %v2956_v18 = vrot.slane %v2948_v49, %v7445_v4  ;;  %v2998_v8 = vcombine.low %v2989_v20, %v2996_v47  ;;  %v3023_v51 = vsub.f32 %v2739_v7, %v6269_v35  ;;  %v3024_v16 = vsub.f32 %v2740_v44, %v6271_v48  ;;  %v7449_v43 = vld [vmem:[#allocation123_spill] sm:$0xff]  ;;  %v7451_v49 = vld [vmem:[#allocation125_spill] sm:$0xff]  ;;  %v7452_v47 = vld [vmem:[#allocation126_spill] sm:$0xff] }
 0x227   : > { %v2963_v58 = vrot.slane %v2949_v34, %v7445_v4  ;;  %v3005_v3 = vrot.slane %v2997_v46, %v7445_v4  ;;  %v3025_v30 = vsub.f32 %v2741_v56, %v6273_v38  ;;  %v3026_v24 = vsub.f32 %v2742_v25, %v6283_v42  ;;  %v7450_v56 = vld [vmem:[#allocation124_spill] sm:$0xff]  ;;  %v7455_v46 = vld [vmem:[#allocation129_spill] sm:$0xff] }
 0x228   : > { %v3012_v39 = vrot.slane %v2998_v8, %v7445_v4  ;;  %v3027_v52 = vsub.f32 %v2743_v60, %v6285_v53  ;;  %v3028_v35 = vsub.f32 %v2744_v61, %v6287_v10  ;;  %v3029_v48 = vsub.f32 %v2745_v13, %v6305_v17  ;;  %v7453_v60 = vld [vmem:[#allocation127_spill] sm:$0xff]  ;;  %v7454_v13 = vld [vmem:[#allocation128_spill] sm:$0xff] }
 0x229   : > { %v2964_v37 = vcombine.low %v2956_v18, %v2963_v58  ;;  %v3030_v5 = vsub.f32 %v2746_v9, %v6307_v27  ;;  %v3031_v50 = vsub.f32 %v2747_v19, %v6309_v57  ;;  %v3032_v38 = vsub.f32 %v2748_v11, %v6325_v0 }
 0x22a   : > { %v3013_v59 = vcombine.low %v3005_v3, %v3012_v39  ;;  %v3033_v42 = vsub.f32 %v2749_v33, %v6327_v29  ;;  %v3034_v22 = vsub.f32 %v2750_v62, %v6329_v15  ;;  %v3035_v53 = vsub.f32 %v2751_v31, %v6345_v28  ;;  %v7446_v29 = vld [vmem:[#allocation120_spill] sm:$0xff]  ;;  %v7447_v15 = vld [vmem:[#allocation121_spill] sm:$0xff]  ;;  %v7448_v28 = vld [vmem:[#allocation122_spill] sm:$0xff] }
 0x22b   : > { %v3016_v10 = vadd.f32 %v3556_v1, %v2964_v37  ;;  %v3036_v17 = vsub.f32 %v3020_v23, %v6277_v2  ;;  %v3037_v55 = vsub.f32 %v3021_v63, %v6281_v45  ;;  %v3038_v54 = vsub.f32 %v3022_v36, %v6291_v32  ;;  %v7456_v39 = vld [vmem:[#allocation73_spill] sm:$0xff] }
 0x22c   : > { %v3017_v27 = vadd.f32 %v3557_v12, %v3013_v59  ;;  %v3039_v57 = vsub.f32 %v3023_v51, %v6295_v14  ;;  %v3040_v0 = vsub.f32 %v3024_v16, %v6299_v41  ;;  %v3041_v7 = vsub.f32 %v3025_v30, %v6303_v26  ;;  %v7458_v12 = vld [vmem:[#allocation58_spill] sm:$0xff] }
 0x22d   : > { %3558 = vst [vmem:[%s3717_s26 + $0x2] ss:$4 sm:$0xff] %v3016_v10  ;;  %v3042_v44 = vsub.f32 %v3026_v24, %v7446_v29  ;;  %v3043_v6 = vsub.f32 %v3027_v52, %v7447_v15  ;;  %v3044_v21 = vsub.f32 %v3028_v35, %v7448_v28  ;;  %v3045_v40 = vsub.f32 %v3029_v48, %v7449_v43  ;;  %v7457_v35 = vld [vmem:[#allocation42_spill] sm:$0xff] }
 0x22e   : > { %3559 = vst [vmem:[%s3717_s26 + $0x22] ss:$4 sm:$0xff] %v3017_v27  ;;  %v3046_v25 = vsub.f32 %v3030_v5, %v7450_v56  ;;  %v3047_v20 = vsub.f32 %v3031_v50, %v7451_v49  ;;  %v3048_v23 = vsub.f32 %v3032_v38, %v7452_v47  ;;  %v3049_v61 = vsub.f32 %v3033_v42, %v7453_v60  ;;  %v7459_v5 = vld [vmem:[#allocation49_spill] sm:$0xff]  ;;  %v7460_v38 = vld [vmem:[#allocation20_spill] sm:$0xff] }
 0x22f   : > { %v3050_v34 = vsub.f32 %v3034_v22, %v7454_v13  ;;  %v3051_v63 = vsub.f32 %v3035_v53, %v7455_v46  ;;  %v3052_v36 = vmul.f32 %v3036_v17, %v3036_v17  ;;  %v3053_v9 = vmul.f32 %v3037_v55, %v3037_v55  ;;  %v7461_v42 = vld [vmem:[#allocation53_spill] sm:$0xff]  ;;  %v7463_v17 = vld [vmem:[#allocation108_spill] sm:$0xff] }
 0x230   : > { %v3054_v19 = vmul.f32 %v3038_v54, %v3038_v54  ;;  %v3055_v11 = vmul.f32 %v3039_v57, %v3039_v57  ;;  %v3056_v18 = vmul.f32 %v3040_v0, %v3040_v0  ;;  %v3057_v8 = vmul.f32 %v3041_v7, %v3041_v7  ;;  %v7462_v53 = vld [vmem:[#allocation45_spill] sm:$0xff]  ;;  %v7464_v55 = vld [vmem:[#allocation24_spill] sm:$0xff]  ;;  %v7465_v54 = vld [vmem:[#allocation26_spill] sm:$0xff] }
 0x231   : > { %v3058_v51 = vmul.f32 %v3042_v44, %v3042_v44  ;;  %v3059_v16 = vmul.f32 %v3043_v6, %v3043_v6  ;;  %v3060_v33 = vmul.f32 %v3044_v21, %v3044_v21  ;;  %v3061_v62 = vmul.f32 %v3045_v40, %v3045_v40  ;;  %v7466_v27 = vld [vmem:[#allocation113_spill] sm:$0xff]  ;;  %v7467_v57 = vld [vmem:[#allocation112_spill] sm:$0xff]  ;;  %v7468_v0 = vld [vmem:[#allocation35_spill] sm:$0xff] }
 0x232   : > { %v3062_v31 = vmul.f32 %v3046_v25, %v3046_v25  ;;  %v3063_v58 = vmul.f32 %v3047_v20, %v3047_v20  ;;  %v3064_v3 = vmul.f32 %v3048_v23, %v3048_v23  ;;  %v3065_v30 = vmul.f32 %v3049_v61, %v3049_v61  ;;  %v7469_v7 = vld [vmem:[#allocation77_spill] sm:$0xff] }
 0x233   : > { %v3066_v24 = vmul.f32 %v3050_v34, %v3050_v34  ;;  %v3067_v1 = vmul.f32 %v3051_v63, %v3051_v63  ;;  %v3084_v52 = vsub.f32 %v6277_v2, %v7456_v39  ;;  %v3085_v48 = vsub.f32 %v6281_v45, %v7457_v35  ;;  %v7470_v44 = vld [vmem:[#allocation65_spill] sm:$0xff] }
 0x234   : > { %v3086_v37 = vsub.f32 %v6291_v32, %v7458_v12  ;;  %v3087_v50 = vsub.f32 %v6295_v14, %v7459_v5  ;;  %v3088_v59 = vsub.f32 %v6299_v41, %v7460_v38  ;;  %v3089_v22 = vsub.f32 %v6303_v26, %v7461_v42  ;;  %v7471_v6 = vld [vmem:[#allocation81_spill] sm:$0xff] }
 0x235   : > { %v3090_v10 = vsub.f32 %v7446_v29, %v7462_v53  ;;  %v3091_v2 = vsub.f32 %v7447_v15, %v7463_v17  ;;  %v3092_v45 = vsub.f32 %v7448_v28, %v7464_v55  ;;  %v3093_v32 = vsub.f32 %v7449_v43, %v7465_v54 }
 0x236   : > { %v3094_v14 = vsub.f32 %v7450_v56, %v7466_v27  ;;  %v3095_v41 = vsub.f32 %v7451_v49, %v7467_v57  ;;  %v3096_v26 = vsub.f32 %v7452_v47, %v7468_v0  ;;  %v3097_v29 = vsub.f32 %v7453_v60, %v7469_v7 }
 0x237   : > { %v3098_v15 = vsub.f32 %v7454_v13, %v7470_v44  ;;  %v3099_v28 = vsub.f32 %v7455_v46, %v7471_v6  ;;  %v3100_v21 = vmul.f32 %v3084_v52, %v3084_v52  ;;  %v3101_v43 = vmul.f32 %v3085_v48, %v3085_v48 }
 0x238   : > { %v3102_v40 = vmul.f32 %v3086_v37, %v3086_v37  ;;  %v3103_v25 = vmul.f32 %v3087_v50, %v3087_v50  ;;  %v3104_v56 = vmul.f32 %v3088_v59, %v3088_v59  ;;  %v3105_v20 = vmul.f32 %v3089_v22, %v3089_v22 }
 0x239   : > { %v3106_v23 = vmul.f32 %v3090_v10, %v3090_v10  ;;  %v3107_v49 = vmul.f32 %v3091_v2, %v3091_v2  ;;  %v3108_v61 = vmul.f32 %v3092_v45, %v3092_v45  ;;  %v3109_v34 = vmul.f32 %v3093_v32, %v3093_v32 }
 0x23a   : > { %v3110_v47 = vmul.f32 %v3094_v14, %v3094_v14  ;;  %v3111_v63 = vmul.f32 %v3095_v41, %v3095_v41  ;;  %v3112_v39 = vmul.f32 %v3096_v26, %v3096_v26  ;;  %v3113_v60 = vmul.f32 %v3097_v29, %v3097_v29 }
 0x23b   : > { %v3114_v35 = vmul.f32 %v3098_v15, %v3098_v15  ;;  %v3115_v12 = vmul.f32 %v3099_v28, %v3099_v28  ;;  %v3132_v13 = vadd.f32 %v3100_v21, %v3052_v36  ;;  %v3133_v5 = vadd.f32 %v3101_v43, %v3053_v9 }
 0x23c   : > { %v3134_v38 = vadd.f32 %v3102_v40, %v3054_v19  ;;  %v3135_v46 = vadd.f32 %v3103_v25, %v3055_v11  ;;  %v3136_v52 = vadd.f32 %v3104_v56, %v3056_v18  ;;  %v3137_v48 = vadd.f32 %v3105_v20, %v3057_v8 }
 0x23d   : > { %v3138_v37 = vadd.f32 %v3106_v23, %v3058_v51  ;;  %v3139_v50 = vadd.f32 %v3107_v49, %v3059_v16  ;;  %v3140_v59 = vadd.f32 %v3108_v61, %v3060_v33  ;;  %v3141_v42 = vadd.f32 %v3109_v34, %v3061_v62 }
 0x23e   : > { %v6519_v22 = vadd.f32 %v3110_v47, %v3062_v31  ;;  %v6521_v53 = vadd.f32 %v3111_v63, %v3063_v58  ;;  %v6523_v10 = vadd.f32 %v3112_v39, %v3064_v3  ;;  %v6525_v17 = vadd.f32 %v3113_v60, %v3065_v30 }
 0x23f   : > { %v6527_v2 = vadd.f32 %v3114_v35, %v3066_v24  ;;  %v6529_v36 = vadd.f32 %v3115_v12, %v3067_v1  ;;  %v3148_v9 = vrot.slane %v3132_v13, 4  ;;  %v3154_v19 = vrot.slane %v3133_v5, 4 }
 0x240   : > { %v3160_v11 = vrot.slane %v3134_v38, 4  ;;  %v3166_v18 = vrot.slane %v3135_v46, 4  ;;  %v3172_v8 = vrot.slane %v3136_v52, 4  ;;  %v3178_v51 = vrot.slane %v3137_v48, 4 }
 0x241   : > { %v3149_v16 = vadd.f32 %v3148_v9, %v3132_v13  ;;  %v3155_v33 = vadd.f32 %v3154_v19, %v3133_v5  ;;  %v3184_v62 = vrot.slane %v3138_v37, 4  ;;  %v3190_v31 = vrot.slane %v3139_v50, 4 }
 0x242   : > { %v3161_v58 = vadd.f32 %v3160_v11, %v3134_v38  ;;  %v3167_v55 = vadd.f32 %v3166_v18, %v3135_v46  ;;  %v3173_v3 = vadd.f32 %v3172_v8, %v3136_v52  ;;  %v3179_v45 = vadd.f32 %v3178_v51, %v3137_v48 }
 0x243   : > { %v3150_v30 = vrot.slane %v3149_v16, 2  ;;  %v3156_v54 = vrot.slane %v3155_v33, 2  ;;  %v3185_v24 = vadd.f32 %v3184_v62, %v3138_v37  ;;  %v3191_v32 = vadd.f32 %v3190_v31, %v3139_v50 }
 0x244   : > { %v3162_v1 = vrot.slane %v3161_v58, 2  ;;  %v3168_v27 = vrot.slane %v3167_v55, 2  ;;  %v3174_v14 = vrot.slane %v3173_v3, 2  ;;  %v3180_v57 = vrot.slane %v3179_v45, 2 }
 0x245   : > { %v3151_v41 = vadd.f32 %v3150_v30, %v3149_v16  ;;  %v3157_v0 = vadd.f32 %v3156_v54, %v3155_v33  ;;  %v3186_v26 = vrot.slane %v3185_v24, 2  ;;  %v3192_v7 = vrot.slane %v3191_v32, 2 }
 0x246   : > { %v3163_v29 = vadd.f32 %v3162_v1, %v3161_v58  ;;  %v3169_v44 = vadd.f32 %v3168_v27, %v3167_v55  ;;  %v3175_v15 = vadd.f32 %v3174_v14, %v3173_v3  ;;  %v3181_v6 = vadd.f32 %v3180_v57, %v3179_v45 }
 0x247   : > { %v3152_v28 = vrot.slane %v3151_v41, 1  ;;  %v3158_v21 = vrot.slane %v3157_v0, 1  ;;  %v3187_v43 = vadd.f32 %v3186_v26, %v3185_v24  ;;  %v3193_v40 = vadd.f32 %v3192_v7, %v3191_v32 }
 0x248   : > { %v3164_v25 = vrot.slane %v3163_v29, 1  ;;  %v3170_v56 = vrot.slane %v3169_v44, 1  ;;  %v3176_v20 = vrot.slane %v3175_v15, 1  ;;  %v3182_v23 = vrot.slane %v3181_v6, 1 }
 0x249   : > { %v6531_v49 = vadd.f32 %v3152_v28, %v3151_v41  ;;  %v6533_v61 = vadd.f32 %v3158_v21, %v3157_v0  ;;  %v3188_v34 = vrot.slane %v3187_v43, 1  ;;  %v3194_v47 = vrot.slane %v3193_v40, 1 }
 0x24a   : > { %v3165_v63 = vadd.f32 %v3164_v25, %v3163_v29  ;;  %v3171_v39 = vadd.f32 %v3170_v56, %v3169_v44  ;;  %v6535_v60 = vadd.f32 %v3176_v20, %v3175_v15  ;;  %v3183_v35 = vadd.f32 %v3182_v23, %v3181_v6 }
 0x24b   : > { %v3189_v12 = vadd.f32 %v3188_v34, %v3187_v43  ;;  %v3195_v13 = vadd.f32 %v3194_v47, %v3193_v40  ;;  %v3196_v5 = vrot.slane %v3140_v59, 4  ;;  %v3202_v38 = vrot.slane %v3141_v42, 4 }
 0x24c   : > { %v3208_v46 = vrot.slane %v6519_v22, 4  ;;  %v3214_v52 = vrot.slane %v6521_v53, 4  ;;  %v3220_v48 = vrot.slane %v6523_v10, 4  ;;  %v3226_v37 = vrot.slane %v6525_v17, 4 }
 0x24d   : > { %v3197_v50 = vadd.f32 %v3196_v5, %v3140_v59  ;;  %v3203_v9 = vadd.f32 %v3202_v38, %v3141_v42  ;;  %v3232_v19 = vrot.slane %v6527_v2, 4  ;;  %v3238_v11 = vrot.slane %v6529_v36, 4 }
 0x24e   : > { %v3209_v18 = vadd.f32 %v3208_v46, %v6519_v22  ;;  %v3215_v8 = vadd.f32 %v3214_v52, %v6521_v53  ;;  %v3221_v51 = vadd.f32 %v3220_v48, %v6523_v10  ;;  %v3227_v16 = vadd.f32 %v3226_v37, %v6525_v17 }
 0x24f   : > { %v3198_v33 = vrot.slane %v3197_v50, 2  ;;  %v3204_v62 = vrot.slane %v3203_v9, 2  ;;  %v3233_v31 = vadd.f32 %v3232_v19, %v6527_v2  ;;  %v3239_v58 = vadd.f32 %v3238_v11, %v6529_v36  ;;  %v3560_v19 = vld [vmem:[%s3717_s26 + $0x3] ss:$4 sm:$0xff] }
 0x250   : > { %v3210_v59 = vrot.slane %v3209_v18, 2  ;;  %v3216_v42 = vrot.slane %v3215_v8, 2  ;;  %v3222_v55 = vrot.slane %v3221_v51, 2  ;;  %v3228_v3 = vrot.slane %v3227_v16, 2 }
 0x251   : > { %v3199_v45 = vadd.f32 %v3198_v33, %v3197_v50  ;;  %v3205_v30 = vadd.f32 %v3204_v62, %v3203_v9  ;;  %v3234_v54 = vrot.slane %v3233_v31, 2  ;;  %v3240_v22 = vrot.slane %v3239_v58, 2 }
 0x252   : > { %v3211_v24 = vadd.f32 %v3210_v59, %v3209_v18  ;;  %v3217_v53 = vadd.f32 %v3216_v42, %v3215_v8  ;;  %v3223_v32 = vadd.f32 %v3222_v55, %v3221_v51  ;;  %v3229_v10 = vadd.f32 %v3228_v3, %v3227_v16  ;;  %v3561_v18 = vld [vmem:[%s3717_s26 + $0x23] ss:$4 sm:$0xff] }
 0x253   : > { %v3200_v1 = vrot.slane %v3199_v45, 1  ;;  %v3206_v17 = vrot.slane %v3205_v30, 1  ;;  %v3235_v27 = vadd.f32 %v3234_v54, %v3233_v31  ;;  %v3241_v14 = vadd.f32 %v3240_v22, %v3239_v58 }
 0x254   : > { %v3212_v57 = vrot.slane %v3211_v24, 1  ;;  %v3218_v2 = vrot.slane %v3217_v53, 1  ;;  %v3224_v41 = vrot.slane %v3223_v32, 1  ;;  %v3230_v36 = vrot.slane %v3229_v10, 1 }
 0x255   : > { %v3201_v0 = vadd.f32 %v3200_v1, %v3199_v45  ;;  %v3207_v26 = vadd.f32 %v3206_v17, %v3205_v30  ;;  %v3236_v7 = vrot.slane %v3235_v27, 1  ;;  %v3242_v29 = vrot.slane %v3241_v14, 1 }
 0x256   : > { %v3213_v44 = vadd.f32 %v3212_v57, %v3211_v24  ;;  %v3219_v15 = vadd.f32 %v3218_v2, %v3217_v53  ;;  %v3225_v6 = vadd.f32 %v3224_v41, %v3223_v32  ;;  %v3231_v28 = vadd.f32 %v3230_v36, %v3229_v10 }
 0x257   : > { %v3237_v21 = vadd.f32 %v3236_v7, %v3235_v27  ;;  %v3243_v43 = vadd.f32 %v3242_v29, %v3241_v14  ;;  %v3264_v40 = vcombine.low %v6531_v49, %v6533_v61  ;;  %v3265_v25 = vcombine.low %v3165_v63, %v3171_v39 }
 0x258   : > { %v3266_v56 = vcombine.low %v6535_v60, %v3183_v35  ;;  %v3267_v20 = vcombine.low %v3189_v12, %v3195_v13  ;;  %v3313_v23 = vcombine.low %v3201_v0, %v3207_v26  ;;  %v3314_v34 = vcombine.low %v3213_v44, %v3219_v15 }
 0x259   : > { %v3274_v47 = vrot.slane %v3264_v40, %v7445_v4  ;;  %v3281_v5 = vrot.slane %v3265_v25, %v7445_v4  ;;  %v3315_v38 = vcombine.low %v3225_v6, %v3231_v28  ;;  %v3316_v46 = vcombine.low %v3237_v21, %v3243_v43 }
 0x25a   : > { %v3288_v52 = vrot.slane %v3266_v56, %v7445_v4  ;;  %v3295_v48 = vrot.slane %v3267_v20, %v7445_v4  ;;  %v3323_v49 = vrot.slane %v3313_v23, %v7445_v4  ;;  %v3330_v61 = vrot.slane %v3314_v34, %v7445_v4 }
 0x25b   : > { %v3296_v63 = vcombine.low %v3274_v47, %v3281_v5  ;;  %v3337_v39 = vrot.slane %v3315_v38, %v7445_v4  ;;  %v3344_v60 = vrot.slane %v3316_v46, %v7445_v4 }
 0x25c   : > { %v3297_v35 = vcombine.low %v3288_v52, %v3295_v48  ;;  %v3345_v12 = vcombine.low %v3323_v49, %v3330_v61 }
 0x25d   : > { %v3304_v13 = vrot.slane %v3296_v63, %v7445_v4  ;;  %v3346_v37 = vcombine.low %v3337_v39, %v3344_v60 }
 0x25e   : > { %v3311_v50 = vrot.slane %v3297_v35, %v7445_v4  ;;  %v3353_v9 = vrot.slane %v3345_v12, %v7445_v4 }
 0x25f   : > { %v3360_v11 = vrot.slane %v3346_v37, %v7445_v4 }
 0x260   : > { %v3312_v8 = vcombine.low %v3304_v13, %v3311_v50 }
 0x261   : > { %v3361_v51 = vcombine.low %v3353_v9, %v3360_v11 }
 0x262   : > { %v3364_v16 = vadd.f32 %v3560_v19, %v3312_v8 }
 0x263   : > { %v3365_v33 = vadd.f32 %v3561_v18, %v3361_v51 }
 0x264   : > { %3562 = vst [vmem:[%s3717_s26 + $0x3] ss:$4 sm:$0xff] %v3364_v16 }
 0x265   : > { %3563 = vst [vmem:[%s3717_s26 + $0x23] ss:$4 sm:$0xff] %v3365_v33 }
 0x266 PF: > { %v7472_v62 = vld [vmem:[#allocation4_spill] sm:$0xff]  ;;  %v7473_v4 = vld [vmem:[#allocation5_spill] sm:$0xff]  ;;  %v7474_v31 = vld [vmem:[#allocation6_spill] sm:$0xff] }
 0x267   : > { %3368 = vst [vmem:[%s5291_s4] sm:$0xff] %v7472_v62  ;;  %3369 = vst [vmem:[%s5291_s4 + $0x8] sm:$0xff] %v7473_v4  ;;  %v7475_v58 = vld [vmem:[#allocation7_spill] sm:$0xff]  ;;  %v7476_v59 = vld [vmem:[#allocation8_spill] sm:$0xff] }
 0x268   : > { %3370 = vst [vmem:[%s5291_s4 + $0x10] sm:$0xff] %v7474_v31  ;;  %3371 = vst [vmem:[%s5291_s4 + $0x18] sm:$0xff] %v7475_v58  ;;  %v7477_v42 = vld [vmem:[#allocation9_spill] sm:$0xff]  ;;  %v7478_v55 = vld [vmem:[#allocation10_spill] sm:$0xff] }
 0x269   : > { %3372 = vst [vmem:[%s5291_s4 + $0x20] sm:$0xff] %v7476_v59  ;;  %3373 = vst [vmem:[%s5291_s4 + $0x28] sm:$0xff] %v7477_v42  ;;  %v7479_v3 = vld [vmem:[#allocation11_spill] sm:$0xff]  ;;  %v7480_v45 = vld [vmem:[#allocation12_spill] sm:$0xff] }
 0x26a   : > { %3374 = vst [vmem:[%s5291_s4 + $0x30] sm:$0xff] %v7478_v55  ;;  %3375 = vst [vmem:[%s5291_s4 + $0x38] sm:$0xff] %v7479_v3  ;;  %v7481_v30 = vld [vmem:[#allocation13_spill] sm:$0xff]  ;;  %v7482_v54 = vld [vmem:[#allocation14_spill] sm:$0xff] }
 0x26b   : > { %3376 = vst [vmem:[%s5291_s4 + $0x40] sm:$0xff] %v7480_v45  ;;  %3377 = vst [vmem:[%s5291_s4 + $0x48] sm:$0xff] %v7481_v30  ;;  %v7483_v22 = vld [vmem:[#allocation15_spill] sm:$0xff]  ;;  %v7484_v24 = vld [vmem:[#allocation16_spill] sm:$0xff] }
 0x26c   : > { %3378 = vst [vmem:[%s5291_s4 + $0x50] sm:$0xff] %v7482_v54  ;;  %3379 = vst [vmem:[%s5291_s4 + $0x58] sm:$0xff] %v7483_v22  ;;  %v7485_v53 = vld [vmem:[#allocation17_spill] sm:$0xff]  ;;  %v7486_v32 = vld [vmem:[#allocation18_spill] sm:$0xff] }
 0x26d   : > { %3380 = vst [vmem:[%s5291_s4 + $0x60] sm:$0xff] %v7484_v24  ;;  %3381 = vst [vmem:[%s5291_s4 + $0x68] sm:$0xff] %v7485_v53  ;;  %v7487_v10 = vld [vmem:[#allocation19_spill] sm:$0xff] }
 0x26e   : > { %3382 = vst [vmem:[%s5291_s4 + $0x70] sm:$0xff] %v7486_v32  ;;  %3383 = vst [vmem:[%s5291_s4 + $0x78] sm:$0xff] %v7487_v10 }
 0x26f PF: > { %s13_s16 = sadd.s32 1, %s3653_s16   ;;  %s7488_s12 = smov %s3645_s14 }
 0x270   : > { %p10_p2 = scmp.ge.s32.totalorder %s13_s16, 14   ;;  %s7489_s13 = smov %s3649_s15 }
 0x271   : > { %s7490_s14 = smov %s7493_s17  ;;  %s7491_s15 = smov %s7497_s18 }
 0x272   :  { %12 = sbr.rel (!%p10_p2) target bundleno = 3 (0x3), region = 105 }

</bundles_post_ra>
